<compile_context>
chip_gen: v7x
topology: tpu7x:2x2x1
jax: 0.10.0
libtpu: 0.0.40
codegen_flags: <defaults>
</compile_context>

<pallas_src>
import jax
import jax.numpy as jnp
from jax import lax
from jax.experimental import pallas as pl
from jax.experimental.pallas import tpu as pltpu

NBF = 8            # torch.cat((basis2, basis2)) -> 8 basis functions
NPAIR = NBF * NBF  # 64
NATOM = 2
_SQRT_PI = 1.7724538509055159
_TWO_PI_POW_2_5 = 2.0 * (3.141592653589793 ** 2.5)

BASIS2 = jnp.array([0.5, 0.4, 0.3, 0.2], dtype=jnp.float32)

_VMEM = pl.BlockSpec(memory_space=pltpu.MemorySpace.VMEM)
_SMEM = pl.BlockSpec(memory_space=pltpu.MemorySpace.SMEM)


# ---------------------------------------------------------------------------
# In-kernel math helpers (exp / mul / add / where / EUP recip+rsqrt)
# ---------------------------------------------------------------------------
def _erf_pos(x):
    """Abramowitz & Stegun 7.1.26 erf for x >= 0 (|err| < 1.5e-7)."""
    p = 0.3275911
    a1, a2, a3, a4, a5 = (0.254829592, -0.284496736, 1.421413741,
                          -1.453152027, 1.061405429)
    t = pl.reciprocal(1.0 + p * x, approx=True)      # EUP slot
    poly = ((((a5 * t + a4) * t + a3) * t + a2) * t + a1) * t
    return 1.0 - poly * jnp.exp(-x * x)


def _boys0(arg):
    """Boys function F0(arg); matches torchboys(0, arg) incl. small-arg branch."""
    small = arg < 1e-8
    safe = jnp.where(small, 1.0, arg)
    s = jnp.sqrt(safe)
    big_val = _erf_pos(s) * (0.5 * _SQRT_PI) * lax.rsqrt(safe)   # 1/(2*sqrt) on EUP
    small_val = 1.0 - arg * (1.0 / 3.0)
    return jnp.where(small, small_val, big_val)


# ---------------------------------------------------------------------------
# Fused integrals kernel:  S, H = T + V, and Gcomb = 2*GJ - GK
# ---------------------------------------------------------------------------
def _integrals_kernel(oei_row_ref, oei_col_ref, tei_row_ref, tei_col_ref,
                      geom_ref, charge_ref, s_ref, h_ref, gcomb_ref):
    # -------------------- one-electron block (8, 8) -------------------------
    # oei_row: (8, 5) = [alpha, x, y, z, norm] per bra fn; oei_col: (5, 8) = T.
    a_i = oei_row_ref[:, 0:1]; ax = oei_row_ref[:, 1:2]
    ay = oei_row_ref[:, 2:3]; az = oei_row_ref[:, 3:4]
    n_i = oei_row_ref[:, 4:5]
    a_j = oei_col_ref[0:1, :]; bx = oei_col_ref[1:2, :]
    by = oei_col_ref[2:3, :]; bz = oei_col_ref[3:4, :]
    n_j = oei_col_ref[4:5, :]

    g = a_i + a_j                              # (8, 8)
    inv_g = 1.0 / g                            # exact: S feeds ill-conditioned eigh
    ab_over_g = a_i * a_j * inv_g
    ab2 = (ax - bx) ** 2 + (ay - by) ** 2 + (az - bz) ** 2
    coeff = jnp.exp(-ab_over_g * ab2)
    norm = n_i * n_j
    pig = jnp.pi * inv_g
    pig32 = pig * jnp.sqrt(pig)                # (pi/g)**1.5

    s_ref[...] = norm * pig32 * coeff
    t_mat = norm * coeff * ab_over_g * (3.0 - 2.0 * ab_over_g * ab2) * pig32

    # Gaussian product center P = (a_i*A + a_j*B) / (a_i + a_j)
    px = (a_i * ax + a_j * bx) * inv_g
    py = (a_i * ay + a_j * by) * inv_g
    pz = (a_i * az + a_j * bz) * inv_g

    vsum = jnp.zeros((NBF, NBF), jnp.float32)
    for atom in range(NATOM):                  # unrolled over the 2 nuclei
        cx = geom_ref[atom, 0]
        cy = geom_ref[atom, 1]
        cz = geom_ref[atom, 2]
        zc = charge_ref[atom]
        pc2 = (px - cx) ** 2 + (py - cy) ** 2 + (pz - cz) ** 2
        vsum = vsum + (-zc) * _boys0(g * pc2)
    h_ref[...] = t_mat + norm * coeff * (2.0 * jnp.pi * inv_g) * vsum

    # -------------------- two-electron block (64, 64) ------------------------
    # tei_row fields per bra pair (p, q):
    #   0:a_p  1..3:A_p  4:a_q  5..7:A_q  8:N_p*N_q
    #   9:g1  10:1/g1  11..13:P  14:N_p*N_q*exp(-(a_p a_q/g1)|A_p-A_q|^2)
    # tei_col = transpose (per ket pair (r, s)).

    # GJ[(pq),(rs)] = (pq|rs): separable factors are pre-folded in the tables,
    # only the true cross terms remain here.
    g1 = tei_row_ref[:, 9:10]; ig1 = tei_row_ref[:, 10:11]
    pxr = tei_row_ref[:, 11:12]; pyr = tei_row_ref[:, 12:13]; pzr = tei_row_ref[:, 13:14]
    nc1 = tei_row_ref[:, 14:15]
    g2 = tei_col_ref[9:10, :]; ig2 = tei_col_ref[10:11, :]
    qxc = tei_col_ref[11:12, :]; qyc = tei_col_ref[12:13, :]; qzc = tei_col_ref[13:14, :]
    nc2 = tei_col_ref[14:15, :]

    gsum = g1 + g2
    inv_gsum = pl.reciprocal(gsum, approx=True)
    pq2 = (pxr - qxc) ** 2 + (pyr - qyc) ** 2 + (pzr - qzc) ** 2
    f0_j = _boys0(g1 * g2 * inv_gsum * pq2)
    pref_j = _TWO_PI_POW_2_5 * ig1 * ig2 * lax.rsqrt(gsum)
    gj = (nc1 * nc2) * pref_j * f0_j

    # GK[(pq),(rs)] = (pr|qs): bra pair = (row-first, col-first),
    # ket pair = (row-second, col-second) — genuine 64x64 cross terms.
    apr = tei_row_ref[:, 0:1]
    apx = tei_row_ref[:, 1:2]; apy = tei_row_ref[:, 2:3]; apz = tei_row_ref[:, 3:4]
    aqr = tei_row_ref[:, 4:5]
    aqx = tei_row_ref[:, 5:6]; aqy = tei_row_ref[:, 6:7]; aqz = tei_row_ref[:, 7:8]
    nr = tei_row_ref[:, 8:9]
    arc = tei_col_ref[0:1, :]
    arx = tei_col_ref[1:2, :]; ary = tei_col_ref[2:3, :]; arz = tei_col_ref[3:4, :]
    asc = tei_col_ref[4:5, :]
    asx = tei_col_ref[5:6, :]; asy = tei_col_ref[6:7, :]; asz = tei_col_ref[7:8, :]
    ncl = tei_col_ref[8:9, :]

    bg1 = apr + arc
    ibg1 = pl.reciprocal(bg1, approx=True)
    ab2k = (apx - arx) ** 2 + (apy - ary) ** 2 + (apz - arz) ** 2
    c1k = jnp.exp(-(apr * arc * ibg1) * ab2k)
    pkx = (apr * apx + arc * arx) * ibg1
    pky = (apr * apy + arc * ary) * ibg1
    pkz = (apr * apz + arc * arz) * ibg1

    bg2 = aqr + asc
    ibg2 = pl.reciprocal(bg2, approx=True)
    cd2k = (aqx - asx) ** 2 + (aqy - asy) ** 2 + (aqz - asz) ** 2
    c2k = jnp.exp(-(aqr * asc * ibg2) * cd2k)
    qkx = (aqr * aqx + asc * asx) * ibg2
    qky = (aqr * aqy + asc * asy) * ibg2
    qkz = (aqr * aqz + asc * asz) * ibg2

    gksum = bg1 + bg2
    pq2k = (pkx - qkx) ** 2 + (pky - qky) ** 2 + (pkz - qkz) ** 2
    f0_k = _boys0(bg1 * bg2 * pl.reciprocal(gksum, approx=True) * pq2k)
    pref_k = _TWO_PI_POW_2_5 * ibg1 * ibg2 * lax.rsqrt(gksum)
    gk = (nr * ncl) * (c1k * c2k) * pref_k * f0_k

    gcomb_ref[...] = 2.0 * gj - gk


def integrals_pallas(row_oei, col_oei, row_tei, col_tei, geom, charges):
    return pl.pallas_call(
        _integrals_kernel,
        out_shape=(jax.ShapeDtypeStruct((NBF, NBF), jnp.float32),     # S
                   jax.ShapeDtypeStruct((NBF, NBF), jnp.float32),     # H = T + V
                   jax.ShapeDtypeStruct((NPAIR, NPAIR), jnp.float32)),  # 2*GJ - GK
        in_specs=[_VMEM, _VMEM, _VMEM, _VMEM, _SMEM, _SMEM],
        out_specs=(_VMEM, _VMEM, _VMEM),
    )(row_oei, col_oei, row_tei, col_tei, geom, charges)


# ---------------------------------------------------------------------------
# Full forward (mirrors RHF.forward -> oei + the_rest)
# ---------------------------------------------------------------------------
def rhf_forward(geom, row_idx=None):
    # row_idx mirrors the torch signature; it only affects checkpointed backward.
    del row_idx
    geom = geom.astype(jnp.float32)
    full_basis = jnp.concatenate([BASIS2, BASIS2])              # (8,)
    charges = jnp.array([1.0, 1.0], dtype=jnp.float32)
    centers = jnp.repeat(geom, NBF // NATOM, axis=0)            # (8, 3)
    norms = (2.0 * full_basis / jnp.pi) ** 0.75                 # (2a/pi)^(3/4)

    # one-electron tables
    row_oei = jnp.concatenate(
        [full_basis[:, None], centers, norms[:, None]], axis=1)  # (8, 5)
    col_oei = row_oei.T                                          # (5, 8)

    # two-electron pair tables (one-time, outside any loop) with pre-folded
    # row/col-separable GJ factors.
    p_idx = jnp.repeat(jnp.arange(NBF), NBF)
    q_idx = jnp.tile(jnp.arange(NBF), NBF)
    a_p = full_basis[p_idx]; a_q = full_basis[q_idx]
    A_p = centers[p_idx];    A_q = centers[q_idx]
    nprod = norms[p_idx] * norms[q_idx]
    g1 = a_p + a_q
    inv_g1 = 1.0 / g1
    ab2 = jnp.sum((A_p - A_q) ** 2, axis=1)
    c1 = jnp.exp(-(a_p * a_q * inv_g1) * ab2)
    P = (a_p[:, None] * A_p + a_q[:, None] * A_q) * inv_g1[:, None]
    row_tei = jnp.concatenate(
        [a_p[:, None], A_p, a_q[:, None], A_q, nprod[:, None],
         g1[:, None], inv_g1[:, None], P, (nprod * c1)[:, None]],
        axis=1).astype(jnp.float32)                              # (64, 15)
    col_tei = row_tei.T                                          # (15, 64)

    s_mat, h_mat, gcomb = integrals_pallas(
        row_oei.astype(jnp.float32), col_oei.astype(jnp.float32),
        row_tei, col_tei, geom, charges)

    # --- orthogonalizer A = S^(-1/2) ---
    # TODO(synk): symmetric eigensolve (torch.symeig) has no Pallas equivalent;
    #             done with jnp.linalg.eigh in plain JAX.
    sval, svec = jnp.linalg.eigh(s_mat)
    sval = jnp.maximum(sval, 1e-8)   # f32 guard for the ill-conditioned overlap
    a_mat = (svec * (1.0 / jnp.sqrt(sval))[None, :]) @ svec.T

    enuc = 1.0 / jnp.sqrt(jnp.sum((geom[0] - geom[1]) ** 2))     # Z1*Z2 = 1

    h_flat = h_mat.reshape(NPAIR)
    ndocc = 1

    def scf_iter(_, carry):
        d_mat, _ = carry
        # Fock build F = H + 2J - K = H + Gcomb @ vec(D): ~8 KFLOP, so it stays
        # a plain XLA matvec (no repeated pallas_call launch / DMA per iteration).
        f_flat = h_flat + jnp.dot(gcomb, d_mat.reshape(NPAIR),
                                  preferred_element_type=jnp.float32)
        f_mat = f_flat.reshape(NBF, NBF)
        fp = a_mat @ f_mat @ a_mat
        _, c2 = jnp.linalg.eigh(fp)
        c = a_mat @ c2
        cocc = c[:, :ndocc]
        d_new = cocc @ cocc.T
        e_scf = jnp.sum((f_mat + h_mat) * d_new) + enuc
        return d_new, e_scf

    d0 = jnp.zeros((NBF, NBF), jnp.float32)
    _, e_scf = lax.fori_loop(0, 20, scf_iter,
                             (d0, jnp.zeros((), jnp.float32)))
    return e_scf


if __name__ == "__main__":
    key = jax.random.PRNGKey(0)
    # H2-like geometry (bohr) plus a small deterministic perturbation.
    base = jnp.array([[0.0, 0.0, 0.0],
                      [0.0, 0.0, 1.6]], dtype=jnp.float32)
    geom = base + 0.05 * jax.random.normal(key, (2, 3), dtype=jnp.float32)
    row_idx = jnp.int32(0)

    e_scf = jax.jit(rhf_forward)(geom, row_idx)
    jax.block_until_ready(e_scf)
    print("KERNEL_OK")
</pallas_src>

<mosaic_0001>
module attributes {stable_mosaic.version = 11 : i64} {
  func.func @_integrals_kernel(%arg0: memref<8x5xf32, #tpu.memory_space<vmem>>, %arg1: memref<5x8xf32, #tpu.memory_space<vmem>>, %arg2: memref<64x15xf32, #tpu.memory_space<vmem>>, %arg3: memref<15x64xf32, #tpu.memory_space<vmem>>, %arg4: memref<2x3xf32, #tpu.memory_space<smem>>, %arg5: memref<2xf32, #tpu.memory_space<smem>>, %arg6: memref<8x8xf32, #tpu.memory_space<vmem>>, %arg7: memref<8x8xf32, #tpu.memory_space<vmem>>, %arg8: memref<64x64xf32, #tpu.memory_space<vmem>>) attributes {dimension_semantics = [], scalar_prefetch = 0 : i64, scratch_operands = 0 : i64, tpu.core_type = #tpu.core_type<tc>} {
    %c0 = arith.constant 0 : index
    %c0_0 = arith.constant 0 : index
    %0 = vector.load %arg0[%c0, %c0_0] : memref<8x5xf32, #tpu.memory_space<vmem>>, vector<8x1xf32>
    %c0_1 = arith.constant 0 : index
    %c1 = arith.constant 1 : index
    %1 = vector.load %arg0[%c0_1, %c1] : memref<8x5xf32, #tpu.memory_space<vmem>>, vector<8x1xf32>
    %c0_2 = arith.constant 0 : index
    %c2 = arith.constant 2 : index
    %2 = vector.load %arg0[%c0_2, %c2] : memref<8x5xf32, #tpu.memory_space<vmem>>, vector<8x1xf32>
    %c0_3 = arith.constant 0 : index
    %c3 = arith.constant 3 : index
    %3 = vector.load %arg0[%c0_3, %c3] : memref<8x5xf32, #tpu.memory_space<vmem>>, vector<8x1xf32>
    %c0_4 = arith.constant 0 : index
    %c4 = arith.constant 4 : index
    %4 = vector.load %arg0[%c0_4, %c4] : memref<8x5xf32, #tpu.memory_space<vmem>>, vector<8x1xf32>
    %c0_5 = arith.constant 0 : index
    %c0_6 = arith.constant 0 : index
    %5 = vector.load %arg1[%c0_5, %c0_6] : memref<5x8xf32, #tpu.memory_space<vmem>>, vector<1x8xf32>
    %c1_7 = arith.constant 1 : index
    %c0_8 = arith.constant 0 : index
    %6 = vector.load %arg1[%c1_7, %c0_8] : memref<5x8xf32, #tpu.memory_space<vmem>>, vector<1x8xf32>
    %c2_9 = arith.constant 2 : index
    %c0_10 = arith.constant 0 : index
    %7 = vector.load %arg1[%c2_9, %c0_10] : memref<5x8xf32, #tpu.memory_space<vmem>>, vector<1x8xf32>
    %c3_11 = arith.constant 3 : index
    %c0_12 = arith.constant 0 : index
    %8 = vector.load %arg1[%c3_11, %c0_12] : memref<5x8xf32, #tpu.memory_space<vmem>>, vector<1x8xf32>
    %c4_13 = arith.constant 4 : index
    %c0_14 = arith.constant 0 : index
    %9 = vector.load %arg1[%c4_13, %c0_14] : memref<5x8xf32, #tpu.memory_space<vmem>>, vector<1x8xf32>
    %10 = vector.broadcast %0 : vector<8x1xf32> to vector<8x8xf32>
    %11 = vector.broadcast %5 : vector<1x8xf32> to vector<8x8xf32>
    %12 = arith.addf %10, %11 : vector<8x8xf32>
    %cst = arith.constant 1.000000e+00 : f32
    %13 = vector.broadcast %cst : f32 to vector<8x8xf32>
    %14 = arith.divf %13, %12 : vector<8x8xf32>
    %15 = vector.broadcast %0 : vector<8x1xf32> to vector<8x8xf32>
    %16 = vector.broadcast %5 : vector<1x8xf32> to vector<8x8xf32>
    %17 = arith.mulf %15, %16 : vector<8x8xf32>
    %18 = arith.mulf %17, %14 : vector<8x8xf32>
    %19 = vector.broadcast %1 : vector<8x1xf32> to vector<8x8xf32>
    %20 = vector.broadcast %6 : vector<1x8xf32> to vector<8x8xf32>
    %21 = arith.subf %19, %20 : vector<8x8xf32>
    %22 = arith.mulf %21, %21 : vector<8x8xf32>
    %23 = vector.broadcast %2 : vector<8x1xf32> to vector<8x8xf32>
    %24 = vector.broadcast %7 : vector<1x8xf32> to vector<8x8xf32>
    %25 = arith.subf %23, %24 : vector<8x8xf32>
    %26 = arith.mulf %25, %25 : vector<8x8xf32>
    %27 = arith.addf %22, %26 : vector<8x8xf32>
    %28 = vector.broadcast %3 : vector<8x1xf32> to vector<8x8xf32>
    %29 = vector.broadcast %8 : vector<1x8xf32> to vector<8x8xf32>
    %30 = arith.subf %28, %29 : vector<8x8xf32>
    %31 = arith.mulf %30, %30 : vector<8x8xf32>
    %32 = arith.addf %27, %31 : vector<8x8xf32>
    %cst_15 = arith.constant 0.000000e+00 : f32
    %33 = vector.broadcast %cst_15 : f32 to vector<8x8xf32>
    %34 = arith.subf %33, %18 : vector<8x8xf32>
    %35 = arith.mulf %34, %32 : vector<8x8xf32>
    %36 = math.exp %35 : vector<8x8xf32>
    %37 = vector.broadcast %4 : vector<8x1xf32> to vector<8x8xf32>
    %38 = vector.broadcast %9 : vector<1x8xf32> to vector<8x8xf32>
    %39 = arith.mulf %37, %38 : vector<8x8xf32>
    %cst_16 = arith.constant 3.14159274 : f32
    %40 = vector.broadcast %cst_16 : f32 to vector<8x8xf32>
    %41 = arith.mulf %40, %14 : vector<8x8xf32>
    %42 = math.sqrt %41 : vector<8x8xf32>
    %43 = arith.mulf %41, %42 : vector<8x8xf32>
    %44 = arith.mulf %39, %43 : vector<8x8xf32>
    %45 = arith.mulf %44, %36 : vector<8x8xf32>
    %c0_17 = arith.constant 0 : index
    %c0_18 = arith.constant 0 : index
    %46 = vector.load %arg6[%c0_17, %c0_18] : memref<8x8xf32, #tpu.memory_space<vmem>>, vector<8x8xf32>
    tpu.vector_store %arg6[%c0_17, %c0_18], %45 {strides = array<i32>} : memref<8x8xf32, #tpu.memory_space<vmem>>, vector<8x8xf32>,
    %47 = arith.mulf %39, %36 : vector<8x8xf32>
    %48 = arith.mulf %47, %18 : vector<8x8xf32>
    %cst_19 = arith.constant 2.000000e+00 : f32
    %49 = vector.broadcast %cst_19 : f32 to vector<8x8xf32>
    %50 = arith.mulf %49, %18 : vector<8x8xf32>
    %51 = arith.mulf %50, %32 : vector<8x8xf32>
    %cst_20 = arith.constant 3.000000e+00 : f32
    %52 = vector.broadcast %cst_20 : f32 to vector<8x8xf32>
    %53 = arith.subf %52, %51 : vector<8x8xf32>
    %54 = arith.mulf %48, %53 : vector<8x8xf32>
    %55 = arith.mulf %54, %43 : vector<8x8xf32>
    %56 = arith.mulf %0, %1 : vector<8x1xf32>
    %57 = arith.mulf %5, %6 : vector<1x8xf32>
    %58 = vector.broadcast %56 : vector<8x1xf32> to vector<8x8xf32>
    %59 = vector.broadcast %57 : vector<1x8xf32> to vector<8x8xf32>
    %60 = arith.addf %58, %59 : vector<8x8xf32>
    %61 = arith.mulf %60, %14 : vector<8x8xf32>
    %62 = arith.mulf %0, %2 : vector<8x1xf32>
    %63 = arith.mulf %5, %7 : vector<1x8xf32>
    %64 = vector.broadcast %62 : vector<8x1xf32> to vector<8x8xf32>
    %65 = vector.broadcast %63 : vector<1x8xf32> to vector<8x8xf32>
    %66 = arith.addf %64, %65 : vector<8x8xf32>
    %67 = arith.mulf %66, %14 : vector<8x8xf32>
    %68 = arith.mulf %0, %3 : vector<8x1xf32>
    %69 = arith.mulf %5, %8 : vector<1x8xf32>
    %70 = vector.broadcast %68 : vector<8x1xf32> to vector<8x8xf32>
    %71 = vector.broadcast %69 : vector<1x8xf32> to vector<8x8xf32>
    %72 = arith.addf %70, %71 : vector<8x8xf32>
    %73 = arith.mulf %72, %14 : vector<8x8xf32>
    %cst_21 = arith.constant 0.000000e+00 : f32
    %74 = vector.broadcast %cst_21 : f32 to vector<8x8xf32>
    %c0_22 = arith.constant 0 : index
    %c0_23 = arith.constant 0 : index
    %75 = memref.load %arg4[%c0_22, %c0_23] : memref<2x3xf32, #tpu.memory_space<smem>>
    %c0_24 = arith.constant 0 : index
    %c1_25 = arith.constant 1 : index
    %76 = memref.load %arg4[%c0_24, %c1_25] : memref<2x3xf32, #tpu.memory_space<smem>>
    %c0_26 = arith.constant 0 : index
    %c2_27 = arith.constant 2 : index
    %77 = memref.load %arg4[%c0_26, %c2_27] : memref<2x3xf32, #tpu.memory_space<smem>>
    %c0_28 = arith.constant 0 : index
    %78 = memref.load %arg5[%c0_28] : memref<2xf32, #tpu.memory_space<smem>>
    %79 = vector.broadcast %75 : f32 to vector<8x8xf32>
    %80 = arith.subf %61, %79 : vector<8x8xf32>
    %81 = arith.mulf %80, %80 : vector<8x8xf32>
    %82 = vector.broadcast %76 : f32 to vector<8x8xf32>
    %83 = arith.subf %67, %82 : vector<8x8xf32>
    %84 = arith.mulf %83, %83 : vector<8x8xf32>
    %85 = arith.addf %81, %84 : vector<8x8xf32>
    %86 = vector.broadcast %77 : f32 to vector<8x8xf32>
    %87 = arith.subf %73, %86 : vector<8x8xf32>
    %88 = arith.mulf %87, %87 : vector<8x8xf32>
    %89 = arith.addf %85, %88 : vector<8x8xf32>
    %cst_29 = arith.constant 0.000000e+00 : f32
    %90 = arith.subf %cst_29, %78 : f32
    %91 = arith.mulf %12, %89 : vector<8x8xf32>
    %cst_30 = arith.constant 9.99999993E-9 : f32
    %92 = vector.broadcast %cst_30 : f32 to vector<8x8xf32>
    %93 = arith.cmpf olt, %91, %92 : vector<8x8xf32>
    %cst_31 = arith.constant 1.000000e+00 : f32
    %94 = vector.broadcast %cst_31 : f32 to vector<8x8xf32>
    %95 = arith.select %93, %94, %91 : vector<8x8xi1>, vector<8x8xf32>
    %96 = math.sqrt %95 : vector<8x8xf32>
    %cst_32 = arith.constant 0.327591091 : f32
    %97 = vector.broadcast %cst_32 : f32 to vector<8x8xf32>
    %98 = arith.mulf %97, %96 : vector<8x8xf32>
    %cst_33 = arith.constant 1.000000e+00 : f32
    %99 = vector.broadcast %cst_33 : f32 to vector<8x8xf32>
    %100 = arith.addf %99, %98 : vector<8x8xf32>
    %101 = tpu.reciprocal %100 {approx = true} : vector<8x8xf32> -> vector<8x8xf32>
    %cst_34 = arith.constant 1.06140542 : f32
    %102 = vector.broadcast %cst_34 : f32 to vector<8x8xf32>
    %103 = arith.mulf %102, %101 : vector<8x8xf32>
    %cst_35 = arith.constant -1.45315206 : f32
    %104 = vector.broadcast %cst_35 : f32 to vector<8x8xf32>
    %105 = arith.addf %103, %104 : vector<8x8xf32>
    %106 = arith.mulf %105, %101 : vector<8x8xf32>
    %cst_36 = arith.constant 1.42141378 : f32
    %107 = vector.broadcast %cst_36 : f32 to vector<8x8xf32>
    %108 = arith.addf %106, %107 : vector<8x8xf32>
    %109 = arith.mulf %108, %101 : vector<8x8xf32>
    %cst_37 = arith.constant -0.284496725 : f32
    %110 = vector.broadcast %cst_37 : f32 to vector<8x8xf32>
    %111 = arith.addf %109, %110 : vector<8x8xf32>
    %112 = arith.mulf %111, %101 : vector<8x8xf32>
    %cst_38 = arith.constant 0.254829586 : f32
    %113 = vector.broadcast %cst_38 : f32 to vector<8x8xf32>
    %114 = arith.addf %112, %113 : vector<8x8xf32>
    %115 = arith.mulf %114, %101 : vector<8x8xf32>
    %cst_39 = arith.constant 0.000000e+00 : f32
    %116 = vector.broadcast %cst_39 : f32 to vector<8x8xf32>
    %117 = arith.subf %116, %96 : vector<8x8xf32>
    %118 = arith.mulf %117, %96 : vector<8x8xf32>
    %119 = math.exp %118 : vector<8x8xf32>
    %120 = arith.mulf %115, %119 : vector<8x8xf32>
    %cst_40 = arith.constant 1.000000e+00 : f32
    %121 = vector.broadcast %cst_40 : f32 to vector<8x8xf32>
    %122 = arith.subf %121, %120 : vector<8x8xf32>
    %cst_41 = arith.constant 0.886226952 : f32
    %123 = vector.broadcast %cst_41 : f32 to vector<8x8xf32>
    %124 = arith.mulf %122, %123 : vector<8x8xf32>
    %125 = math.rsqrt %95 : vector<8x8xf32>
    %126 = arith.mulf %124, %125 : vector<8x8xf32>
    %cst_42 = arith.constant 0.333333343 : f32
    %127 = vector.broadcast %cst_42 : f32 to vector<8x8xf32>
    %128 = arith.mulf %91, %127 : vector<8x8xf32>
    %cst_43 = arith.constant 1.000000e+00 : f32
    %129 = vector.broadcast %cst_43 : f32 to vector<8x8xf32>
    %130 = arith.subf %129, %128 : vector<8x8xf32>
    %131 = arith.select %93, %130, %126 : vector<8x8xi1>, vector<8x8xf32>
    %132 = vector.broadcast %90 : f32 to vector<8x8xf32>
    %133 = arith.mulf %132, %131 : vector<8x8xf32>
    %134 = arith.addf %74, %133 : vector<8x8xf32>
    %c1_44 = arith.constant 1 : index
    %c0_45 = arith.constant 0 : index
    %135 = memref.load %arg4[%c1_44, %c0_45] : memref<2x3xf32, #tpu.memory_space<smem>>
    %c1_46 = arith.constant 1 : index
    %c1_47 = arith.constant 1 : index
    %136 = memref.load %arg4[%c1_46, %c1_47] : memref<2x3xf32, #tpu.memory_space<smem>>
    %c1_48 = arith.constant 1 : index
    %c2_49 = arith.constant 2 : index
    %137 = memref.load %arg4[%c1_48, %c2_49] : memref<2x3xf32, #tpu.memory_space<smem>>
    %c1_50 = arith.constant 1 : index
    %138 = memref.load %arg5[%c1_50] : memref<2xf32, #tpu.memory_space<smem>>
    %139 = vector.broadcast %135 : f32 to vector<8x8xf32>
    %140 = arith.subf %61, %139 : vector<8x8xf32>
    %141 = arith.mulf %140, %140 : vector<8x8xf32>
    %142 = vector.broadcast %136 : f32 to vector<8x8xf32>
    %143 = arith.subf %67, %142 : vector<8x8xf32>
    %144 = arith.mulf %143, %143 : vector<8x8xf32>
    %145 = arith.addf %141, %144 : vector<8x8xf32>
    %146 = vector.broadcast %137 : f32 to vector<8x8xf32>
    %147 = arith.subf %73, %146 : vector<8x8xf32>
    %148 = arith.mulf %147, %147 : vector<8x8xf32>
    %149 = arith.addf %145, %148 : vector<8x8xf32>
    %cst_51 = arith.constant 0.000000e+00 : f32
    %150 = arith.subf %cst_51, %138 : f32
    %151 = arith.mulf %12, %149 : vector<8x8xf32>
    %cst_52 = arith.constant 9.99999993E-9 : f32
    %152 = vector.broadcast %cst_52 : f32 to vector<8x8xf32>
    %153 = arith.cmpf olt, %151, %152 : vector<8x8xf32>
    %cst_53 = arith.constant 1.000000e+00 : f32
    %154 = vector.broadcast %cst_53 : f32 to vector<8x8xf32>
    %155 = arith.select %153, %154, %151 : vector<8x8xi1>, vector<8x8xf32>
    %156 = math.sqrt %155 : vector<8x8xf32>
    %cst_54 = arith.constant 0.327591091 : f32
    %157 = vector.broadcast %cst_54 : f32 to vector<8x8xf32>
    %158 = arith.mulf %157, %156 : vector<8x8xf32>
    %cst_55 = arith.constant 1.000000e+00 : f32
    %159 = vector.broadcast %cst_55 : f32 to vector<8x8xf32>
    %160 = arith.addf %159, %158 : vector<8x8xf32>
    %161 = tpu.reciprocal %160 {approx = true} : vector<8x8xf32> -> vector<8x8xf32>
    %cst_56 = arith.constant 1.06140542 : f32
    %162 = vector.broadcast %cst_56 : f32 to vector<8x8xf32>
    %163 = arith.mulf %162, %161 : vector<8x8xf32>
    %cst_57 = arith.constant -1.45315206 : f32
    %164 = vector.broadcast %cst_57 : f32 to vector<8x8xf32>
    %165 = arith.addf %163, %164 : vector<8x8xf32>
    %166 = arith.mulf %165, %161 : vector<8x8xf32>
    %cst_58 = arith.constant 1.42141378 : f32
    %167 = vector.broadcast %cst_58 : f32 to vector<8x8xf32>
    %168 = arith.addf %166, %167 : vector<8x8xf32>
    %169 = arith.mulf %168, %161 : vector<8x8xf32>
    %cst_59 = arith.constant -0.284496725 : f32
    %170 = vector.broadcast %cst_59 : f32 to vector<8x8xf32>
    %171 = arith.addf %169, %170 : vector<8x8xf32>
    %172 = arith.mulf %171, %161 : vector<8x8xf32>
    %cst_60 = arith.constant 0.254829586 : f32
    %173 = vector.broadcast %cst_60 : f32 to vector<8x8xf32>
    %174 = arith.addf %172, %173 : vector<8x8xf32>
    %175 = arith.mulf %174, %161 : vector<8x8xf32>
    %cst_61 = arith.constant 0.000000e+00 : f32
    %176 = vector.broadcast %cst_61 : f32 to vector<8x8xf32>
    %177 = arith.subf %176, %156 : vector<8x8xf32>
    %178 = arith.mulf %177, %156 : vector<8x8xf32>
    %179 = math.exp %178 : vector<8x8xf32>
    %180 = arith.mulf %175, %179 : vector<8x8xf32>
    %cst_62 = arith.constant 1.000000e+00 : f32
    %181 = vector.broadcast %cst_62 : f32 to vector<8x8xf32>
    %182 = arith.subf %181, %180 : vector<8x8xf32>
    %cst_63 = arith.constant 0.886226952 : f32
    %183 = vector.broadcast %cst_63 : f32 to vector<8x8xf32>
    %184 = arith.mulf %182, %183 : vector<8x8xf32>
    %185 = math.rsqrt %155 : vector<8x8xf32>
    %186 = arith.mulf %184, %185 : vector<8x8xf32>
    %cst_64 = arith.constant 0.333333343 : f32
    %187 = vector.broadcast %cst_64 : f32 to vector<8x8xf32>
    %188 = arith.mulf %151, %187 : vector<8x8xf32>
    %cst_65 = arith.constant 1.000000e+00 : f32
    %189 = vector.broadcast %cst_65 : f32 to vector<8x8xf32>
    %190 = arith.subf %189, %188 : vector<8x8xf32>
    %191 = arith.select %153, %190, %186 : vector<8x8xi1>, vector<8x8xf32>
    %192 = vector.broadcast %150 : f32 to vector<8x8xf32>
    %193 = arith.mulf %192, %191 : vector<8x8xf32>
    %194 = arith.addf %134, %193 : vector<8x8xf32>
    %195 = arith.mulf %39, %36 : vector<8x8xf32>
    %cst_66 = arith.constant 6.28318548 : f32
    %196 = vector.broadcast %cst_66 : f32 to vector<8x8xf32>
    %197 = arith.mulf %196, %14 : vector<8x8xf32>
    %198 = arith.mulf %195, %197 : vector<8x8xf32>
    %199 = arith.mulf %198, %194 : vector<8x8xf32>
    %200 = arith.addf %55, %199 : vector<8x8xf32>
    %c0_67 = arith.constant 0 : index
    %c0_68 = arith.constant 0 : index
    %201 = vector.load %arg7[%c0_67, %c0_68] : memref<8x8xf32, #tpu.memory_space<vmem>>, vector<8x8xf32>
    tpu.vector_store %arg7[%c0_67, %c0_68], %200 {strides = array<i32>} : memref<8x8xf32, #tpu.memory_space<vmem>>, vector<8x8xf32>,
    %c0_69 = arith.constant 0 : index
    %c9 = arith.constant 9 : index
    %202 = vector.load %arg2[%c0_69, %c9] : memref<64x15xf32, #tpu.memory_space<vmem>>, vector<64x1xf32>
    %c0_70 = arith.constant 0 : index
    %c10 = arith.constant 10 : index
    %203 = vector.load %arg2[%c0_70, %c10] : memref<64x15xf32, #tpu.memory_space<vmem>>, vector<64x1xf32>
    %c0_71 = arith.constant 0 : index
    %c11 = arith.constant 11 : index
    %204 = vector.load %arg2[%c0_71, %c11] : memref<64x15xf32, #tpu.memory_space<vmem>>, vector<64x1xf32>
    %c0_72 = arith.constant 0 : index
    %c12 = arith.constant 12 : index
    %205 = vector.load %arg2[%c0_72, %c12] : memref<64x15xf32, #tpu.memory_space<vmem>>, vector<64x1xf32>
    %c0_73 = arith.constant 0 : index
    %c13 = arith.constant 13 : index
    %206 = vector.load %arg2[%c0_73, %c13] : memref<64x15xf32, #tpu.memory_space<vmem>>, vector<64x1xf32>
    %c0_74 = arith.constant 0 : index
    %c14 = arith.constant 14 : index
    %207 = vector.load %arg2[%c0_74, %c14] : memref<64x15xf32, #tpu.memory_space<vmem>>, vector<64x1xf32>
    %c9_75 = arith.constant 9 : index
    %c0_76 = arith.constant 0 : index
    %208 = vector.load %arg3[%c9_75, %c0_76] : memref<15x64xf32, #tpu.memory_space<vmem>>, vector<1x64xf32>
    %c10_77 = arith.constant 10 : index
    %c0_78 = arith.constant 0 : index
    %209 = vector.load %arg3[%c10_77, %c0_78] : memref<15x64xf32, #tpu.memory_space<vmem>>, vector<1x64xf32>
    %c11_79 = arith.constant 11 : index
    %c0_80 = arith.constant 0 : index
    %210 = vector.load %arg3[%c11_79, %c0_80] : memref<15x64xf32, #tpu.memory_space<vmem>>, vector<1x64xf32>
    %c12_81 = arith.constant 12 : index
    %c0_82 = arith.constant 0 : index
    %211 = vector.load %arg3[%c12_81, %c0_82] : memref<15x64xf32, #tpu.memory_space<vmem>>, vector<1x64xf32>
    %c13_83 = arith.constant 13 : index
    %c0_84 = arith.constant 0 : index
    %212 = vector.load %arg3[%c13_83, %c0_84] : memref<15x64xf32, #tpu.memory_space<vmem>>, vector<1x64xf32>
    %c14_85 = arith.constant 14 : index
    %c0_86 = arith.constant 0 : index
    %213 = vector.load %arg3[%c14_85, %c0_86] : memref<15x64xf32, #tpu.memory_space<vmem>>, vector<1x64xf32>
    %214 = vector.broadcast %202 : vector<64x1xf32> to vector<64x64xf32>
    %215 = vector.broadcast %208 : vector<1x64xf32> to vector<64x64xf32>
    %216 = arith.addf %214, %215 : vector<64x64xf32>
    %217 = tpu.reciprocal %216 {approx = true} : vector<64x64xf32> -> vector<64x64xf32>
    %218 = vector.broadcast %204 : vector<64x1xf32> to vector<64x64xf32>
    %219 = vector.broadcast %210 : vector<1x64xf32> to vector<64x64xf32>
    %220 = arith.subf %218, %219 : vector<64x64xf32>
    %221 = arith.mulf %220, %220 : vector<64x64xf32>
    %222 = vector.broadcast %205 : vector<64x1xf32> to vector<64x64xf32>
    %223 = vector.broadcast %211 : vector<1x64xf32> to vector<64x64xf32>
    %224 = arith.subf %222, %223 : vector<64x64xf32>
    %225 = arith.mulf %224, %224 : vector<64x64xf32>
    %226 = arith.addf %221, %225 : vector<64x64xf32>
    %227 = vector.broadcast %206 : vector<64x1xf32> to vector<64x64xf32>
    %228 = vector.broadcast %212 : vector<1x64xf32> to vector<64x64xf32>
    %229 = arith.subf %227, %228 : vector<64x64xf32>
    %230 = arith.mulf %229, %229 : vector<64x64xf32>
    %231 = arith.addf %226, %230 : vector<64x64xf32>
    %232 = vector.broadcast %202 : vector<64x1xf32> to vector<64x64xf32>
    %233 = vector.broadcast %208 : vector<1x64xf32> to vector<64x64xf32>
    %234 = arith.mulf %232, %233 : vector<64x64xf32>
    %235 = arith.mulf %234, %217 : vector<64x64xf32>
    %236 = arith.mulf %235, %231 : vector<64x64xf32>
    %cst_87 = arith.constant 9.99999993E-9 : f32
    %237 = vector.broadcast %cst_87 : f32 to vector<64x64xf32>
    %238 = arith.cmpf olt, %236, %237 : vector<64x64xf32>
    %cst_88 = arith.constant 1.000000e+00 : f32
    %239 = vector.broadcast %cst_88 : f32 to vector<64x64xf32>
    %240 = arith.select %238, %239, %236 : vector<64x64xi1>, vector<64x64xf32>
    %241 = math.sqrt %240 : vector<64x64xf32>
    %cst_89 = arith.constant 0.327591091 : f32
    %242 = vector.broadcast %cst_89 : f32 to vector<64x64xf32>
    %243 = arith.mulf %242, %241 : vector<64x64xf32>
    %cst_90 = arith.constant 1.000000e+00 : f32
    %244 = vector.broadcast %cst_90 : f32 to vector<64x64xf32>
    %245 = arith.addf %244, %243 : vector<64x64xf32>
    %246 = tpu.reciprocal %245 {approx = true} : vector<64x64xf32> -> vector<64x64xf32>
    %cst_91 = arith.constant 1.06140542 : f32
    %247 = vector.broadcast %cst_91 : f32 to vector<64x64xf32>
    %248 = arith.mulf %247, %246 : vector<64x64xf32>
    %cst_92 = arith.constant -1.45315206 : f32
    %249 = vector.broadcast %cst_92 : f32 to vector<64x64xf32>
    %250 = arith.addf %248, %249 : vector<64x64xf32>
    %251 = arith.mulf %250, %246 : vector<64x64xf32>
    %cst_93 = arith.constant 1.42141378 : f32
    %252 = vector.broadcast %cst_93 : f32 to vector<64x64xf32>
    %253 = arith.addf %251, %252 : vector<64x64xf32>
    %254 = arith.mulf %253, %246 : vector<64x64xf32>
    %cst_94 = arith.constant -0.284496725 : f32
    %255 = vector.broadcast %cst_94 : f32 to vector<64x64xf32>
    %256 = arith.addf %254, %255 : vector<64x64xf32>
    %257 = arith.mulf %256, %246 : vector<64x64xf32>
    %cst_95 = arith.constant 0.254829586 : f32
    %258 = vector.broadcast %cst_95 : f32 to vector<64x64xf32>
    %259 = arith.addf %257, %258 : vector<64x64xf32>
    %260 = arith.mulf %259, %246 : vector<64x64xf32>
    %cst_96 = arith.constant 0.000000e+00 : f32
    %261 = vector.broadcast %cst_96 : f32 to vector<64x64xf32>
    %262 = arith.subf %261, %241 : vector<64x64xf32>
    %263 = arith.mulf %262, %241 : vector<64x64xf32>
    %264 = math.exp %263 : vector<64x64xf32>
    %265 = arith.mulf %260, %264 : vector<64x64xf32>
    %cst_97 = arith.constant 1.000000e+00 : f32
    %266 = vector.broadcast %cst_97 : f32 to vector<64x64xf32>
    %267 = arith.subf %266, %265 : vector<64x64xf32>
    %cst_98 = arith.constant 0.886226952 : f32
    %268 = vector.broadcast %cst_98 : f32 to vector<64x64xf32>
    %269 = arith.mulf %267, %268 : vector<64x64xf32>
    %270 = math.rsqrt %240 : vector<64x64xf32>
    %271 = arith.mulf %269, %270 : vector<64x64xf32>
    %cst_99 = arith.constant 0.333333343 : f32
    %272 = vector.broadcast %cst_99 : f32 to vector<64x64xf32>
    %273 = arith.mulf %236, %272 : vector<64x64xf32>
    %cst_100 = arith.constant 1.000000e+00 : f32
    %274 = vector.broadcast %cst_100 : f32 to vector<64x64xf32>
    %275 = arith.subf %274, %273 : vector<64x64xf32>
    %276 = arith.select %238, %275, %271 : vector<64x64xi1>, vector<64x64xf32>
    %cst_101 = arith.constant 34.9868355 : f32
    %277 = vector.broadcast %cst_101 : f32 to vector<64x1xf32>
    %278 = arith.mulf %277, %203 : vector<64x1xf32>
    %279 = vector.broadcast %278 : vector<64x1xf32> to vector<64x64xf32>
    %280 = vector.broadcast %209 : vector<1x64xf32> to vector<64x64xf32>
    %281 = arith.mulf %279, %280 : vector<64x64xf32>
    %282 = math.rsqrt %216 : vector<64x64xf32>
    %283 = arith.mulf %281, %282 : vector<64x64xf32>
    %284 = vector.broadcast %207 : vector<64x1xf32> to vector<64x64xf32>
    %285 = vector.broadcast %213 : vector<1x64xf32> to vector<64x64xf32>
    %286 = arith.mulf %284, %285 : vector<64x64xf32>
    %287 = arith.mulf %286, %283 : vector<64x64xf32>
    %288 = arith.mulf %287, %276 : vector<64x64xf32>
    %c0_102 = arith.constant 0 : index
    %c0_103 = arith.constant 0 : index
    %289 = vector.load %arg2[%c0_102, %c0_103] : memref<64x15xf32, #tpu.memory_space<vmem>>, vector<64x1xf32>
    %c0_104 = arith.constant 0 : index
    %c1_105 = arith.constant 1 : index
    %290 = vector.load %arg2[%c0_104, %c1_105] : memref<64x15xf32, #tpu.memory_space<vmem>>, vector<64x1xf32>
    %c0_106 = arith.constant 0 : index
    %c2_107 = arith.constant 2 : index
    %291 = vector.load %arg2[%c0_106, %c2_107] : memref<64x15xf32, #tpu.memory_space<vmem>>, vector<64x1xf32>
    %c0_108 = arith.constant 0 : index
    %c3_109 = arith.constant 3 : index
    %292 = vector.load %arg2[%c0_108, %c3_109] : memref<64x15xf32, #tpu.memory_space<vmem>>, vector<64x1xf32>
    %c0_110 = arith.constant 0 : index
    %c4_111 = arith.constant 4 : index
    %293 = vector.load %arg2[%c0_110, %c4_111] : memref<64x15xf32, #tpu.memory_space<vmem>>, vector<64x1xf32>
    %c0_112 = arith.constant 0 : index
    %c5 = arith.constant 5 : index
    %294 = vector.load %arg2[%c0_112, %c5] : memref<64x15xf32, #tpu.memory_space<vmem>>, vector<64x1xf32>
    %c0_113 = arith.constant 0 : index
    %c6 = arith.constant 6 : index
    %295 = vector.load %arg2[%c0_113, %c6] : memref<64x15xf32, #tpu.memory_space<vmem>>, vector<64x1xf32>
    %c0_114 = arith.constant 0 : index
    %c7 = arith.constant 7 : index
    %296 = vector.load %arg2[%c0_114, %c7] : memref<64x15xf32, #tpu.memory_space<vmem>>, vector<64x1xf32>
    %c0_115 = arith.constant 0 : index
    %c8 = arith.constant 8 : index
    %297 = vector.load %arg2[%c0_115, %c8] : memref<64x15xf32, #tpu.memory_space<vmem>>, vector<64x1xf32>
    %c0_116 = arith.constant 0 : index
    %c0_117 = arith.constant 0 : index
    %298 = vector.load %arg3[%c0_116, %c0_117] : memref<15x64xf32, #tpu.memory_space<vmem>>, vector<1x64xf32>
    %c1_118 = arith.constant 1 : index
    %c0_119 = arith.constant 0 : index
    %299 = vector.load %arg3[%c1_118, %c0_119] : memref<15x64xf32, #tpu.memory_space<vmem>>, vector<1x64xf32>
    %c2_120 = arith.constant 2 : index
    %c0_121 = arith.constant 0 : index
    %300 = vector.load %arg3[%c2_120, %c0_121] : memref<15x64xf32, #tpu.memory_space<vmem>>, vector<1x64xf32>
    %c3_122 = arith.constant 3 : index
    %c0_123 = arith.constant 0 : index
    %301 = vector.load %arg3[%c3_122, %c0_123] : memref<15x64xf32, #tpu.memory_space<vmem>>, vector<1x64xf32>
    %c4_124 = arith.constant 4 : index
    %c0_125 = arith.constant 0 : index
    %302 = vector.load %arg3[%c4_124, %c0_125] : memref<15x64xf32, #tpu.memory_space<vmem>>, vector<1x64xf32>
    %c5_126 = arith.constant 5 : index
    %c0_127 = arith.constant 0 : index
    %303 = vector.load %arg3[%c5_126, %c0_127] : memref<15x64xf32, #tpu.memory_space<vmem>>, vector<1x64xf32>
    %c6_128 = arith.constant 6 : index
    %c0_129 = arith.constant 0 : index
    %304 = vector.load %arg3[%c6_128, %c0_129] : memref<15x64xf32, #tpu.memory_space<vmem>>, vector<1x64xf32>
    %c7_130 = arith.constant 7 : index
    %c0_131 = arith.constant 0 : index
    %305 = vector.load %arg3[%c7_130, %c0_131] : memref<15x64xf32, #tpu.memory_space<vmem>>, vector<1x64xf32>
    %c8_132 = arith.constant 8 : index
    %c0_133 = arith.constant 0 : index
    %306 = vector.load %arg3[%c8_132, %c0_133] : memref<15x64xf32, #tpu.memory_space<vmem>>, vector<1x64xf32>
    %307 = vector.broadcast %289 : vector<64x1xf32> to vector<64x64xf32>
    %308 = vector.broadcast %298 : vector<1x64xf32> to vector<64x64xf32>
    %309 = arith.addf %307, %308 : vector<64x64xf32>
    %310 = tpu.reciprocal %309 {approx = true} : vector<64x64xf32> -> vector<64x64xf32>
    %311 = vector.broadcast %290 : vector<64x1xf32> to vector<64x64xf32>
    %312 = vector.broadcast %299 : vector<1x64xf32> to vector<64x64xf32>
    %313 = arith.subf %311, %312 : vector<64x64xf32>
    %314 = arith.mulf %313, %313 : vector<64x64xf32>
    %315 = vector.broadcast %291 : vector<64x1xf32> to vector<64x64xf32>
    %316 = vector.broadcast %300 : vector<1x64xf32> to vector<64x64xf32>
    %317 = arith.subf %315, %316 : vector<64x64xf32>
    %318 = arith.mulf %317, %317 : vector<64x64xf32>
    %319 = arith.addf %314, %318 : vector<64x64xf32>
    %320 = vector.broadcast %292 : vector<64x1xf32> to vector<64x64xf32>
    %321 = vector.broadcast %301 : vector<1x64xf32> to vector<64x64xf32>
    %322 = arith.subf %320, %321 : vector<64x64xf32>
    %323 = arith.mulf %322, %322 : vector<64x64xf32>
    %324 = arith.addf %319, %323 : vector<64x64xf32>
    %325 = vector.broadcast %289 : vector<64x1xf32> to vector<64x64xf32>
    %326 = vector.broadcast %298 : vector<1x64xf32> to vector<64x64xf32>
    %327 = arith.mulf %325, %326 : vector<64x64xf32>
    %328 = arith.mulf %327, %310 : vector<64x64xf32>
    %cst_134 = arith.constant 0.000000e+00 : f32
    %329 = vector.broadcast %cst_134 : f32 to vector<64x64xf32>
    %330 = arith.subf %329, %328 : vector<64x64xf32>
    %331 = arith.mulf %330, %324 : vector<64x64xf32>
    %332 = math.exp %331 : vector<64x64xf32>
    %333 = arith.mulf %289, %290 : vector<64x1xf32>
    %334 = arith.mulf %298, %299 : vector<1x64xf32>
    %335 = vector.broadcast %333 : vector<64x1xf32> to vector<64x64xf32>
    %336 = vector.broadcast %334 : vector<1x64xf32> to vector<64x64xf32>
    %337 = arith.addf %335, %336 : vector<64x64xf32>
    %338 = arith.mulf %337, %310 : vector<64x64xf32>
    %339 = arith.mulf %289, %291 : vector<64x1xf32>
    %340 = arith.mulf %298, %300 : vector<1x64xf32>
    %341 = vector.broadcast %339 : vector<64x1xf32> to vector<64x64xf32>
    %342 = vector.broadcast %340 : vector<1x64xf32> to vector<64x64xf32>
    %343 = arith.addf %341, %342 : vector<64x64xf32>
    %344 = arith.mulf %343, %310 : vector<64x64xf32>
    %345 = arith.mulf %289, %292 : vector<64x1xf32>
    %346 = arith.mulf %298, %301 : vector<1x64xf32>
    %347 = vector.broadcast %345 : vector<64x1xf32> to vector<64x64xf32>
    %348 = vector.broadcast %346 : vector<1x64xf32> to vector<64x64xf32>
    %349 = arith.addf %347, %348 : vector<64x64xf32>
    %350 = arith.mulf %349, %310 : vector<64x64xf32>
    %351 = vector.broadcast %293 : vector<64x1xf32> to vector<64x64xf32>
    %352 = vector.broadcast %302 : vector<1x64xf32> to vector<64x64xf32>
    %353 = arith.addf %351, %352 : vector<64x64xf32>
    %354 = tpu.reciprocal %353 {approx = true} : vector<64x64xf32> -> vector<64x64xf32>
    %355 = vector.broadcast %294 : vector<64x1xf32> to vector<64x64xf32>
    %356 = vector.broadcast %303 : vector<1x64xf32> to vector<64x64xf32>
    %357 = arith.subf %355, %356 : vector<64x64xf32>
    %358 = arith.mulf %357, %357 : vector<64x64xf32>
    %359 = vector.broadcast %295 : vector<64x1xf32> to vector<64x64xf32>
    %360 = vector.broadcast %304 : vector<1x64xf32> to vector<64x64xf32>
    %361 = arith.subf %359, %360 : vector<64x64xf32>
    %362 = arith.mulf %361, %361 : vector<64x64xf32>
    %363 = arith.addf %358, %362 : vector<64x64xf32>
    %364 = vector.broadcast %296 : vector<64x1xf32> to vector<64x64xf32>
    %365 = vector.broadcast %305 : vector<1x64xf32> to vector<64x64xf32>
    %366 = arith.subf %364, %365 : vector<64x64xf32>
    %367 = arith.mulf %366, %366 : vector<64x64xf32>
    %368 = arith.addf %363, %367 : vector<64x64xf32>
    %369 = vector.broadcast %293 : vector<64x1xf32> to vector<64x64xf32>
    %370 = vector.broadcast %302 : vector<1x64xf32> to vector<64x64xf32>
    %371 = arith.mulf %369, %370 : vector<64x64xf32>
    %372 = arith.mulf %371, %354 : vector<64x64xf32>
    %cst_135 = arith.constant 0.000000e+00 : f32
    %373 = vector.broadcast %cst_135 : f32 to vector<64x64xf32>
    %374 = arith.subf %373, %372 : vector<64x64xf32>
    %375 = arith.mulf %374, %368 : vector<64x64xf32>
    %376 = math.exp %375 : vector<64x64xf32>
    %377 = arith.mulf %293, %294 : vector<64x1xf32>
    %378 = arith.mulf %302, %303 : vector<1x64xf32>
    %379 = vector.broadcast %377 : vector<64x1xf32> to vector<64x64xf32>
    %380 = vector.broadcast %378 : vector<1x64xf32> to vector<64x64xf32>
    %381 = arith.addf %379, %380 : vector<64x64xf32>
    %382 = arith.mulf %381, %354 : vector<64x64xf32>
    %383 = arith.mulf %293, %295 : vector<64x1xf32>
    %384 = arith.mulf %302, %304 : vector<1x64xf32>
    %385 = vector.broadcast %383 : vector<64x1xf32> to vector<64x64xf32>
    %386 = vector.broadcast %384 : vector<1x64xf32> to vector<64x64xf32>
    %387 = arith.addf %385, %386 : vector<64x64xf32>
    %388 = arith.mulf %387, %354 : vector<64x64xf32>
    %389 = arith.mulf %293, %296 : vector<64x1xf32>
    %390 = arith.mulf %302, %305 : vector<1x64xf32>
    %391 = vector.broadcast %389 : vector<64x1xf32> to vector<64x64xf32>
    %392 = vector.broadcast %390 : vector<1x64xf32> to vector<64x64xf32>
    %393 = arith.addf %391, %392 : vector<64x64xf32>
    %394 = arith.mulf %393, %354 : vector<64x64xf32>
    %395 = arith.addf %309, %353 : vector<64x64xf32>
    %396 = arith.subf %338, %382 : vector<64x64xf32>
    %397 = arith.mulf %396, %396 : vector<64x64xf32>
    %398 = arith.subf %344, %388 : vector<64x64xf32>
    %399 = arith.mulf %398, %398 : vector<64x64xf32>
    %400 = arith.addf %397, %399 : vector<64x64xf32>
    %401 = arith.subf %350, %394 : vector<64x64xf32>
    %402 = arith.mulf %401, %401 : vector<64x64xf32>
    %403 = arith.addf %400, %402 : vector<64x64xf32>
    %404 = arith.mulf %309, %353 : vector<64x64xf32>
    %405 = tpu.reciprocal %395 {approx = true} : vector<64x64xf32> -> vector<64x64xf32>
    %406 = arith.mulf %404, %405 : vector<64x64xf32>
    %407 = arith.mulf %406, %403 : vector<64x64xf32>
    %cst_136 = arith.constant 9.99999993E-9 : f32
    %408 = vector.broadcast %cst_136 : f32 to vector<64x64xf32>
    %409 = arith.cmpf olt, %407, %408 : vector<64x64xf32>
    %cst_137 = arith.constant 1.000000e+00 : f32
    %410 = vector.broadcast %cst_137 : f32 to vector<64x64xf32>
    %411 = arith.select %409, %410, %407 : vector<64x64xi1>, vector<64x64xf32>
    %412 = math.sqrt %411 : vector<64x64xf32>
    %cst_138 = arith.constant 0.327591091 : f32
    %413 = vector.broadcast %cst_138 : f32 to vector<64x64xf32>
    %414 = arith.mulf %413, %412 : vector<64x64xf32>
    %cst_139 = arith.constant 1.000000e+00 : f32
    %415 = vector.broadcast %cst_139 : f32 to vector<64x64xf32>
    %416 = arith.addf %415, %414 : vector<64x64xf32>
    %417 = tpu.reciprocal %416 {approx = true} : vector<64x64xf32> -> vector<64x64xf32>
    %cst_140 = arith.constant 1.06140542 : f32
    %418 = vector.broadcast %cst_140 : f32 to vector<64x64xf32>
    %419 = arith.mulf %418, %417 : vector<64x64xf32>
    %cst_141 = arith.constant -1.45315206 : f32
    %420 = vector.broadcast %cst_141 : f32 to vector<64x64xf32>
    %421 = arith.addf %419, %420 : vector<64x64xf32>
    %422 = arith.mulf %421, %417 : vector<64x64xf32>
    %cst_142 = arith.constant 1.42141378 : f32
    %423 = vector.broadcast %cst_142 : f32 to vector<64x64xf32>
    %424 = arith.addf %422, %423 : vector<64x64xf32>
    %425 = arith.mulf %424, %417 : vector<64x64xf32>
    %cst_143 = arith.constant -0.284496725 : f32
    %426 = vector.broadcast %cst_143 : f32 to vector<64x64xf32>
    %427 = arith.addf %425, %426 : vector<64x64xf32>
    %428 = arith.mulf %427, %417 : vector<64x64xf32>
    %cst_144 = arith.constant 0.254829586 : f32
    %429 = vector.broadcast %cst_144 : f32 to vector<64x64xf32>
    %430 = arith.addf %428, %429 : vector<64x64xf32>
    %431 = arith.mulf %430, %417 : vector<64x64xf32>
    %cst_145 = arith.constant 0.000000e+00 : f32
    %432 = vector.broadcast %cst_145 : f32 to vector<64x64xf32>
    %433 = arith.subf %432, %412 : vector<64x64xf32>
    %434 = arith.mulf %433, %412 : vector<64x64xf32>
    %435 = math.exp %434 : vector<64x64xf32>
    %436 = arith.mulf %431, %435 : vector<64x64xf32>
    %cst_146 = arith.constant 1.000000e+00 : f32
    %437 = vector.broadcast %cst_146 : f32 to vector<64x64xf32>
    %438 = arith.subf %437, %436 : vector<64x64xf32>
    %cst_147 = arith.constant 0.886226952 : f32
    %439 = vector.broadcast %cst_147 : f32 to vector<64x64xf32>
    %440 = arith.mulf %438, %439 : vector<64x64xf32>
    %441 = math.rsqrt %411 : vector<64x64xf32>
    %442 = arith.mulf %440, %441 : vector<64x64xf32>
    %cst_148 = arith.constant 0.333333343 : f32
    %443 = vector.broadcast %cst_148 : f32 to vector<64x64xf32>
    %444 = arith.mulf %407, %443 : vector<64x64xf32>
    %cst_149 = arith.constant 1.000000e+00 : f32
    %445 = vector.broadcast %cst_149 : f32 to vector<64x64xf32>
    %446 = arith.subf %445, %444 : vector<64x64xf32>
    %447 = arith.select %409, %446, %442 : vector<64x64xi1>, vector<64x64xf32>
    %cst_150 = arith.constant 34.9868355 : f32
    %448 = vector.broadcast %cst_150 : f32 to vector<64x64xf32>
    %449 = arith.mulf %448, %310 : vector<64x64xf32>
    %450 = arith.mulf %449, %354 : vector<64x64xf32>
    %451 = math.rsqrt %395 : vector<64x64xf32>
    %452 = arith.mulf %450, %451 : vector<64x64xf32>
    %453 = vector.broadcast %297 : vector<64x1xf32> to vector<64x64xf32>
    %454 = vector.broadcast %306 : vector<1x64xf32> to vector<64x64xf32>
    %455 = arith.mulf %453, %454 : vector<64x64xf32>
    %456 = arith.mulf %332, %376 : vector<64x64xf32>
    %457 = arith.mulf %455, %456 : vector<64x64xf32>
    %458 = arith.mulf %457, %452 : vector<64x64xf32>
    %459 = arith.mulf %458, %447 : vector<64x64xf32>
    %cst_151 = arith.constant 2.000000e+00 : f32
    %460 = vector.broadcast %cst_151 : f32 to vector<64x64xf32>
    %461 = arith.mulf %460, %288 : vector<64x64xf32>
    %462 = arith.subf %461, %459 : vector<64x64xf32>
    %c0_152 = arith.constant 0 : index
    %c0_153 = arith.constant 0 : index
    %463 = vector.load %arg8[%c0_152, %c0_153] : memref<64x64xf32, #tpu.memory_space<vmem>>, vector<64x64xf32>
    tpu.vector_store %arg8[%c0_152, %c0_153], %462 {strides = array<i32>} : memref<64x64xf32, #tpu.memory_space<vmem>>, vector<64x64xf32>,
    return
  }
}

</mosaic_0001>

<bundles_post_ra>
// kernel: custom-call.4
= control target key start
LH: loop header
LB: loop body
LE: loop exit
PB: predicated region body
PF: predicated region fallthrough
CT: control target
= control target key end

     0   :  { %v292_v3 = vlaneseq  ;;  %v1743_v5 = vmov 0.0   ;;  %s281_s17 = smov [#allocation22]  ;;  %s284_s18 = smov [#allocation23]  ;;  %s2026_s0 = inlined_call_operand.vmem [shape: f32[4,4], index: 0, kind: input, shape index: {}]   ;;  %s2027_s1 = inlined_call_operand.vmem [shape: f32[4,4], index: 1, kind: input, shape index: {}]   ;;  %s2028_s2 = inlined_call_operand.vmem [shape: f32[4,4], index: 2, kind: input, shape index: {}]   ;;  %s2029_s3 = inlined_call_operand.vmem [shape: f32[4,4], index: 3, kind: input, shape index: {}]   ;;  %s2030_s4 = inlined_call_operand.vmem [shape: f32[4], index: 4, kind: output, shape index: {0}]   ;;  %s2031_s5 = inlined_call_operand.vmem [shape: f32[4], index: 5, kind: output, shape index: {1}]   ;;  %s2032_s6 = inlined_call_operand.vmem [shape: f32[4,4], index: 6, kind: output, shape index: {2}]   ;;  %s2033_s7 = inlined_call_operand.vmem [shape: f32[4,4], index: 7, kind: output, shape index: {3}]   ;;  %s2034_s8 = inlined_call_operand.vmem [shape: f32[4,4], index: 8, kind: output, shape index: {4}]   ;;  %s2035_s9 = inlined_call_operand.vmem [shape: f32[4,4], index: 9, kind: output, shape index: {5}]  }
   0x1   :  { %v71_v0 = vld [vmem:[%s2026_s0] sm:$0xf]  ;;  %287 = vst [vmem:[#allocation12] sm:$0xff] %v1743_v5  ;;  %288 = vst [vmem:[#allocation14] sm:$0xff] %v1743_v5  ;;  %s291_s0 = smov [#allocation12]  ;;  %s1441_s19 = smov [#allocation20] }
   0x2   :  { %v133_v1 = vld [vmem:[%s2027_s1] sm:$0xf]  ;;  %72 = vst [vmem:[#allocation1] sm:$0xf] %v71_v0  ;;  %289 = vst [vmem:[#allocation16] sm:$0xff] %v1743_v5  ;;  %v1808_v6 = vand.u32 127, %v292_v3 }
   0x3   :  { %v195_v2 = vld [vmem:[%s2028_s2] sm:$0xf]  ;;  %134 = vst [vmem:[#allocation3] sm:$0xf] %v133_v1  ;;  %290 = vst [vmem:[#allocation18] sm:$0xff] %v1743_v5  ;;  %v1810_v7 = vshrl.u32 %v292_v3, 7 }
   0x4   :  { %196 = vst [vmem:[#allocation5] sm:$0xf] %v195_v2  ;;  %v257_v4 = vld [vmem:[%s2029_s3] sm:$0xf]  ;;  %v294_v6 = vmov %v1808_v6  ;;  %s304_s1 = smov [#allocation18]  ;;  %s275_s2 = smov [#allocation20] }
   0x5   :  { %258 = vst [vmem:[#allocation7] sm:$0xf] %v257_v4  ;;  %v297_v7 = vmov %v1810_v7  ;;  %v307_v6 = vmov %v1808_v6  ;;  %s278_s3 = smov [#allocation21]  ;;  %vm1445_vm2 = vcmp.lt.s32.totalorder %v1808_v6, 4  ;;  %s1458_s20 = smov [#allocation21] }
   0x6   :  { %v310_v7 = vmov %v1810_v7  ;;  %vm301_vm0 = vcmp.eq.s32.totalorder %v297_v7, %v294_v6  ;;  %s1475_s21 = smov [#allocation22]  ;;  %s1492_s22 = smov [#allocation23] }
   0x7   :  { %vm314_vm1 = vcmp.eq.s32.totalorder %v310_v7, %v307_v6  ;;  %v1437_v6 = vmov %v1808_v6  ;;  %v1440_v7 = vmov %v1810_v7 }
   0x8   :  { %v298_v12 = vld [vmem:[%s291_s0] sm:$0xf]  ;;  %vm1450_vm3 = vcmp.eq.s32.totalorder %v1440_v7, %v1437_v6  ;;  %v1488_v6 = vmov %v1808_v6  ;;  %v1457_v7 = vmov %v1810_v7 }
   0x9   :  { %v261_v8 = vld [vmem:[#allocation1] sm:$0xf]  ;;  %v302_v14 = vsel %vm301_vm0, 1.0, %v298_v12  ;;  %v1454_v6 = vmov %v1808_v6  ;;  %v1491_v7 = vmov %v1810_v7 }
   0xa   :  { %v265_v9 = vld [vmem:[#allocation3] sm:$0xf]  ;;  %262 = vst [vmem:[#allocation0] sm:$0xf] %v261_v8  ;;  %v311_v13 = vld [vmem:[%s304_s1] sm:$0xf]  ;;  %v1471_v6 = vmov %v1808_v6  ;;  %v1474_v7 = vmov %v1810_v7  ;;  %vm1501_vm4 = vcmp.eq.s32.totalorder %v1491_v7, %v1488_v6 }
   0xb   :  { %v269_v10 = vld [vmem:[#allocation5] sm:$0xf]  ;;  %266 = vst [vmem:[#allocation2] sm:$0xf] %v265_v9  ;;  %v315_v15 = vsel %vm314_vm1, 1.0, %v311_v13  ;;  %303 = vst [vmem:[%s291_s0] sm:$0xf] %v302_v14 }
   0xc   :  { %270 = vst [vmem:[#allocation4] sm:$0xf] %v269_v10  ;;  %v273_v11 = vld [vmem:[#allocation7] sm:$0xf]  ;;  %316 = vst [vmem:[%s304_s1] sm:$0xf] %v315_v15 }
   0xd   :  { %274 = vst [vmem:[#allocation6] sm:$0xf] %v273_v11 }
  0x11   :  { %v276_v16 = vld [vmem:[#allocation0] sm:$0xff] }
  0x12   :  { %v279_v17 = vld [vmem:[#allocation2] sm:$0xff]  ;;  %277 = vst [vmem:[%s275_s2] sm:$0xff] %v276_v16 }
  0x13   :  { %v282_v18 = vld [vmem:[#allocation4] sm:$0xff]  ;;  %280 = vst [vmem:[%s278_s3] sm:$0xff] %v279_v17 }
  0x14   :  { %283 = vst [vmem:[%s281_s17] sm:$0xff] %v282_v18  ;;  %v285_v19 = vld [vmem:[#allocation6] sm:$0xff] }
  0x15   :  { %286 = vst [vmem:[%s284_s18] sm:$0xff] %v285_v19 }
  0x19   :  { %v1447_v20 = vld [vmem:[%s1441_s19] sm:$0xf] }
  0x1a   :  { %v1464_v21 = vld [vmem:[%s1458_s20] sm:$0xf]  ;;  %v1448_v22 = vsel %vm1445_vm2, %v1447_v20, 0.0 }
  0x1b   :  { %v1465_v23 = vsel %vm1445_vm2, %v1464_v21, 0.0  ;;  %v1481_v24 = vld [vmem:[%s1475_s21] sm:$0xf]  ;;  %v1449_v26 = vmul.f32 %v1448_v22, %v1448_v22 }
  0x1c   :  { %v1498_v25 = vld [vmem:[%s1492_s22] sm:$0xf]  ;;  %v1466_v27 = vmul.f32 %v1465_v23, %v1465_v23  ;;  %v1482_v28 = vsel %vm1445_vm2, %v1481_v24, 0.0 }
  0x1d   :  { %v1499_v29 = vsel %vm1445_vm2, %v1498_v25, 0.0  ;;  %v1483_v30 = vmul.f32 %v1482_v28, %v1482_v28  ;;  %v1451_v33 = vsel %vm1450_vm3, 0.0, %v1449_v26 }
  0x1e   :  { %v1468_v31 = vadd.f32 %v1466_v27, %v1449_v26  ;;  %v1500_v32 = vmul.f32 %v1499_v29, %v1499_v29  ;;  %v1467_v34 = vadd.f32 %v1466_v27, %v1451_v33 }
  0x20   :  { %v1485_v35 = vadd.f32 %v1483_v30, %v1468_v31  ;;  %v1484_v36 = vadd.f32 %v1483_v30, %v1467_v34  ;;  %v1502_v37 = vsel %vm1501_vm4, 0.0, %v1500_v32 }
  0x22   :  { %v1504_v38 = vadd.f32 %v1500_v32, %v1485_v35  ;;  %v1503_v39 = vadd.f32 %v1502_v37, %v1484_v36 }
  0x24   :  { %1505 = vadd.xlane.f32.xlu0 %v1504_v38 }
  0x28   :  { %1513 = vadd.xlane.f32.xlu0 %v1503_v39 }
  0xb1   :  { %v1506_v40 = vpop.xlane.xlu0 %1505 }
  0xb2   :  { %v1507_v41 = vrot.slane %v1506_v40, 4 }
  0xb4   :  { %v1508_v42 = vadd.f32 %v1507_v41, %v1506_v40 }
  0xb5   :  { %v1514_v43 = vpop.xlane.xlu0 %1513 }
  0xb6   :  { %v1509_v44 = vrot.slane %v1508_v42, 2  ;;  %v1515_v45 = vrot.slane %v1514_v43, 4 }
  0xb8   :  { %v1516_v46 = vadd.f32 %v1515_v45, %v1514_v43  ;;  %v1510_v47 = vadd.f32 %v1509_v44, %v1508_v42 }
  0xba   :  { %v1517_v48 = vrot.slane %v1516_v46, 2  ;;  %v1511_v50 = vrot.slane %v1510_v47, 1 }
  0xbc   :  { %v1518_v49 = vadd.f32 %v1517_v48, %v1516_v46  ;;  %v1512_v53 = vadd.f32 %v1511_v50, %v1510_v47 }
  0xbe   :  { %v1519_v51 = vrot.slane %v1518_v49, 1 }
  0xc0   :  { %v1520_v52 = vadd.f32 %v1519_v51, %v1518_v49 }
  0xc2   :  { %1692 = vpush %v1520_v52 }
  0xc3   :  { %1694 = vpush %v1512_v53 }
  0xf3   :  { %s1693_s23 = spop %1692 }
  0xf4   :  { %s1695_s24 = spop %1694 }
  0xf5   :  { %s1523_s25 = smul.f32 1e-10, %s1695_s24 }
  0xf7   :  { %p1524_p0 = scmp.le.f32.partialorder %s1693_s23, %s1523_s25 }
  0xf8   :  { %s1834_s26 = smov (!%p1524_p0), 0  }
  0xf9   :  { %1527 = sbr.rel (%p1524_p0) target bundleno = 931 (0x3a3), region = 440 }
 0x100 LB: > { %s1839_s27 = smov 0   ;;  %s1737_s26 = sphi %s1834_s26, %s2036_s26  }
 0x101 LB: >> { %s421_s28 = smov [#allocation20]  ;;  %v425_v6 = vmov %v1808_v6  ;;  %v428_v7 = vmov %v1810_v7  ;;  %s441_s29 = smov [#allocation21]  ;;  %vm744_vm14 = vcmp.eq.s32.totalorder %v1810_v7, 0  ;;  %vm756_vm15 = vcmp.eq.s32.totalorder %v1810_v7, 3  ;;  %s1741_s27 = sphi %s1839_s27, %s420_s27  }
 0x102   : >> { %v445_v6 = vmov %v1808_v6  ;;  %v448_v7 = vmov %v1810_v7  ;;  %v429_v54 = vld [vmem:[%s421_s28] sm:$0xf]  ;;  %vm432_vm5 = vcmp.eq.s32.totalorder %v428_v7, %v425_v6  ;;  %s461_s30 = smov [#allocation23]  ;;  %s422_s10 = smov [#allocation24] }
 0x103   : >> { %vm452_vm6 = vcmp.eq.s32.totalorder %v448_v7, %v445_v6  ;;  %v465_v6 = vmov %v1808_v6  ;;  %v468_v7 = vmov %v1810_v7  ;;  %v433_v55 = vsel %vm432_vm5, %v429_v54, 0.0  ;;  %v449_v56 = vld [vmem:[%s441_s29] sm:$0xf]  ;;  %s442_s11 = smov [#allocation25]  ;;  %s462_s12 = smov [#allocation26] }
 0x104   : >> { %vm472_vm7 = vcmp.eq.s32.totalorder %v468_v7, %v465_v6  ;;  %v434_v57 = vrot.slane %v433_v55, 4  ;;  %v453_v58 = vsel %vm452_vm6, %v449_v56, 0.0  ;;  %v469_v59 = vld [vmem:[%s461_s30] sm:$0xf]  ;;  %s485_s13 = smov [#allocation25]  ;;  %s483_s14 = smov [#allocation24]  ;;  %v534_v6 = vmov %v1808_v6 }
 0x105   : >> { %v454_v60 = vrot.slane %v453_v58, 4  ;;  %v473_v61 = vsel %vm472_vm7, %v469_v59, 0.0  ;;  %s487_s15 = smov [#allocation26]  ;;  %s522_s16 = smov [#allocation27]  ;;  %v537_v7 = vmov %v1810_v7  ;;  %v549_v6 = vmov %v1808_v6 }
 0x106   : >> { %v435_v62 = vadd.f32 %v434_v57, %v433_v55  ;;  %v474_v63 = vrot.slane %v473_v61, 4  ;;  %s524_s0 = smov [#allocation28]  ;;  %s481_s1 = smov [#allocation29]  ;;  %v552_v7 = vmov %v1810_v7  ;;  %vm539_vm12 = vcmp.eq.s32.totalorder %v537_v7, %v534_v6 }
 0x107   : >> { %v455_v0 = vadd.f32 %v454_v60, %v453_v58  ;;  %s482_s2 = smov [#allocation30]  ;;  %s526_s1 = smov %s481_s1  ;;  %vm554_vm13 = vcmp.eq.s32.totalorder %v552_v7, %v549_v6  ;;  %v647_v6 = vmov %v1808_v6  ;;  %v650_v7 = vmov %v1810_v7 }
 0x108   : >> { %v436_v1 = vrot.slane %v435_v62, 2  ;;  %v475_v2 = vadd.f32 %v474_v63, %v473_v61  ;;  %s528_s2 = smov %s482_s2  ;;  %s530_s3 = smov [#allocation29]  ;;  %v661_v6 = vmov %v1808_v6  ;;  %v664_v7 = vmov %v1810_v7 }
 0x109   : >> { %v456_v3 = vrot.slane %v455_v0, 2  ;;  %s545_s17 = smov [#allocation30]  ;;  %s543_s18 = smov [#allocation31]  ;;  %vm654_vm0 = vcmp.eq.s32.totalorder %v650_v7, %v647_v6  ;;  %v620_v6 = vmov %v1808_v6  ;;  %v623_v7 = vmov %v1810_v7 }
 0x10a   : >> { %v437_v4 = vadd.f32 %v436_v1, %v435_v62  ;;  %v476_v5 = vrot.slane %v475_v2, 2  ;;  %s560_s19 = smov [#allocation31]  ;;  %s1854_s20 = smov [#allocation20]  ;;  %v634_v6 = vmov %v1808_v6  ;;  %v637_v7 = vmov %v1810_v7 }
 0x10b   : >> { %v457_v8 = vadd.f32 %v456_v3, %v455_v0  ;;  %s558_s21 = smov [#allocation32]  ;;  %s1856_s22 = smov [#allocation21]  ;;  %v568_v53 = vld [vmem:[%s1854_s20] sm:$0xf]  ;;  %vm669_vm1 = vcmp.eq.s32.totalorder %v664_v7, %v661_v6  ;;  %vm628_vm3 = vcmp.eq.s32.totalorder %v623_v7, %v620_v6  ;;  %vm641_vm4 = vcmp.eq.s32.totalorder %v637_v7, %v634_v6 }
 0x10c   : >> { %v438_v9 = vrot.slane %v437_v4, 1  ;;  %v477_v10 = vadd.f32 %v476_v5, %v475_v2  ;;  %s1858_s23 = smov [#allocation22]  ;;  %s1860_s24 = smov [#allocation23]  ;;  %v569_v54 = vld [vmem:[%s1856_s22] sm:$0xf]  ;;  %vm683_vm5 = vcmp.eq.s32.totalorder %v1808_v6, 0 }
 0x10d   : >> { %v458_v11 = vrot.slane %v457_v8, 1  ;;  %s1862_s25 = smov [#allocation12]  ;;  %s1864_s28 = smov [#allocation14]  ;;  %v570_v55 = vld [vmem:[%s1858_s23] sm:$0xf]  ;;  %vm687_vm6 = vcmp.eq.s32.totalorder %v1808_v6, 1 }
 0x10e   : >> { %v439_v12 = vadd.f32 %v438_v9, %v437_v4  ;;  %v478_v13 = vrot.slane %v477_v10, 1  ;;  %s1866_s29 = smov [#allocation16]  ;;  %s784_s30 = smov [#allocation31]  ;;  %v571_v56 = vld [vmem:[%s1860_s24] sm:$0xf]  ;;  %vm700_vm7 = vcmp.eq.s32.totalorder %v1808_v6, 3 }
 0x10f   : >> { %v459_v14 = vadd.f32 %v458_v11, %v457_v8  ;;  %v792_v57 = vld [vmem:[%s1862_s25] sm:$0xf]  ;;  %s420_s27 = sadd.s32 1, %s1741_s27  }
 0x110   : >> { %440 = vst [vmem:[%s422_s10] sm:$0x1] %v439_v12  ;;  %v479_v15 = vadd.f32 %v478_v13, %v477_v10  ;;  %s1870_s10 = smov [#allocation18]  ;;  %v793_v58 = vld [vmem:[%s1864_s28] sm:$0xf]  ;;  %p417_p1 = scmp.ge.s32.totalorder %s420_s27, 7  }
 0x111   : >> { %460 = vst [vmem:[%s442_s11] sm:$0x1] %v459_v14  ;;  %v794_v59 = vld [vmem:[%s1866_s29] sm:$0xf]  ;;  %s562_s11 = smov [#allocation32]  ;;  %v321_v6 = vmov (%p417_p1), %v1808_v6  ;;  %v324_v7 = vmov (%p417_p1), %v1810_v7 }
 0x112   : >> { %480 = vst [vmem:[%s462_s12] sm:$0x1] %v479_v15  ;;  %v795_v61 = vld [vmem:[%s1870_s10] sm:$0xf]  ;;  %s786_s12 = smov [#allocation32]  ;;  %v374_v6 = vmov (%p417_p1), %v1808_v6 }
 0x117   : >> { %v484_v18 = vld [vmem:[%s483_s14] sm:$0xff]  ;;  %s590_s14 = smov [#allocation30] }
 0x118   : >> { %v486_v16 = vld [vmem:[%s485_s13] sm:$0xff]  ;;  %v507_v31 = vand.u32 2147483647, %v484_v18  ;;  %s588_s13 = smov [#allocation29] }
 0x119   : >> { %v490_v17 = vmul.f32 2.0, %v486_v16  ;;  %v488_v19 = vld [vmem:[%s487_s15] sm:$0xff]  ;;  %v508_v36 = vand.u32 2147483647, %v486_v16  ;;  %s1886_s15 = smov [#allocation12] }
 0x11a   : >> { %v489_v20 = vsub.f32 %v488_v19, %v484_v18  ;;  %v509_v32 = vand.u32 2147483647, %v488_v19 }
 0x11b   : >> { %1719 = vrcp.f32 %v490_v17 }
 0x11c   : >> { %v510_v35 = vmin.f32 %v507_v31, %v509_v32 }
 0x11e   : >> { %v511_v37 = vmul.f32 1.1920929e-08, %v510_v35 }
 0x120   : >> { %vm512_vm11 = vcmp.le.f32.partialorder %v508_v36, %v511_v37 }
 0x125   : >> { %v1720_v21 = vpop.eup %1719 }
 0x126   : >> { %v492_v22 = vmul.f32 %v1720_v21, %v489_v20 }
 0x128   : >> { %v494_v23 = vmul.f32 %v492_v22, %v492_v22  ;;  %vm493_vm10 = vcmp.ge.f32.partialorder %v492_v22, 0.0 }
 0x12a   : >> { %v495_v24 = vadd.f32 1.0, %v494_v23 }
 0x12c   : >> { %1721 = vrsqrt.f32 %v495_v24  ;;  %vm498_vm8 = vcmp.eq.f32.partialorder %v495_v24, inf  ;;  %v501_v26 = vand.u32 2147483648, %v495_v24  ;;  %vm500_vm9 = vcmp.eq.f32.partialorder %v495_v24, 0.0 }
 0x136   : >> { %v1722_v25 = vpop.eup %1721 }
 0x137   : >> { %v497_v27 = vmul.f32 %v1722_v25, %v495_v24 }
 0x139   : >> { %v499_v28 = vsel %vm498_vm8, %v495_v24, %v497_v27  ;;  %vm336_vm8 = vcmp.eq.s32.totalorder (%p417_p1), %v324_v7, %v321_v6  ;;  %v377_v7 = vmov (%p417_p1), %v1810_v7  ;;  %v340_v6 = vmov (%p417_p1), %v1808_v6 }
 0x13a   : >> { %v502_v29 = vsel %vm500_vm9, %v501_v26, %v499_v28  ;;  %v343_v7 = vmov (%p417_p1), %v1810_v7  ;;  %v357_v6 = vmov (%p417_p1), %v1808_v6  ;;  %vm389_vm9 = vcmp.eq.s32.totalorder (%p417_p1), %v377_v7, %v374_v6 }
 0x13b   : >> { %v503_v30 = vxor.u32 2147483648, %v502_v29  ;;  %v360_v7 = vmov (%p417_p1), %v1810_v7 }
 0x13d   : >> { %v504_v33 = vsel %vm493_vm10, %v502_v29, %v503_v30 }
 0x13e   : >> { %v505_v34 = vadd.f32 %v504_v33, %v492_v22 }
 0x140   : >> { %1723 = vrcp.f32 %v505_v34 }
 0x14a   : >> { %v1724_v38 = vpop.eup %1723 }
 0x14b   : >> { %v513_v39 = vsel %vm512_vm11, 0.0, %v1724_v38 }
 0x14c   : >> { %v514_v40 = vmul.f32 %v513_v39, %v513_v39  ;;  %v518_v41 = vmul.f32 %v513_v39, %v486_v16 }
 0x14e   : >> { %v515_v42 = vadd.f32 1.0, %v514_v40  ;;  %v519_v43 = vsub.f32 %v484_v18, %v518_v41  ;;  %v521_v44 = vadd.f32 %v518_v41, %v488_v19 }
 0x150   : >> { %1725 = vrsqrt.f32 %v515_v42  ;;  %523 = vst [vmem:[%s522_s16] sm:$0xff] %v519_v43  ;;  %525 = vst [vmem:[%s524_s0] sm:$0xff] %v521_v44  ;;  %s1888_s16 = smov [#allocation22]  ;;  %s1890_s0 = smov [#allocation23] }
 0x15a   : >> { %v1726_v45 = vpop.eup %1725 }
 0x15b   : >> { %527 = vst [vmem:[%s526_s1] sm:$0xff] %v1726_v45  ;;  %v517_v46 = vmul.f32 %v1726_v45, %v513_v39  ;;  %s1892_s1 = smov [#allocation20] }
 0x15d   : >> { %529 = vst [vmem:[%s528_s2] sm:$0xff] %v517_v46  ;;  %s1894_s2 = smov [#allocation16] }
 0x162   : >> { %v531_v47 = vld [vmem:[%s530_s3] ss:$0 sm:$0xff]  ;;  %s1896_s3 = smov [#allocation14] }
 0x163   : >> { %v540_v48 = vsel %vm539_vm12, %v531_v47, 0.0  ;;  %v589_v27 = vld [vmem:[%s588_s13] ss:$0 sm:$0xff]  ;;  %s760_s13 = smov [#allocation21] }
 0x164   : >> { %541 = vadd.xlane.f32.xlu0 %v540_v48  ;;  %v546_v49 = vld [vmem:[%s545_s17] ss:$0 sm:$0xff]  ;;  %s1900_s17 = smov [#allocation18] }
 0x165   : >> { %v555_v50 = vsel %vm554_vm13, %v546_v49, 0.0  ;;  %v591_v28 = vld [vmem:[%s590_s14] ss:$0 sm:$0xff]  ;;  %s737_s14 = smov [#allocation22] }
 0x168   : >> { %556 = vadd.xlane.f32.xlu0 %v555_v50 }
 0x1f1   : >> { %v542_v51 = vpop.xlane.xlu0 %541 }
 0x1f2   : >> { %544 = vst [vmem:[%s543_s18] sm:$0xff] %v542_v51  ;;  %s1902_s18 = smov [#allocation21] }
 0x1f5   : >> { %v557_v52 = vpop.xlane.xlu0 %556 }
 0x1f6   : >> { %559 = vst [vmem:[%s558_s21] sm:$0xff] %v557_v52  ;;  %s657_s21 = smov [#allocation23] }
 0x1f9   : >> { %v561_v60 = vld [vmem:[%s560_s19] sm:$0xff]  ;;  %s658_s19 = smov [#allocation28] }
 0x1fa   : >> { %v785_v62 = vld [vmem:[%s784_s30] sm:$0xff]  ;;  %v572_v63 = vmul.f32 %v568_v53, %v561_v60  ;;  %v575_v0 = vmul.f32 %v569_v54, %v561_v60  ;;  %v579_v1 = vmul.f32 %v570_v55, %v561_v60  ;;  %v582_v2 = vmul.f32 %v571_v56, %v561_v60  ;;  %s673_s30 = smov [#allocation21] }
 0x1fb   : >> { %v796_v3 = vmul.f32 %v792_v57, %v785_v62  ;;  %v799_v4 = vmul.f32 %v793_v58, %v785_v62  ;;  %v803_v5 = vmul.f32 %v794_v59, %v785_v62  ;;  %v806_v8 = vmul.f32 %v795_v61, %v785_v62 }
 0x1fd   : >> { %v563_v9 = vld [vmem:[%s562_s11] sm:$0xff]  ;;  %s1947_s11 = smov [#allocation23] }
 0x1fe   : >> { %v787_v10 = vld [vmem:[%s786_s12] sm:$0xff]  ;;  %v573_v11 = vmul.f32 %v570_v55, %v563_v9  ;;  %v576_v12 = vmul.f32 %v571_v56, %v563_v9  ;;  %v578_v13 = vmul.f32 %v568_v53, %v563_v9  ;;  %v581_v14 = vmul.f32 %v569_v54, %v563_v9  ;;  %s736_s12 = smov [#allocation20] }
 0x1ff   : >> { %v797_v15 = vmul.f32 %v794_v59, %v787_v10  ;;  %v800_v16 = vmul.f32 %v795_v61, %v787_v10  ;;  %v802_v17 = vmul.f32 %v792_v57, %v787_v10  ;;  %v805_v18 = vmul.f32 %v793_v58, %v787_v10  ;;  %v665_v59 = vld [vmem:[%s658_s19] ss:$0 sm:$0xff] }
 0x200   : >> { %v574_v19 = vsub.f32 %v572_v63, %v573_v11  ;;  %v577_v20 = vsub.f32 %v575_v0, %v576_v12  ;;  %v580_v21 = vadd.f32 %v579_v1, %v578_v13  ;;  %v583_v22 = vadd.f32 %v582_v2, %v581_v14 }
 0x201   : >> { %v798_v23 = vsub.f32 %v796_v3, %v797_v15  ;;  %v801_v24 = vsub.f32 %v799_v4, %v800_v16  ;;  %v804_v25 = vadd.f32 %v803_v5, %v802_v17  ;;  %v807_v26 = vadd.f32 %v806_v8, %v805_v18 }
 0x202   : >> { %585 = vst [vmem:[%s1856_s22] sm:$0xf] %v577_v20  ;;  %587 = vst [vmem:[%s1860_s24] sm:$0xf] %v583_v22  ;;  %s617_s22 = smov [#allocation27]  ;;  %s631_s24 = smov [#allocation21] }
 0x203   : >> { %584 = vst [vmem:[%s1854_s20] sm:$0xf] %v574_v19  ;;  %586 = vst [vmem:[%s1858_s23] sm:$0xf] %v580_v21  ;;  %s644_s20 = smov [#allocation22]  ;;  %s616_s23 = smov [#allocation20]  ;;  %v624_v63 = vld [vmem:[%s617_s22] ss:$0 sm:$0xff] }
 0x204   : >> { %808 = vst [vmem:[%s1862_s25] sm:$0xf] %v798_v23  ;;  %809 = vst [vmem:[%s1864_s28] sm:$0xf] %v801_v24  ;;  %s1944_s25 = smov [#allocation22]  ;;  %s1744_s28 = smov 1  }
 0x205   : >> { %810 = vst [vmem:[%s1866_s29] sm:$0xf] %v804_v25  ;;  %811 = vst [vmem:[%s1870_s10] sm:$0xf] %v807_v26  ;;  %s672_s29 = smov [#allocation20]  ;;  %s1745_s10 = smov 127  }
 0x209   : >> { %v599_v30 = vld [vmem:[%s1890_s0] sm:$0xf] }
 0x20a   : >> { %v598_v29 = vld [vmem:[%s1888_s16] sm:$0xf]  ;;  %v607_v36 = vmul.f32 %v599_v30, %v591_v28  ;;  %v610_v42 = vmul.f32 %v599_v30, %v589_v27 }
 0x20b   : >> { %v596_v31 = vld [vmem:[%s1892_s1] sm:$0xf]  ;;  %v606_v35 = vmul.f32 %v598_v29, %v589_v27  ;;  %v609_v37 = vmul.f32 %v598_v29, %v591_v28 }
 0x20c   : >> { %v814_v32 = vld [vmem:[%s1886_s15] ss:$0 sm:$0xff]  ;;  %v1667_v34 = vld [vmem:[%s1886_s15 + $0x3] ss:$0 sm:$0xff]  ;;  %v600_v48 = vmul.f32 %v596_v31, %v589_v27  ;;  %v603_v49 = vmul.f32 %v596_v31, %v591_v28 }
 0x20d   : >> { %v1666_v33 = vld [vmem:[%s1886_s15 - $0x1] sm:$0xe]  ;;  %v1671_v45 = vld [vmem:[%s1896_s3 + $0x3] ss:$0 sm:$0xff]  ;;  %v608_v47 = vsub.f32 %v606_v35, %v607_v36  ;;  %v611_v53 = vadd.f32 %v610_v42, %v609_v37 }
 0x20e   : >> { %v821_v38 = vsel %vm744_vm14, %v814_v32, %v1666_v33  ;;  %v825_v39 = vld [vmem:[%s1894_s2] ss:$0 sm:$0xff]  ;;  %v1669_v40 = vld [vmem:[%s1894_s2 + $0x1] sm:$0x7] }
 0x20f   : >> { %v838_v41 = vld [vmem:[%s1896_s3] ss:$0 sm:$0xff]  ;;  %824 = vst [vmem:[%s1886_s15] sm:$0xf] %v821_v38  ;;  %v833_v43 = vsel %vm756_vm15, %v1667_v34, %v1669_v40  ;;  %v1673_v51 = vld [vmem:[%s1900_s17 + $0x1] sm:$0x7]  ;;  %614 = vst [vmem:[%s1888_s16] sm:$0xf] %v608_v47 }
 0x210   : >> { %v1670_v44 = vld [vmem:[%s1896_s3 - $0x1] sm:$0xe]  ;;  %1668 = vst [vmem:[%s1886_s15 + $0x1] sm:$0x1] %v825_v39  ;;  %835 = vst [vmem:[%s1894_s2] sm:$0xf] %v833_v43  ;;  %v857_v54 = vsel %vm756_vm15, %v1671_v45, %v1673_v51  ;;  %s761_s15 = smov [#allocation23] }
 0x211   : >> { %v849_v46 = vld [vmem:[%s1900_s17] ss:$0 sm:$0xff]  ;;  %v845_v50 = vsel %vm744_vm14, %v838_v41, %v1670_v44  ;;  %615 = vst [vmem:[%s1890_s0] sm:$0xf] %v611_v53  ;;  %s860_s16 = sadd.s32 (%p417_p1), 1, %s1737_s26   ;;  %s325_s0 = smov (%p417_p1), [#allocation20] }
 0x212   : >> { %v597_v52 = vld [vmem:[%s1902_s18] sm:$0xf]  ;;  %848 = vst [vmem:[%s1896_s3] sm:$0xf] %v845_v50  ;;  %859 = vst [vmem:[%s1900_s17] sm:$0xf] %v857_v54  ;;  %s361_s2 = smov (%p417_p1), [#allocation22]  ;;  %p413_p2 = scmp.ge.s32.totalorder (%p417_p1), %s860_s16, 15 }
 0x213   : >> { %v601_v55 = vmul.f32 %v597_v52, %v591_v28  ;;  %v604_v56 = vmul.f32 %v597_v52, %v589_v27  ;;  %1672 = vst [vmem:[%s1896_s3 + $0x1] sm:$0x1] %v849_v46  ;;  %s378_s3 = smov (%p417_p1), [#allocation23]  ;;  %s2036_s26 = smov (%p417_p1), %s860_s16 }
 0x215   : >> { %v602_v57 = vsub.f32 %v600_v48, %v601_v55  ;;  %v605_v58 = vadd.f32 %v604_v56, %v603_v49 }
 0x216   : >> { %v651_v60 = vld [vmem:[%s644_s20] sm:$0xf] }
 0x217   : >> { %612 = vst [vmem:[%s1892_s1] sm:$0xf] %v602_v57  ;;  %613 = vst [vmem:[%s1902_s18] sm:$0xf] %v605_v58  ;;  %v655_v61 = vsel %vm654_vm0, 0.0, %v651_v60  ;;  %s344_s1 = smov (%p417_p1), [#allocation21] }
 0x218   : >> { %v666_v62 = vld [vmem:[%s657_s21] sm:$0xf]  ;;  %656 = vst [vmem:[%s644_s20] sm:$0xf] %v655_v61 }
 0x219   : >> { %v670_v0 = vsel %vm669_vm1, %v665_v59, %v666_v62 }
 0x21a   : >> { %671 = vst [vmem:[%s657_s21] sm:$0xf] %v670_v0 }
 0x21e   : >> { %v625_v1 = vld [vmem:[%s616_s23] sm:$0xf] }
 0x21f   : >> { %v638_v2 = vld [vmem:[%s631_s24] sm:$0xf]  ;;  %v629_v3 = vsel %vm628_vm3, %v624_v63, %v625_v1 }
 0x220   : >> { %v642_v4 = vsel %vm641_vm4, 0.0, %v638_v2  ;;  %630 = vst [vmem:[%s616_s23] sm:$0xf] %v629_v3  ;;  %v710_v5 = vld [vmem:[%s1944_s25] sm:$0xf] }
 0x221   : >> { %643 = vst [vmem:[%s631_s24] sm:$0xf] %v642_v4  ;;  %711 = vrot.lane.b32.xlu0 %v710_v5, %s1744_s28  ;;  %v706_v11 = vld [vmem:[%s1947_s11] sm:$0xf] }
 0x222   : >> { %v727_v12 = vld [vmem:[%s1947_s11] sm:$0xf] }
 0x223   : >> { %v709_v30 = vld [vmem:[%s1944_s25] sm:$0xf] }
 0x227   : >> { %v678_v8 = vld [vmem:[%s672_s29] sm:$0xf] }
 0x228   : >> { %679 = vrot.lane.b32.xlu1 %v678_v8, %s1744_s28  ;;  %v674_v9 = vld [vmem:[%s673_s30] sm:$0xf] }
 0x229   : >> { %v695_v10 = vld [vmem:[%s673_s30] sm:$0xf] }
 0x22a   : >> { %v677_v18 = vld [vmem:[%s672_s29] sm:$0xf] }
 0x22c   : >> { %675 = vrot.lane.b32.xlu1 %v674_v9, %s1744_s28 }
 0x230   : >> { %696 = vrot.lane.b32.xlu1 %v695_v10, %s1745_s10 }
 0x234   : >> { %707 = vrot.lane.b32.xlu1 %v706_v11, %s1744_s28 }
 0x238   : >> { %728 = vrot.lane.b32.xlu1 %v727_v12, %s1745_s10 }
 0x293   : >> { %v712_v20 = vpop.permute.xlu0 %711 }
 0x294   : >> { %v716_v22 = vsel %vm683_vm5, %v710_v5, %v712_v20 }
 0x29a   : >> { %v680_v13 = vpop.permute.xlu1 %679 }
 0x29b   : >> { %v684_v14 = vsel %vm683_vm5, %v678_v8, %v680_v13 }
 0x29e   : >> { %v676_v15 = vpop.permute.xlu1 %675 }
 0x29f   : >> { %v688_v16 = vsel %vm687_vm6, %v676_v15, %v684_v14 }
 0x2a0   : >> { %v694_v17 = vsel %vm1445_vm2, %v688_v16, 0.0 }
 0x2a1   : >> { %702 = vst [vmem:[%s672_s29] sm:$0xf] %v694_v17 }
 0x2a2   : >> { %v697_v19 = vpop.permute.xlu1 %696 }
 0x2a3   : >> { %v701_v21 = vsel %vm700_vm7, %v677_v18, %v697_v19 }
 0x2a4   : >> { %703 = vst [vmem:[%s673_s30] sm:$0xf] %v701_v21 }
 0x2a6   : >> { %v708_v23 = vpop.permute.xlu1 %707 }
 0x2a7   : >> { %v720_v24 = vsel %vm687_vm6, %v708_v23, %v716_v22 }
 0x2a8   : >> { %v738_v25 = vld [vmem:[%s736_s12] ss:$0 sm:$0xff]  ;;  %v1659_v27 = vld [vmem:[%s736_s12 + $0x3] ss:$0 sm:$0xff]  ;;  %v726_v29 = vsel %vm1445_vm2, %v720_v24, 0.0 }
 0x2a9   : >> { %v1658_v26 = vld [vmem:[%s736_s12 - $0x1] sm:$0xe]  ;;  %734 = vst [vmem:[%s1944_s25] sm:$0xf] %v726_v29 }
 0x2aa   : >> { %v745_v28 = vsel %vm744_vm14, %v738_v25, %v1658_v26  ;;  %v729_v31 = vpop.permute.xlu1 %728 }
 0x2ab   : >> { %748 = vst [vmem:[%s736_s12] sm:$0xf] %v745_v28  ;;  %v762_v32 = vld [vmem:[%s760_s13] ss:$0 sm:$0xff]  ;;  %v1663_v34 = vld [vmem:[%s760_s13 + $0x3] ss:$0 sm:$0xff]  ;;  %v733_v35 = vsel %vm700_vm7, %v709_v30, %v729_v31 }
 0x2ac   : >> { %v1662_v33 = vld [vmem:[%s760_s13 - $0x1] sm:$0xe]  ;;  %735 = vst [vmem:[%s1947_s11] sm:$0xf] %v733_v35 }
 0x2ad   : >> { %v769_v36 = vsel %vm744_vm14, %v762_v32, %v1662_v33 }
 0x2ae   : >> { %772 = vst [vmem:[%s760_s13] sm:$0xf] %v769_v36 }
 0x2b0   : >> { %v749_v37 = vld [vmem:[%s737_s14] ss:$0 sm:$0xff]  ;;  %v1661_v38 = vld [vmem:[%s737_s14 + $0x1] sm:$0x7] }
 0x2b1   : >> { %1660 = vst [vmem:[%s736_s12 + $0x1] sm:$0x1] %v749_v37  ;;  %v757_v39 = vsel %vm756_vm15, %v1659_v27, %v1661_v38  ;;  %419 = sbr.rel (!%p417_p1) target bundleno = 257 (0x101), region = 435 }
 0x2b2   : >> { %759 = vst [vmem:[%s737_s14] sm:$0xf] %v757_v39 }
 0x2b3   : >> { %v773_v40 = vld [vmem:[%s761_s15] ss:$0 sm:$0xff]  ;;  %v1665_v41 = vld [vmem:[%s761_s15 + $0x1] sm:$0x7] }
 0x2b4   : >> { %1664 = vst [vmem:[%s760_s13 + $0x1] sm:$0x1] %v773_v40  ;;  %v781_v42 = vsel %vm756_vm15, %v1663_v34, %v1665_v41 }
 0x2b5   : >> { %783 = vst [vmem:[%s761_s15] sm:$0xf] %v781_v42 }
 0x2b8   : > { %v331_v43 = vld [vmem:[%s325_s0] sm:$0xf] }
 0x2b9   : > { %v332_v45 = vsel %vm1445_vm2, %v331_v43, 0.0  ;;  %v367_v47 = vld [vmem:[%s361_s2] sm:$0xf] }
 0x2ba   : > { %v333_v49 = vmul.f32 %v332_v45, %v332_v45  ;;  %v368_v51 = vsel %vm1445_vm2, %v367_v47, 0.0 }
 0x2bb   : > { %v350_v44 = vld [vmem:[%s344_s1] sm:$0xf]  ;;  %v369_v53 = vmul.f32 %v368_v51, %v368_v51 }
 0x2bc   : > { %v351_v46 = vsel %vm1445_vm2, %v350_v44, 0.0  ;;  %v384_v48 = vld [vmem:[%s378_s3] sm:$0xf]  ;;  %v337_v56 = vsel %vm336_vm8, 0.0, %v333_v49 }
 0x2bd   : > { %v352_v50 = vmul.f32 %v351_v46, %v351_v46  ;;  %v385_v52 = vsel %vm1445_vm2, %v384_v48, 0.0 }
 0x2be   : > { %v386_v55 = vmul.f32 %v385_v52, %v385_v52 }
 0x2bf   : > { %v354_v54 = vadd.f32 %v352_v50, %v333_v49  ;;  %v353_v57 = vadd.f32 %v352_v50, %v337_v56 }
 0x2c0   : > { %v390_v60 = vsel %vm389_vm9, 0.0, %v386_v55 }
 0x2c1   : > { %v371_v58 = vadd.f32 %v369_v53, %v354_v54  ;;  %v370_v59 = vadd.f32 %v369_v53, %v353_v57 }
 0x2c3   : > { %v392_v61 = vadd.f32 %v386_v55, %v371_v58  ;;  %v391_v62 = vadd.f32 %v390_v60, %v370_v59 }
 0x2c5   : > { %393 = vadd.xlane.f32.xlu0 %v392_v61 }
 0x2c9   : > { %401 = vadd.xlane.f32.xlu0 %v391_v62 }
 0x352   : > { %v394_v63 = vpop.xlane.xlu0 %393 }
 0x353   : > { %v395_v0 = vrot.slane %v394_v63, 4 }
 0x355   : > { %v396_v1 = vadd.f32 %v395_v0, %v394_v63 }
 0x356   : > { %v402_v2 = vpop.xlane.xlu0 %401 }
 0x357   : > { %v397_v3 = vrot.slane %v396_v1, 2  ;;  %v403_v4 = vrot.slane %v402_v2, 4 }
 0x359   : > { %v404_v5 = vadd.f32 %v403_v4, %v402_v2  ;;  %v398_v8 = vadd.f32 %v397_v3, %v396_v1 }
 0x35b   : > { %v405_v9 = vrot.slane %v404_v5, 2  ;;  %v399_v11 = vrot.slane %v398_v8, 1 }
 0x35d   : > { %v406_v10 = vadd.f32 %v405_v9, %v404_v5  ;;  %v400_v14 = vadd.f32 %v399_v11, %v398_v8 }
 0x35f   : > { %v407_v12 = vrot.slane %v406_v10, 1 }
 0x361   : > { %v408_v13 = vadd.f32 %v407_v12, %v406_v10 }
 0x363   : > { %1696 = vpush %v408_v13 }
 0x364   : > { %1698 = vpush %v400_v14 }
 0x394   : > { %s1697_s27 = spop %1696 }
 0x395   : > { %s1699_s17 = spop %1698 }
 0x396   : > { %s411_s18 = smul.f32 1e-10, %s1699_s17 }
 0x398   : > { %p412_p3 = scmp.le.f32.partialorder %s1697_s27, %s411_s18 }
 0x39a   : > { %p414_p4 = por %p413_p2, %p412_p3 }
 0x39c   :  { %862 = sbr.rel (!%p414_p4) target bundleno = 256 (0x100), region = 446 }
 0x3a3 PF:  { %s863_s19 = smov [#allocation20]  ;;  %v867_v6 = vmov %v1808_v6  ;;  %v870_v7 = vmov %v1810_v7  ;;  %v918_v15 = vld [vmem:[#allocation12] sm:$0xf]  ;;  %v924_v16 = vld [vmem:[#allocation14] sm:$0xf]  ;;  %s883_s20 = smov [#allocation23] }
 0x3a4   :  { %v887_v6 = vmov %v1808_v6  ;;  %v890_v7 = vmov %v1810_v7  ;;  %v871_v17 = vld [vmem:[%s863_s19] sm:$0xf]  ;;  %vm874_vm10 = vcmp.eq.s32.totalorder %v870_v7, %v867_v6  ;;  %920 = vst [vmem:[#allocation13] sm:$0xf] %v918_v15  ;;  %926 = vst [vmem:[#allocation15] sm:$0xf] %v924_v16 }
 0x3a5   :  { %vm894_vm11 = vcmp.eq.s32.totalorder %v890_v7, %v887_v6  ;;  %v930_v18 = vld [vmem:[#allocation16] sm:$0xf]  ;;  %v875_v19 = vsel %vm874_vm10, %v871_v17, 0.0  ;;  %v891_v20 = vld [vmem:[%s883_s20] sm:$0xf]  ;;  %s864_s30 = smov [#allocation8] }
 0x3a6   :  { %932 = vst [vmem:[#allocation17] sm:$0xf] %v930_v18  ;;  %v936_v21 = vld [vmem:[#allocation18] sm:$0xf]  ;;  %v876_v22 = vrot.slane %v875_v19, 4  ;;  %v895_v23 = vsel %vm894_vm11, %v891_v20, 0.0 }
 0x3a7   :  { %938 = vst [vmem:[#allocation19] sm:$0xf] %v936_v21  ;;  %v896_v24 = vrot.slane %v895_v23, 4 }
 0x3a8   :  { %v877_v25 = vadd.f32 %v876_v22, %v875_v19 }
 0x3a9   :  { %v897_v26 = vadd.f32 %v896_v24, %v895_v23 }
 0x3aa   :  { %v878_v27 = vrot.slane %v877_v25, 2 }
 0x3ab   :  { %v898_v28 = vrot.slane %v897_v26, 2  ;;  %v1127_v29 = vld [vmem:[#allocation13] sm:$0xf]  ;;  %v1189_v30 = vld [vmem:[#allocation15] sm:$0xf] }
 0x3ac   :  { %v879_v31 = vadd.f32 %v878_v27, %v877_v25  ;;  %1128 = vst [vmem:[%s2032_s6] sm:$0xf] %v1127_v29  ;;  %1190 = vst [vmem:[%s2033_s7] sm:$0xf] %v1189_v30  ;;  %s884_s6 = smov [#allocation10] }
 0x3ad   :  { %v1251_v6 = vld [vmem:[#allocation17] sm:$0xf]  ;;  %v899_v7 = vadd.f32 %v898_v28, %v897_v26 }
 0x3ae   :  { %1252 = vst [vmem:[%s2034_s8] sm:$0xf] %v1251_v6  ;;  %v1313_v32 = vld [vmem:[#allocation19] sm:$0xf]  ;;  %v880_v33 = vrot.slane %v879_v31, 1 }
 0x3af   :  { %1314 = vst [vmem:[%s2035_s9] sm:$0xf] %v1313_v32  ;;  %v900_v34 = vrot.slane %v899_v7, 1 }
 0x3b0   :  { %v881_v35 = vadd.f32 %v880_v33, %v879_v31 }
 0x3b1   :  { %v901_v36 = vadd.f32 %v900_v34, %v899_v7 }
 0x3b2   :  { %882 = vst [vmem:[%s864_s30] sm:$0x1] %v881_v35 }
 0x3b3   :  { %902 = vst [vmem:[%s884_s6] sm:$0x1] %v901_v36 }
 0x3b9   :  { %v906_v37 = vld [vmem:[#allocation8] sm:$0x1] }
 0x3ba   :  { %908 = vst [vmem:[#allocation9] sm:$0x1] %v906_v37  ;;  %v912_v38 = vld [vmem:[#allocation10] sm:$0x1] }
 0x3bb   :  { %914 = vst [vmem:[#allocation11] sm:$0x1] %v912_v38 }
 0x3c1   :  { %v1001_v39 = vld [vmem:[#allocation9] sm:$0x1] }
 0x3c2   :  { %1002 = vst [vmem:[%s2030_s4] sm:$0x1] %v1001_v39  ;;  %v1065_v40 = vld [vmem:[#allocation11] sm:$0x1] }
 0x3c3   :  { %1066 = vst [vmem:[%s2031_s5] sm:$0x1] %v1065_v40 }

// kernel: custom-call.2
= control target key start
LH: loop header
LB: loop body
LE: loop exit
PB: predicated region body
PF: predicated region fallthrough
CT: control target
= control target key end

     0   :  { %s6_s0 = inlined_call_operand.vmem [shape: f32[8,8], index: 0, kind: output, shape index: {}]  }

// kernel: rhf_forward.1
= control target key start
LH: loop header
LB: loop body
LE: loop exit
PB: predicated region body
PF: predicated region fallthrough
CT: control target
= control target key end

     0   :  { %14 = vsyncpa [#allocation3], 0  ;;  %s5390_s0 = inlined_call_operand.vmem [shape: f32[8,5], index: 0, kind: input, shape index: {}]   ;;  %s5391_s1 = inlined_call_operand.vmem [shape: f32[5,8], index: 1, kind: input, shape index: {}]   ;;  %s5392_s2 = inlined_call_operand.vmem [shape: f32[64,15], index: 2, kind: input, shape index: {}]   ;;  %s5393_s3 = inlined_call_operand.vmem [shape: f32[15,64], index: 3, kind: input, shape index: {}]   ;;  %s5394_s4 = inlined_call_operand.vmem [shape: f32[2,3], index: 4, kind: input, shape index: {}]   ;;  %s5395_s5 = inlined_call_operand.vmem [shape: f32[2], index: 5, kind: input, shape index: {}]   ;;  %s5396_s6 = inlined_call_operand.vmem [shape: f32[8,8], index: 6, kind: output, shape index: {0}]   ;;  %s5397_s7 = inlined_call_operand.vmem [shape: f32[8,8], index: 7, kind: output, shape index: {1}]   ;;  %s5398_s8 = inlined_call_operand.vmem [shape: f32[64,64], index: 8, kind: output, shape index: {2}]  }
   0x1   :  { %s30_s29 = sshll.u32 %s5394_s4, 4  ;;  %s31_s29 = int_to_ptr.vmem [resolvable:$true] %s30_s29 }
   0x2   :  { %15 = vsyncpa [#allocation5], 0  ;;  %s40_s10 = sshll.u32 %s5395_s5, 4  ;;  %s2803_s11 = scalar_lea.vmem %s31_s29, 32  ;;  %s41_s10 = int_to_ptr.vmem [resolvable:$true] %s40_s10 }
   0x3   :  { %p2804_p0 = scmp.ne.s32.totalorder %s31_s29, %s2803_s11  ;;  %p2808_p1 = scmp.lt.s32.totalorder %s31_s29, %s31_s29 }
   0x4   :  { %p2809_p2 = scmp.lt.s32.totalorder %s2803_s11, %s2803_s11 }
   0x6   :  { %p2810_p3 = por %p2809_p2, %p2808_p1 }
   0x8   :  { %p2811_p4 = pnand %p2810_p3, %p2804_p0 }
   0xa   :  { %2814 = shalt.err (!%p2811_p4)
}
   0xb   :  { %s2831_s12 = smov [#allocation2]   ;;  %s2815_s13 = scalar_lea.vmem %s41_s10, 16 }
   0xc   :  { %33 = dma.vmem_to_smem %s31_s29, 32, %s2831_s12, [#allocation3]  }
   0xd   :  { %p2816_p5 = scmp.ne.s32.totalorder %s41_s10, %s2815_s13  ;;  %p2820_p6 = scmp.lt.s32.totalorder %s41_s10, %s41_s10 }
   0xe   :  { %p2821_p7 = scmp.lt.s32.totalorder %s2815_s13, %s2815_s13 }
  0x10   :  { %p2822_p8 = por %p2821_p7, %p2820_p6 }
  0x12   :  { %p2823_p9 = pnand %p2822_p8, %p2816_p5 }
  0x14   :  { %2826 = shalt.err (!%p2823_p9)
}
  0x15   :  { %s2832_s4 = smov [#allocation4]  }
  0x16   :  { %43 = dma.vmem_to_smem %s41_s10, 16, %s2832_s4, [#allocation5]  }
  0x17   :  { %2827 = dma.done.wait [#allocation3], 32  }
  0x18   :  { %2828 = vsyncadd [#allocation3], 4294967264 }
  0x19   :  { %2829 = dma.done.wait [#allocation5], 16  }
  0x1a   :  { %2830 = vsyncadd [#allocation5], 4294967280 }
  0x1b   :  { %50 = sfence }
  0x1c   :  { %v2905_v0 = vld [vmem:[%s5390_s0] sm:$0xff]  ;;  %v2833_v1 = vmov 2   ;;  %s2834_s15 = smov 127   ;;  %v2835_v2 = vmov 9   ;;  %s2836_s16 = smov 126   ;;  %v2837_v3 = vmov 3  }
  0x1d   :  { %2505 = vset.pattern.permute.xlu1 %v2833_v1  ;;  %136 = vrot.lane.b32.xlu0 %v2905_v0, %s2834_s15  ;;  %s2838_s0 = smov 125   ;;  %v2920_v4 = vld [vmem:[%s5392_s2] sm:$0xff]  ;;  %v5399_v5 = vmov 4   ;;  %v2928_v6 = vld [vmem:[%s5392_s2 + $0x18] sm:$0xff]  ;;  %v2933_v7 = vld [vmem:[%s5392_s2 + $0x8] sm:$0xff]  ;;  %v2840_v13 = vmov 11  }
  0x1e   :  { %82 = vperm.xlu1 %2505, %v2905_v0   ;;  %2508 = vset.pattern.permute.xlu0 %v2835_v2  ;;  %v2940_v8 = vld [vmem:[%s5392_s2 + $0x28] sm:$0xff]  ;;  %v2945_v9 = vld [vmem:[%s5392_s2 + $0x10] sm:$0xff]  ;;  %v2952_v10 = vld [vmem:[%s5392_s2 + $0x38] sm:$0xff]  ;;  %v2841_v14 = vmov 12   ;;  %v2842_v15 = vmov 13   ;;  %v2843_v17 = vmov 10  }
  0x1f   :  { %v2957_v11 = vld [vmem:[%s5392_s2 + $0x20] sm:$0xff]  ;;  %v2964_v12 = vld [vmem:[%s5392_s2 + $0x30] sm:$0xff]  ;;  %v829_v16 = vmul.f32 34.986835, %v2920_v4  ;;  %v832_v18 = vmul.f32 34.986835, %v2928_v6 }
  0x20   :  { %v834_v19 = vmul.f32 34.986835, %v2940_v8  ;;  %v836_v20 = vmul.f32 34.986835, %v2952_v10  ;;  %v2844_v21 = vmov 14   ;;  %v2845_v26 = vmov 1  }
  0x21   :  { %152 = vrot.lane.b32.xlu0 %v2905_v0, %s2836_s16  ;;  %v830_v22 = vmul.f32 34.986835, %v2933_v7  ;;  %v831_v23 = vmul.f32 34.986835, %v2945_v9  ;;  %v833_v24 = vmul.f32 34.986835, %v2957_v11 }
  0x22   :  { %2506 = vset.pattern.permute.xlu1 %v2837_v3  ;;  %v835_v25 = vmul.f32 34.986835, %v2964_v12  ;;  %v2846_v29 = vmov 0   ;;  %s3218_s18 = sld [smem:[#allocation2]]  ;;  %s3222_s19 = sld [smem:[#allocation2 + $0x1]]  ;;  %vm127_vm4 = vcmask 64512  }
  0x23   :  { %93 = vperm.xlu1 %2506, %v2905_v0   ;;  %s3224_s20 = sld [smem:[#allocation2 + $0x80]]  ;;  %s3228_s21 = sld [smem:[#allocation2 + $0x2]] }
  0x24   :  { %s3231_s22 = sld [smem:[#allocation2 + $0x81]]  ;;  %s3236_s23 = sld [smem:[#allocation2 + $0x82]] }
  0x25   :  { %168 = vrot.lane.b32.xlu0 %v2905_v0, %s2838_s0  ;;  %s3344_s27 = sld [smem:[#allocation4 + $0x1]] }
  0x27   :  { %2507 = vset.pattern.permute.xlu1 %v5399_v5 }
  0x28   :  { %108 = vperm.xlu1 %2507, %v2905_v0  }
  0x29   :  { %311 = vperm.xlu0 %2508, %v2920_v4  }
  0x2b   :  { %s252_s29 = ssub.f32 0.0, %s3344_s27 }
  0x2c   :  { %2509 = vset.pattern.permute.xlu1 %v2835_v2 }
  0x2d   :  { %326 = vperm.xlu0 %2508, %v2928_v6   ;;  %316 = vperm.xlu1 %2509, %v2933_v7  }
  0x31   :  { %336 = vperm.xlu0 %2508, %v2940_v8   ;;  %321 = vperm.xlu1 %2509, %v2945_v9  }
  0x35   :  { %346 = vperm.xlu0 %2508, %v2952_v10   ;;  %331 = vperm.xlu1 %2509, %v2957_v11  }
  0x39   :  { %2511 = vset.pattern.permute.xlu0 %v2840_v13  ;;  %341 = vperm.xlu1 %2509, %v2964_v12  }
  0x3a   :  { %374 = vperm.xlu0 %2511, %v2933_v7  }
  0x3d   :  { %2510 = vset.pattern.permute.xlu1 %v2840_v13 }
  0x3e   :  { %386 = vperm.xlu0 %2511, %v2957_v11   ;;  %370 = vperm.xlu1 %2510, %v2920_v4  }
  0x42   :  { %394 = vperm.xlu0 %2511, %v2964_v12   ;;  %378 = vperm.xlu1 %2510, %v2945_v9  }
  0x46   :  { %2512 = vset.pattern.permute.xlu0 %v2841_v14  ;;  %382 = vperm.xlu1 %2510, %v2928_v6  }
  0x47   :  { %422 = vperm.xlu0 %2512, %v2920_v4  }
  0x4a   :  { %390 = vperm.xlu1 %2510, %v2940_v8  }
  0x4b   :  { %434 = vperm.xlu0 %2512, %v2928_v6  }
  0x4e   :  { %398 = vperm.xlu1 %2510, %v2952_v10  }
  0x4f   :  { %442 = vperm.xlu0 %2512, %v2940_v8  }
  0x52   :  { %2513 = vset.pattern.permute.xlu1 %v2841_v14 }
  0x53   :  { %450 = vperm.xlu0 %2512, %v2952_v10   ;;  %426 = vperm.xlu1 %2513, %v2933_v7  }
  0x57   :  { %2515 = vset.pattern.permute.xlu0 %v2842_v15  ;;  %430 = vperm.xlu1 %2513, %v2945_v9  }
  0x58   :  { %486 = vperm.xlu0 %2515, %v2933_v7  }
  0x5b   :  { %438 = vperm.xlu1 %2513, %v2957_v11  }
  0x5c   :  { %498 = vperm.xlu0 %2515, %v2957_v11  }
  0x5f   :  { %446 = vperm.xlu1 %2513, %v2964_v12  }
  0x60   :  { %506 = vperm.xlu0 %2515, %v2964_v12  }
  0x63   :  { %2514 = vset.pattern.permute.xlu1 %v2842_v15 }
  0x64   :  { %2516 = vset.pattern.permute.xlu0 %v2843_v17  ;;  %482 = vperm.xlu1 %2514, %v2920_v4  }
  0x65   :  { %839 = vperm.xlu0 %2516, %v829_v16  }
  0x68   :  { %490 = vperm.xlu1 %2514, %v2945_v9  }
  0x69   :  { %854 = vperm.xlu0 %2516, %v832_v18  }
  0x6c   :  { %494 = vperm.xlu1 %2514, %v2928_v6  }
  0x6d   :  { %864 = vperm.xlu0 %2516, %v834_v19  }
  0x70   :  { %502 = vperm.xlu1 %2514, %v2940_v8  }
  0x71   :  { %874 = vperm.xlu0 %2516, %v836_v20  }
  0x74   :  { %510 = vperm.xlu1 %2514, %v2952_v10  }
  0x75   :  { %2519 = vset.pattern.permute.xlu0 %v2844_v21 }
  0x76   :  { %910 = vperm.xlu0 %2519, %v2933_v7  }
  0x78   :  { %2517 = vset.pattern.permute.xlu1 %v2843_v17 }
  0x79   :  { %844 = vperm.xlu1 %2517, %v830_v22  }
  0x7a   :  { %922 = vperm.xlu0 %2519, %v2957_v11  }
  0x7d   :  { %849 = vperm.xlu1 %2517, %v831_v23  }
  0x7e   :  { %930 = vperm.xlu0 %2519, %v2964_v12  }
  0x81   :  { %859 = vperm.xlu1 %2517, %v833_v24  }
  0x82   :  { %2522 = vset.pattern.permute.xlu0 %v2845_v26 }
  0x83   :  { %72 = vperm.xlu0 %2522, %v2905_v0  }
  0x85   :  { %869 = vperm.xlu1 %2517, %v835_v25  }
  0x87   :  { %1031 = vperm.xlu0 %2522, %v2933_v7  }
  0x89   :  { %2518 = vset.pattern.permute.xlu1 %v2844_v21 }
  0x8a   :  { %906 = vperm.xlu1 %2518, %v2920_v4  }
  0x8b   :  { %1043 = vperm.xlu0 %2522, %v2957_v11  }
  0x8e   :  { %914 = vperm.xlu1 %2518, %v2945_v9  }
  0x8f   :  { %1051 = vperm.xlu0 %2522, %v2964_v12   ;;  %v137_v27 = vpop.permute.xlu0 %136 }
  0x90   :  { %v139_v28 = vmul.f32 %v137_v27, %v2905_v0 }
  0x92   :  { %2520 = vset.pattern.permute.xlu1 %v2846_v29 }
  0x93   :  { %2525 = vset.pattern.permute.xlu0 %v2833_v1  ;;  %143 = vperm.xlu1 %2520, %v139_v28   ;;  %v153_v30 = vpop.permute.xlu0 %152 }
  0x94   :  { %1079 = vperm.xlu0 %2525, %v2920_v4   ;;  %v155_v31 = vmul.f32 %v153_v30, %v2905_v0 }
  0x97   :  { %159 = vperm.xlu1 %2520, %v155_v31   ;;  %v169_v32 = vpop.permute.xlu0 %168 }
  0x98   :  { %1091 = vperm.xlu0 %2525, %v2928_v6   ;;  %v171_v33 = vmul.f32 %v169_v32, %v2905_v0 }
  0x9b   :  { %175 = vperm.xlu1 %2520, %v171_v33  }
  0x9c   :  { %1099 = vperm.xlu0 %2525, %v2940_v8  }
  0x9d   :  { %v3016_v34 = vpop.permute.xlu1 %82 }
  0x9f   :  { %2521 = vset.pattern.permute.xlu1 %v2844_v21 }
  0xa0   :  { %1107 = vperm.xlu0 %2525, %v2952_v10   ;;  %918 = vperm.xlu1 %2521, %v2928_v6  }
  0xa2   :  { %v3020_v35 = vpop.permute.xlu1 %93 }
  0xa4   :  { %2528 = vset.pattern.permute.xlu0 %v2837_v3  ;;  %926 = vperm.xlu1 %2521, %v2940_v8  }
  0xa5   :  { %1143 = vperm.xlu0 %2528, %v2933_v7  }
  0xa7   :  { %v3025_v36 = vpop.permute.xlu1 %108 }
  0xa8   :  { %934 = vperm.xlu1 %2521, %v2952_v10   ;;  %v3028_v37 = vpop.permute.xlu0 %311 }
  0xa9   :  { %1155 = vperm.xlu0 %2528, %v2957_v11  }
  0xac   :  { %2523 = vset.pattern.permute.xlu1 %v2846_v29  ;;  %v3032_v38 = vpop.permute.xlu1 %316  ;;  %v3034_v39 = vpop.permute.xlu0 %326 }
  0xad   :  { %1163 = vperm.xlu0 %2528, %v2964_v12   ;;  %979 = vperm.xlu1 %2523, %v2933_v7  }
  0xb0   :  { %v3038_v40 = vpop.permute.xlu1 %321  ;;  %v3040_v41 = vpop.permute.xlu0 %336 }
  0xb1   :  { %5474 = vst [vmem:[#allocation8_spill] sm:$0xff] %v3040_v41  ;;  %2529 = vset.pattern.permute.xlu0 %v2846_v29  ;;  %983 = vperm.xlu1 %2523, %v2945_v9  }
  0xb2   :  { %59 = vperm.xlu0 %2529, %v2905_v0  }
  0xb4   :  { %v3045_v42 = vpop.permute.xlu1 %331  ;;  %v3047_v43 = vpop.permute.xlu0 %346 }
  0xb5   :  { %5475 = vst [vmem:[#allocation9_spill] sm:$0xff] %v3047_v43  ;;  %991 = vperm.xlu1 %2523, %v2957_v11  }
  0xb6   :  { %975 = vperm.xlu0 %2529, %v2920_v4  }
  0xb8   :  { %v3051_v44 = vpop.permute.xlu1 %341 }
  0xb9   :  { %999 = vperm.xlu1 %2523, %v2964_v12   ;;  %v3054_v45 = vpop.permute.xlu0 %374 }
  0xba   :  { %987 = vperm.xlu0 %2529, %v2928_v6  }
  0xbd   :  { %2524 = vset.pattern.permute.xlu1 %v2845_v26  ;;  %v3057_v46 = vpop.permute.xlu1 %370  ;;  %v3059_v47 = vpop.permute.xlu0 %386 }
  0xbe   :  { %995 = vperm.xlu0 %2529, %v2940_v8   ;;  %1027 = vperm.xlu1 %2524, %v2920_v4  }
  0xc1   :  { %v3063_v48 = vpop.permute.xlu1 %378  ;;  %v3065_v49 = vpop.permute.xlu0 %394 }
  0xc2   :  { %1003 = vperm.xlu0 %2529, %v2952_v10   ;;  %1035 = vperm.xlu1 %2524, %v2945_v9  }
  0xc5   :  { %v3069_v50 = vpop.permute.xlu1 %382 }
  0xc6   :  { %v3071_v51 = vpop.permute.xlu0 %422  ;;  %1039 = vperm.xlu1 %2524, %v2928_v6   ;;  %1246 = vrot.lane.b32.xlu0 %v2920_v4, %s2834_s15 }
  0xc9   :  { %v3076_v52 = vpop.permute.xlu1 %390 }
  0xca   :  { %5476 = vst [vmem:[#allocation10_spill] sm:$0xff] %v3076_v52  ;;  %v3078_v53 = vpop.permute.xlu0 %434  ;;  %1047 = vperm.xlu1 %2524, %v2940_v8   ;;  %1250 = vrot.lane.b32.xlu0 %v2945_v9, %s2834_s15 }
  0xcd   :  { %v3083_v54 = vpop.permute.xlu1 %398 }
  0xce   :  { %5477 = vst [vmem:[#allocation11_spill] sm:$0xff] %v3083_v54  ;;  %v3085_v55 = vpop.permute.xlu0 %442  ;;  %1055 = vperm.xlu1 %2524, %v2952_v10   ;;  %1254 = vrot.lane.b32.xlu0 %v2957_v11, %s2834_s15 }
  0xcf   :  { %5478 = vst [vmem:[#allocation12_spill] sm:$0xff] %v3085_v55 }
  0xd2   :  { %v3090_v56 = vpop.permute.xlu0 %450  ;;  %2526 = vset.pattern.permute.xlu1 %v2833_v1  ;;  %v3093_v57 = vpop.permute.xlu1 %426  ;;  %1258 = vrot.lane.b32.xlu0 %v2964_v12, %s2834_s15 }
  0xd3   :  { %5479 = vst [vmem:[#allocation13_spill] sm:$0xff] %v3090_v56  ;;  %1083 = vperm.xlu1 %2526, %v2933_v7  }
  0xd6   :  { %v3098_v58 = vpop.permute.xlu1 %430 }
  0xd7   :  { %v3100_v59 = vpop.permute.xlu0 %486  ;;  %1087 = vperm.xlu1 %2526, %v2945_v9  }
  0xda   :  { %v3103_v60 = vpop.permute.xlu1 %438 }
  0xdb   :  { %1095 = vperm.xlu1 %2526, %v2957_v11   ;;  %v3106_v61 = vpop.permute.xlu0 %498 }
  0xde   :  { %v3108_v62 = vpop.permute.xlu1 %446 }
  0xdf   :  { %1103 = vperm.xlu1 %2526, %v2964_v12   ;;  %v3111_v63 = vpop.permute.xlu0 %506 }
  0xe3   :  { %2527 = vset.pattern.permute.xlu1 %v2837_v3  ;;  %v3114_v0 = vpop.permute.xlu1 %482 }
  0xe4   :  { %v3116_v1 = vpop.permute.xlu0 %839  ;;  %1139 = vperm.xlu1 %2527, %v2920_v4  }
  0xe5   :  { %5480 = vst [vmem:[#allocation14_spill] sm:$0xff] %v3116_v1 }
  0xe7   :  { %v3119_v2 = vpop.permute.xlu1 %490 }
  0xe8   :  { %v3121_v13 = vpop.permute.xlu0 %854  ;;  %1147 = vperm.xlu1 %2527, %v2945_v9  }
  0xe9   :  { %5481 = vst [vmem:[#allocation15_spill] sm:$0xff] %v3121_v13 }
  0xeb   :  { %v3124_v14 = vpop.permute.xlu1 %494 }
  0xec   :  { %5482 = vst [vmem:[#allocation16_spill] sm:$0xff] %v3124_v14  ;;  %v3126_v15 = vpop.permute.xlu0 %864  ;;  %1151 = vperm.xlu1 %2527, %v2928_v6  }
  0xed   :  { %5483 = vst [vmem:[#allocation17_spill] sm:$0xff] %v3126_v15 }
  0xef   :  { %v3129_v16 = vpop.permute.xlu1 %502 }
  0xf0   :  { %5484 = vst [vmem:[#allocation18_spill] sm:$0xff] %v3129_v16  ;;  %1159 = vperm.xlu1 %2527, %v2940_v8   ;;  %v3132_v3 = vpop.permute.xlu0 %874 }
  0xf1   :  { %5485 = vst [vmem:[#allocation19_spill] sm:$0xff] %v3132_v3 }
  0xf3   :  { %v3134_v17 = vpop.permute.xlu1 %510 }
  0xf4   :  { %5486 = vst [vmem:[#allocation20_spill] sm:$0xff] %v3134_v17  ;;  %1167 = vperm.xlu1 %2527, %v2952_v10  }
  0xf5   :  { %v3137_v18 = vpop.permute.xlu0 %910 }
  0xf6   :  { %5487 = vst [vmem:[#allocation21_spill] sm:$0xff] %v3137_v18 }
  0xf8   :  { %v3139_v19 = vpop.permute.xlu1 %844  ;;  %1248 = vrot.lane.b32.xlu1 %v2933_v7, %s2834_s15 }
  0xf9   :  { %5488 = vst [vmem:[#allocation22_spill] sm:$0xff] %v3139_v19  ;;  %v3143_v20 = vpop.permute.xlu0 %922  ;;  %2530 = vset.pattern.permute.xlu1 %v2846_v29 }
  0xfa   :  { %5489 = vst [vmem:[#allocation23_spill] sm:$0xff] %v3143_v20 }
  0xfc   :  { %v3146_v21 = vpop.permute.xlu1 %849  ;;  %1252 = vrot.lane.b32.xlu1 %v2928_v6, %s2834_s15 }
  0xfd   :  { %5490 = vst [vmem:[#allocation24_spill] sm:$0xff] %v3146_v21  ;;  %v3150_v22 = vpop.permute.xlu0 %930 }
  0xfe   :  { %5491 = vst [vmem:[#allocation25_spill] sm:$0xff] %v3150_v22 }
 0x100   :  { %v3152_v23 = vpop.permute.xlu1 %859  ;;  %1256 = vrot.lane.b32.xlu1 %v2940_v8, %s2834_s15 }
 0x101   :  { %5492 = vst [vmem:[#allocation26_spill] sm:$0xff] %v3152_v23 }
 0x102   :  { %v73_v24 = vpop.permute.xlu0 %72 }
 0x104   :  { %v3156_v25 = vpop.permute.xlu1 %869  ;;  %1260 = vrot.lane.b32.xlu1 %v2952_v10, %s2834_s15 }
 0x105   :  { %5493 = vst [vmem:[#allocation27_spill] sm:$0xff] %v3156_v25 }
 0x106   :  { %v3160_v26 = vpop.permute.xlu0 %1031 }
 0x107   :  { %5494 = vst [vmem:[#allocation28_spill] sm:$0xff] %v3160_v26 }
 0x109   :  { %v3162_v27 = vpop.permute.xlu1 %906 }
 0x10a   :  { %5495 = vst [vmem:[#allocation29_spill] sm:$0xff] %v3162_v27  ;;  %v3164_v28 = vpop.permute.xlu0 %1043 }
 0x10b   :  { %5496 = vst [vmem:[#allocation30_spill] sm:$0xff] %v3164_v28 }
 0x10d   :  { %v3166_v29 = vpop.permute.xlu1 %914 }
 0x10e   :  { %5497 = vst [vmem:[#allocation31_spill] sm:$0xff] %v3166_v29  ;;  %v3168_v30 = vpop.permute.xlu0 %1051  ;;  %v62_v29 = vlaneseq }
 0x10f   :  { %5498 = vst [vmem:[#allocation32_spill] sm:$0xff] %v3168_v30 }
 0x112   :  { %v144_v31 = vpop.permute.xlu1 %143 }
 0x113   :  { %v3170_v32 = vpop.permute.xlu0 %1079 }
 0x114   :  { %5499 = vst [vmem:[#allocation33_spill] sm:$0xff] %v3170_v32  ;;  %v63_v32 = vshrl.u32 %v62_v29, 7  ;;  %v54_v29 = vld [vmem:[%s5391_s1 + $0x2] sm:$0x1] }
 0x116   :  { %v160_v33 = vpop.permute.xlu1 %159  ;;  %v3192_v23 = vsub.s32 0, %v63_v32 }
 0x117   :  { %v3172_v5 = vpop.permute.xlu0 %1091 }
 0x118   :  { %5500 = vst [vmem:[#allocation34_spill] sm:$0xff] %v3172_v5  ;;  %5510 = vst [vmem:[#allocation44_spill] sm:$0xff] %v3192_v23 }
 0x11a   :  { %v176_v3 = vpop.permute.xlu1 %175 }
 0x11b   :  { %v3174_v22 = vpop.permute.xlu0 %1099 }
 0x11c   :  { %5501 = vst [vmem:[#allocation35_spill] sm:$0xff] %v3174_v22 }
 0x11f   :  { %v3176_v25 = vpop.permute.xlu1 %918  ;;  %v3178_v26 = vpop.permute.xlu0 %1107 }
 0x120   :  { %5502 = vst [vmem:[#allocation36_spill] sm:$0xff] %v3176_v25  ;;  %5503 = vst [vmem:[#allocation37_spill] sm:$0xff] %v3178_v26  ;;  %v52_v26 = vld [vmem:[%s5391_s1] sm:$0x1]  ;;  %v88_v25 = vrot.slane %v54_v29, %v3192_v23 }
 0x121   :  { %v156_v19 = vmul.f32 %v54_v29, %v52_v26 }
 0x122   :  { %v89_v15 = vsub.f32 %v3016_v34, %v88_v25 }
 0x123   :  { %v3180_v27 = vpop.permute.xlu1 %926 }
 0x124   :  { %5504 = vst [vmem:[#allocation38_spill] sm:$0xff] %v3180_v27  ;;  %v3182_v28 = vpop.permute.xlu0 %1143  ;;  %v53_v27 = vld [vmem:[%s5391_s1 + $0x1] sm:$0x1]  ;;  %v90_v34 = vmul.f32 %v89_v15, %v89_v15 }
 0x125   :  { %5505 = vst [vmem:[#allocation39_spill] sm:$0xff] %v3182_v28  ;;  %v65_v28 = vrot.slane %v52_v26, %v3192_v23  ;;  %v78_v32 = vrot.slane %v53_v27, %v3192_v23  ;;  %v140_v18 = vmul.f32 %v53_v27, %v52_v26 }
 0x127   :  { %v3184_v20 = vpop.permute.xlu1 %934  ;;  %v149_v56 = vrot.slane %v140_v18, %v3192_v23 }
 0x128   :  { %5506 = vst [vmem:[#allocation40_spill] sm:$0xff] %v3184_v20  ;;  %v3186_v30 = vpop.permute.xlu0 %1155 }
 0x129   :  { %5507 = vst [vmem:[#allocation41_spill] sm:$0xff] %v3186_v30  ;;  %v150_v15 = vadd.f32 %v149_v56, %v144_v31 }
 0x12c   :  { %v3188_v21 = vpop.permute.xlu1 %979  ;;  %v3190_v5 = vpop.permute.xlu0 %1163 }
 0x12d   :  { %5508 = vst [vmem:[#allocation42_spill] sm:$0xff] %v3188_v21  ;;  %5509 = vst [vmem:[#allocation43_spill] sm:$0xff] %v3190_v5  ;;  %v55_v21 = vld [vmem:[%s5391_s1 + $0x3] sm:$0x1] }
 0x12e   :  { %v99_v13 = vrot.slane %v55_v21, %v3192_v23  ;;  %v172_v17 = vmul.f32 %v55_v21, %v52_v26 }
 0x130   :  { %v3201_v20 = vpop.permute.xlu1 %983  ;;  %v100_v25 = vsub.f32 %v3020_v35, %v99_v13  ;;  %v188_v35 = vstv %s3218_s18 }
 0x131   :  { %5511 = vst [vmem:[#allocation45_spill] sm:$0xff] %v3201_v20  ;;  %v60_v30 = vpop.permute.xlu0 %59  ;;  %v79_v20 = vsub.f32 %v73_v24, %v78_v32  ;;  %v165_v24 = vrot.slane %v156_v19, %v3192_v23 }
 0x132   :  { %v3207_v5 = vadd.f32 %v65_v28, %v60_v30  ;;  %v69_v27 = vmul.f32 %v65_v28, %v60_v30  ;;  %v101_v26 = vmul.f32 %v100_v25, %v100_v25  ;;  %v241_v30 = vstv %s3224_s20 }
 0x133   :  { %v166_v21 = vadd.f32 %v165_v24, %v160_v33  ;;  %v195_v33 = vstv %s3228_s21 }
 0x134   :  { %v3210_v22 = vpop.permute.xlu1 %991  ;;  %2543 = vrcp.f32 %v3207_v5 }
 0x135   :  { %5512 = vst [vmem:[#allocation46_spill] sm:$0xff] %v3210_v22  ;;  %v80_v22 = vmul.f32 %v79_v20, %v79_v20  ;;  %v181_v20 = vrot.slane %v172_v17, %v3192_v23  ;;  %v3238_v18 = vpop.permute.xlu0 %975 }
 0x136   :  { %5515 = vst [vmem:[#allocation49_spill] sm:$0xff] %v3238_v18 }
 0x137   :  { %v91_v32 = vadd.f32 %v90_v34, %v80_v22  ;;  %v191_v22 = vstv %s3222_s19  ;;  %v182_v56 = vadd.f32 %v181_v20, %v176_v3 }
 0x138   :  { %v3220_v1 = vpop.permute.xlu1 %999 }
 0x139   :  { %5513 = vst [vmem:[#allocation47_spill] sm:$0xff] %v3220_v1  ;;  %v102_v1 = vadd.f32 %v101_v26, %v91_v32  ;;  %v3257_v23 = vpop.permute.xlu0 %987  ;;  %v248_v32 = vstv %s3236_s23 }
 0x13a   :  { %5517 = vst [vmem:[#allocation51_spill] sm:$0xff] %v3257_v23 }
 0x13d   :  { %v3233_v29 = vpop.permute.xlu1 %1027  ;;  %v3265_v14 = vpop.permute.xlu0 %995 }
 0x13e   :  { %5514 = vst [vmem:[#allocation48_spill] sm:$0xff] %v3233_v29  ;;  %v3240_v19 = vpop.eup %2543  ;;  %5520 = vst [vmem:[#allocation54_spill] sm:$0xff] %v3265_v14 }
 0x13f   :  { %v3244_v13 = vmul.f32 %v3240_v19, %v69_v27  ;;  %v116_v28 = vmul.f32 3.1415927, %v3240_v19  ;;  %v151_v17 = vmul.f32 %v3240_v19, %v150_v15  ;;  %v167_v34 = vmul.f32 %v3240_v19, %v166_v21 }
 0x140   :  { %v183_v27 = vmul.f32 %v3240_v19, %v182_v56  ;;  %v244_v15 = vstv %s3231_s22 }
 0x141   :  { %v3251_v29 = vpop.permute.xlu1 %1035  ;;  %v103_v31 = vsub.f32 0.0, %v3244_v13  ;;  %2545 = vrsqrt.f32 %v116_v28  ;;  %v131_v24 = vmul.f32 2.0, %v3244_v13  ;;  %v189_v18 = vsub.f32 %v151_v17, %v188_v35 }
 0x142   :  { %5516 = vst [vmem:[#allocation50_spill] sm:$0xff] %v3251_v29  ;;  %v192_v21 = vsub.f32 %v167_v34, %v191_v22  ;;  %v242_v43 = vsub.f32 %v151_v17, %v241_v30  ;;  %v196_v26 = vsub.f32 %v183_v27, %v195_v33  ;;  %v245_v55 = vsub.f32 %v167_v34, %v244_v15 }
 0x143   :  { %v104_v25 = vmul.f32 %v103_v31, %v102_v1  ;;  %v132_v54 = vmul.f32 %v131_v24, %v102_v1  ;;  %v190_v20 = vmul.f32 %v189_v18, %v189_v18  ;;  %v249_v56 = vsub.f32 %v183_v27, %v248_v32 }
 0x144   :  { %v193_v16 = vmul.f32 %v192_v21, %v192_v21  ;;  %v243_v52 = vmul.f32 %v242_v43, %v242_v43  ;;  %v197_v41 = vmul.f32 %v196_v26, %v196_v26  ;;  %v246_v23 = vmul.f32 %v245_v55, %v245_v55 }
 0x145   :  { %v3260_v29 = vpop.permute.xlu1 %1039  ;;  %v105_v3 = vmul.f32 1.442695, %v104_v25  ;;  %vm119_vm0 = vcmp.eq.f32.partialorder %v116_v28, inf  ;;  %v122_v30 = vand.u32 2147483648, %v116_v28  ;;  %v250_v24 = vmul.f32 %v249_v56, %v249_v56  ;;  %v3282_v25 = vpop.permute.xlu0 %1003 }
 0x146   :  { %5518 = vst [vmem:[#allocation52_spill] sm:$0xff] %v3260_v29  ;;  %v194_v31 = vadd.f32 %v193_v16, %v190_v20  ;;  %v247_v17 = vadd.f32 %v246_v23, %v243_v52  ;;  %vm121_vm1 = vcmp.eq.f32.partialorder %v116_v28, 0.0  ;;  %v2471_v16 = vld [vmem:[%s5391_s1 + $0x4] ss:$0 sm:$0xff]  ;;  %5522 = vst [vmem:[#allocation56_spill] sm:$0xff] %v3282_v25 }
 0x147   :  { %2547 = vpow2.f32 %v105_v3  ;;  %v115_v27 = vmul.f32 %v2471_v16, %v3025_v36  ;;  %v290_v26 = vmul.f32 6.2831855, %v3240_v19  ;;  %v133_v36 = vsub.f32 3.0, %v132_v54 }
 0x148   :  { %v198_v1 = vadd.f32 %v197_v41, %v194_v31  ;;  %v251_v55 = vadd.f32 %v250_v24, %v247_v17 }
 0x149   :  { %v3263_v35 = vpop.permute.xlu1 %1047 }
 0x14a   :  { %5519 = vst [vmem:[#allocation53_spill] sm:$0xff] %v3263_v35  ;;  %v3268_v33 = vmul.f32 %v198_v1, %v3207_v5  ;;  %v3280_v23 = vmul.f32 %v251_v55, %v3207_v5 }
 0x14b   :  { %v2546_v22 = vpop.eup %2545 }
 0x14c   :  { %v118_v18 = vmul.f32 %v2546_v22, %v116_v28  ;;  %vm201_vm2 = vcmp.lt.f32.partialorder %v3268_v33, 1e-08  ;;  %vm254_vm3 = vcmp.lt.f32.partialorder %v3280_v23, 1e-08 }
 0x14d   :  { %v3270_v43 = vpop.permute.xlu1 %1055  ;;  %v202_v52 = vsel %vm201_vm2, 1.0, %v3268_v33  ;;  %v255_v5 = vsel %vm254_vm3, 1.0, %v3280_v23 }
 0x14e   :  { %5521 = vst [vmem:[#allocation55_spill] sm:$0xff] %v3270_v43  ;;  %v120_v34 = vsel %vm119_vm0, %v116_v28, %v118_v18  ;;  %2549 = vrsqrt.f32 %v202_v52  ;;  %vm205_vm5 = vcmp.eq.f32.partialorder %v202_v52, inf  ;;  %v208_v18 = vand.u32 2147483648, %v202_v52 }
 0x14f   :  { %v123_v41 = vsel %vm121_vm1, %v122_v30, %v120_v34  ;;  %2551 = vrsqrt.f32 %v255_v5  ;;  %vm207_vm6 = vcmp.eq.f32.partialorder %v202_v52, 0.0  ;;  %vm258_vm7 = vcmp.eq.f32.partialorder %v255_v5, inf }
 0x150   :  { %v124_v15 = vmul.f32 %v123_v41, %v116_v28  ;;  %v1247_v28 = vpop.permute.xlu0 %1246  ;;  %vm260_vm8 = vcmp.eq.f32.partialorder %v255_v5, 0.0 }
 0x151   :  { %v2548_v21 = vpop.eup %2547  ;;  %v3304_v17 = vmul.f32 %v1247_v28, %v2920_v4 }
 0x152   :  { %v3285_v32 = vpop.permute.xlu1 %1083  ;;  %v125_v3 = vmul.f32 %v124_v15, %v115_v27  ;;  %v129_v20 = vmul.f32 %v2548_v21, %v115_v27 }
 0x153   :  { %5523 = vst [vmem:[#allocation57_spill] sm:$0xff] %v3285_v32  ;;  %1281 = vperm.xlu0 %2529, %v3304_v17  }
 0x154   :  { %v126_v31 = vmul.f32 %v2548_v21, %v125_v3  ;;  %v130_v56 = vmul.f32 %v129_v20, %v3244_v13  ;;  %v3299_v19 = vmul.f32 %v290_v26, %v129_v20  ;;  %v261_v21 = vand.u32 2147483648, %v255_v5 }
 0x156   :  { %v3293_v1 = vpop.permute.xlu1 %1087  ;;  %128 = vst.msk [vmem:[%s5396_s6] sm:$0xff] %vm127_vm4, %v126_v31  ;;  %v134_v22 = vmul.f32 %v133_v36, %v130_v56  ;;  %s3337_s6 = sld [smem:[#allocation4]] }
 0x157   :  { %5524 = vst [vmem:[#allocation58_spill] sm:$0xff] %v3293_v1 }
 0x158   :  { %v3301_v30 = vmul.f32 %v134_v22, %v124_v15  ;;  %v3308_v54 = vpop.eup %2549 }
 0x159   :  { %v204_v13 = vmul.f32 %v3308_v54, %v202_v52  ;;  %v3314_v34 = vpop.eup %2551 }
 0x15a   :  { %v3306_v24 = vpop.permute.xlu1 %1095  ;;  %v257_v15 = vmul.f32 %v3314_v34, %v255_v5 }
 0x15b   :  { %5525 = vst [vmem:[#allocation59_spill] sm:$0xff] %v3306_v24  ;;  %v206_v16 = vsel %vm205_vm5, %v202_v52, %v204_v13 }
 0x15c   :  { %v209_v41 = vsel %vm207_vm6, %v208_v18, %v206_v16  ;;  %v259_v20 = vsel %vm258_vm7, %v255_v5, %v257_v15  ;;  %s199_s28 = ssub.f32 0.0, %s3337_s6 }
 0x15d   :  { %v210_v27 = vmul.f32 0.3275911, %v209_v41  ;;  %v262_v26 = vsel %vm260_vm8, %v261_v21, %v259_v20  ;;  %v222_v28 = vsub.f32 0.0, %v209_v41 }
 0x15e   :  { %v3312_v55 = vpop.permute.xlu1 %1103  ;;  %v263_v56 = vmul.f32 0.3275911, %v262_v26  ;;  %v275_v16 = vsub.f32 0.0, %v262_v26 }
 0x15f   :  { %5526 = vst [vmem:[#allocation60_spill] sm:$0xff] %v3312_v55  ;;  %v211_v3 = vadd.f32 1.0, %v210_v27  ;;  %v223_v18 = vmul.f32 %v222_v28, %v209_v41 }
 0x160   :  { %v264_v36 = vadd.f32 1.0, %v263_v56  ;;  %v276_v21 = vmul.f32 %v275_v16, %v262_v26  ;;  %v1251_v56 = vpop.permute.xlu0 %1250 }
 0x161   :  { %2553 = vrcp.f32 %v211_v3  ;;  %v224_v15 = vmul.f32 1.442695, %v223_v18  ;;  %v3332_v26 = vmul.f32 %v1251_v56, %v2945_v9 }
 0x162   :  { %2555 = vrcp.f32 %v264_v36  ;;  %v277_v43 = vmul.f32 1.442695, %v276_v21 }
 0x163   :  { %v3317_v31 = vpop.permute.xlu1 %1139  ;;  %2557 = vpow2.f32 %v224_v15 }
 0x164   :  { %5527 = vst [vmem:[#allocation61_spill] sm:$0xff] %v3317_v31  ;;  %v1255_v24 = vpop.permute.xlu0 %1254  ;;  %2559 = vpow2.f32 %v277_v43 }
 0x167   :  { %v3319_v52 = vpop.permute.xlu1 %1147 }
 0x168   :  { %5528 = vst [vmem:[#allocation62_spill] sm:$0xff] %v3319_v52 }
 0x16b   :  { %v3321_v22 = vpop.permute.xlu1 %1151  ;;  %v2554_v13 = vpop.eup %2553 }
 0x16c   :  { %5529 = vst [vmem:[#allocation63_spill] sm:$0xff] %v3321_v22  ;;  %v213_v55 = vmul.f32 1.0614054, %v2554_v13  ;;  %v2556_v5 = vpop.eup %2555 }
 0x16d   :  { %v266_v3 = vmul.f32 1.0614054, %v2556_v5 }
 0x16e   :  { %v214_v27 = vadd.f32 -1.4531521, %v213_v55 }
 0x16f   :  { %v3323_v1 = vpop.permute.xlu1 %1159  ;;  %v267_v36 = vadd.f32 -1.4531521, %v266_v3  ;;  %v2558_v3 = vpop.eup %2557 }
 0x170   :  { %5530 = vst [vmem:[#allocation64_spill] sm:$0xff] %v3323_v1  ;;  %v215_v20 = vmul.f32 %v2554_v13, %v214_v27 }
 0x171   :  { %v268_v35 = vmul.f32 %v2556_v5, %v267_v36 }
 0x172   :  { %v216_v52 = vadd.f32 1.4214138, %v215_v20  ;;  %v1259_v20 = vpop.permute.xlu0 %1258 }
 0x173   :  { %v3325_v31 = vpop.permute.xlu1 %1167  ;;  %v269_v55 = vadd.f32 1.4214138, %v268_v35  ;;  %v3342_v35 = vmul.f32 %v1255_v24, %v2957_v11  ;;  %v3352_v24 = vmul.f32 %v1259_v20, %v2964_v12 }
 0x174   :  { %5531 = vst [vmem:[#allocation65_spill] sm:$0xff] %v3325_v31  ;;  %v217_v22 = vmul.f32 %v2554_v13, %v216_v52 }
 0x175   :  { %v270_v16 = vmul.f32 %v2556_v5, %v269_v55  ;;  %5532 = vst [vmem:[#allocation66_spill] sm:$0xff] %v3352_v24 }
 0x176   :  { %v218_v1 = vadd.f32 -0.28449672, %v217_v22 }
 0x177   :  { %v1249_v41 = vpop.permute.xlu1 %1248  ;;  %v271_v21 = vadd.f32 -0.28449672, %v270_v16 }
 0x178   :  { %v3328_v28 = vmul.f32 %v1249_v41, %v2933_v7  ;;  %v219_v18 = vmul.f32 %v2554_v13, %v218_v1 }
 0x179   :  { %v272_v1 = vmul.f32 %v2556_v5, %v271_v21 }
 0x17a   :  { %1286 = vperm.xlu1 %2530, %v3328_v28   ;;  %v220_v52 = vadd.f32 0.2548296, %v219_v18 }
 0x17b   :  { %v1253_v27 = vpop.permute.xlu1 %1252  ;;  %v273_v41 = vadd.f32 0.2548296, %v272_v1 }
 0x17c   :  { %v3335_v15 = vmul.f32 %v1253_v27, %v2928_v6  ;;  %v221_v43 = vmul.f32 %v2554_v13, %v220_v52  ;;  %v231_v13 = vmul.f32 0.33333334, %v3268_v33  ;;  %v2560_v27 = vpop.eup %2559 }
 0x17d   :  { %v274_v18 = vmul.f32 %v2556_v5, %v273_v41  ;;  %v234_v5 = vstv %s199_s28 }
 0x17e   :  { %1291 = vperm.xlu1 %2530, %v3332_v26   ;;  %1296 = vperm.xlu0 %2529, %v3335_v15   ;;  %v226_v36 = vmul.f32 %v2558_v3, %v221_v43  ;;  %v284_v3 = vmul.f32 0.33333334, %v3280_v23 }
 0x17f   :  { %v1257_v22 = vpop.permute.xlu1 %1256  ;;  %v279_v43 = vmul.f32 %v2560_v27, %v274_v18 }
 0x180   :  { %v3347_v56 = vmul.f32 %v1257_v22, %v2940_v8  ;;  %v227_v55 = vsub.f32 1.0, %v226_v36  ;;  %v232_v22 = vsub.f32 1.0, %v231_v13 }
 0x181   :  { %v280_v20 = vsub.f32 1.0, %v279_v43 }
 0x182   :  { %1301 = vperm.xlu1 %2530, %v3342_v35   ;;  %1306 = vperm.xlu0 %2529, %v3347_v56   ;;  %v228_v21 = vmul.f32 0.88622695, %v227_v55  ;;  %v287_v55 = vstv %s252_s29 }
 0x183   :  { %v1261_v16 = vpop.permute.xlu1 %1260  ;;  %v281_v41 = vmul.f32 0.88622695, %v280_v20 }
 0x184   :  { %v3356_v52 = vmul.f32 %v1261_v16, %v2952_v10  ;;  %v230_v1 = vmul.f32 %v3308_v54, %v228_v21  ;;  %v285_v16 = vsub.f32 1.0, %v284_v3 }
 0x185   :  { %v283_v18 = vmul.f32 %v3314_v34, %v281_v41 }
 0x186   :  { %1311 = vperm.xlu1 %2530, %v3352_v24   ;;  %1316 = vperm.xlu0 %2529, %v3356_v52   ;;  %v233_v36 = vsel %vm201_vm2, %v232_v22, %v230_v1 }
 0x187   :  { %v235_v54 = vmul.f32 %v234_v5, %v233_v36  ;;  %v286_v13 = vsel %vm254_vm3, %v285_v16, %v283_v18 }
 0x188   :  { %v288_v27 = vmul.f32 %v287_v55, %v286_v13 }
 0x18a   :  { %1339 = vrot.lane.b32.xlu1 %v2920_v4, %s2836_s16  ;;  %1341 = vrot.lane.b32.xlu0 %v2933_v7, %s2836_s16  ;;  %v289_v33 = vadd.f32 %v288_v27, %v235_v54 }
 0x18c   :  { %v292_v21 = vmul.f32 %v3299_v19, %v289_v33 }
 0x18e   :  { %1343 = vrot.lane.b32.xlu1 %v2945_v9, %s2836_s16  ;;  %1345 = vrot.lane.b32.xlu0 %v2928_v6, %s2836_s16  ;;  %v293_v34 = vadd.f32 %v292_v21, %v3301_v30 }
 0x190   :  { %294 = vst.msk [vmem:[%s5397_s7] sm:$0xff] %vm127_vm4, %v293_v34 }
 0x192   :  { %1347 = vrot.lane.b32.xlu1 %v2957_v11, %s2836_s16  ;;  %1349 = vrot.lane.b32.xlu0 %v2940_v8, %s2836_s16 }
 0x196   :  { %1351 = vrot.lane.b32.xlu1 %v2964_v12, %s2836_s16  ;;  %1353 = vrot.lane.b32.xlu0 %v2952_v10, %s2836_s16 }
 0x1d2   :  { %v3391_v23 = vpop.permute.xlu0 %1281 }
 0x1d3   :  { %5533 = vst [vmem:[#allocation67_spill] sm:$0xff] %v3391_v23 }
 0x1f9   :  { %v3393_v19 = vpop.permute.xlu1 %1286 }
 0x1fa   :  { %5534 = vst [vmem:[#allocation68_spill] sm:$0xff] %v3393_v19 }
 0x1fd   :  { %v3395_v43 = vpop.permute.xlu0 %1296  ;;  %v3397_v1 = vpop.permute.xlu1 %1291 }
 0x1fe   :  { %5535 = vst [vmem:[#allocation69_spill] sm:$0xff] %v3395_v43  ;;  %5536 = vst [vmem:[#allocation70_spill] sm:$0xff] %v3397_v1 }
 0x201   :  { %v3399_v30 = vpop.permute.xlu0 %1306  ;;  %v3401_v22 = vpop.permute.xlu1 %1301 }
 0x202   :  { %5537 = vst [vmem:[#allocation71_spill] sm:$0xff] %v3399_v30  ;;  %5538 = vst [vmem:[#allocation72_spill] sm:$0xff] %v3401_v22 }
 0x205   :  { %v3403_v20 = vpop.permute.xlu0 %1316  ;;  %v3405_v3 = vpop.permute.xlu1 %1311 }
 0x206   :  { %5539 = vst [vmem:[#allocation73_spill] sm:$0xff] %v3403_v20  ;;  %5540 = vst [vmem:[#allocation74_spill] sm:$0xff] %v3405_v3 }
 0x209   :  { %v1342_v5 = vpop.permute.xlu0 %1341  ;;  %v1340_v36 = vpop.permute.xlu1 %1339 }
 0x20a   :  { %v3408_v41 = vmul.f32 %v1342_v5, %v2933_v7  ;;  %v3411_v55 = vmul.f32 %v1340_v36, %v2920_v4 }
 0x20c   :  { %5541 = vst [vmem:[#allocation75_spill] sm:$0xff] %v3411_v55  ;;  %1379 = vperm.xlu0 %2529, %v3408_v41   ;;  %1374 = vperm.xlu1 %2530, %v3411_v55  }
 0x20d   :  { %v1346_v18 = vpop.permute.xlu0 %1345  ;;  %v1344_v16 = vpop.permute.xlu1 %1343 }
 0x20e   :  { %v3416_v54 = vmul.f32 %v1346_v18, %v2928_v6  ;;  %v3419_v13 = vmul.f32 %v1344_v16, %v2945_v9 }
 0x210   :  { %5542 = vst [vmem:[#allocation76_spill] sm:$0xff] %v3419_v13  ;;  %1389 = vperm.xlu0 %2529, %v3416_v54   ;;  %1384 = vperm.xlu1 %2530, %v3419_v13  }
 0x211   :  { %v1350_v27 = vpop.permute.xlu0 %1349  ;;  %v1348_v33 = vpop.permute.xlu1 %1347 }
 0x212   :  { %v3424_v21 = vmul.f32 %v1350_v27, %v2940_v8  ;;  %v3427_v34 = vmul.f32 %v1348_v33, %v2957_v11 }
 0x214   :  { %5543 = vst [vmem:[#allocation77_spill] sm:$0xff] %v3427_v34  ;;  %1399 = vperm.xlu0 %2529, %v3424_v21   ;;  %1394 = vperm.xlu1 %2530, %v3427_v34  }
 0x215   :  { %v1354_v5 = vpop.permute.xlu0 %1353  ;;  %v1352_v36 = vpop.permute.xlu1 %1351 }
 0x216   :  { %v3432_v18 = vmul.f32 %v1354_v5, %v2952_v10  ;;  %v3435_v16 = vmul.f32 %v1352_v36, %v2964_v12 }
 0x218   :  { %5544 = vst [vmem:[#allocation78_spill] sm:$0xff] %v3435_v16  ;;  %1409 = vperm.xlu0 %2529, %v3432_v18   ;;  %1404 = vperm.xlu1 %2530, %v3435_v16  }
 0x21c   :  { %1434 = vrot.lane.b32.xlu0 %v2933_v7, %s2838_s0  ;;  %1432 = vrot.lane.b32.xlu1 %v2920_v4, %s2838_s0 }
 0x220   :  { %1438 = vrot.lane.b32.xlu0 %v2928_v6, %s2838_s0  ;;  %1436 = vrot.lane.b32.xlu1 %v2945_v9, %s2838_s0 }
 0x224   :  { %1442 = vrot.lane.b32.xlu0 %v2940_v8, %s2838_s0  ;;  %1440 = vrot.lane.b32.xlu1 %v2957_v11, %s2838_s0  ;;  %v3470_v11 = vld [vmem:[%s5393_s3 + $0x9] ss:$0 sm:$0xff] }
 0x225   :  { %v3504_v20 = vadd.f32 %v3470_v11, %v3045_v42  ;;  %v3526_v43 = vadd.f32 %v3470_v11, %v3028_v37  ;;  %v3558_v31 = vadd.f32 %v3470_v11, %v3051_v44 }
 0x228   :  { %1446 = vrot.lane.b32.xlu0 %v2952_v10, %s2838_s0  ;;  %1444 = vrot.lane.b32.xlu1 %v2964_v12, %s2838_s0 }
 0x28b   :  { %v3455_v27 = vpop.permute.xlu0 %1379  ;;  %v3457_v33 = vpop.permute.xlu1 %1374 }
 0x28c   :  { %5545 = vst [vmem:[#allocation79_spill] sm:$0xff] %v3455_v27  ;;  %5546 = vst [vmem:[#allocation80_spill] sm:$0xff] %v3457_v33  ;;  %v3478_v33 = vadd.f32 %v3470_v11, %v3032_v38 }
 0x28e   :  { %2561 = vrcp.f32 %v3478_v33 }
 0x28f   :  { %v3459_v5 = vpop.permute.xlu0 %1389  ;;  %v3461_v36 = vpop.permute.xlu1 %1384  ;;  %2563 = vrcp.f32 %v3504_v20 }
 0x290   :  { %5547 = vst [vmem:[#allocation81_spill] sm:$0xff] %v3459_v5  ;;  %5548 = vst [vmem:[#allocation82_spill] sm:$0xff] %v3461_v36  ;;  %2565 = vrcp.f32 %v3526_v43 }
 0x291   :  { %2567 = vrcp.f32 %v3558_v31 }
 0x293   :  { %v3463_v3 = vpop.permute.xlu0 %1399  ;;  %v3465_v8 = vpop.permute.xlu1 %1394 }
 0x294   :  { %5549 = vst [vmem:[#allocation83_spill] sm:$0xff] %v3463_v3  ;;  %5550 = vst [vmem:[#allocation84_spill] sm:$0xff] %v3465_v8  ;;  %v3484_v8 = vld [vmem:[%s5393_s3 + $0xb] ss:$0 sm:$0xff]  ;;  %v3489_v3 = vld [vmem:[%s5393_s3 + $0xc] ss:$0 sm:$0xff] }
 0x295   :  { %v406_v22 = vsub.f32 %v3054_v45, %v3484_v8  ;;  %v458_v30 = vsub.f32 %v3093_v57, %v3489_v3  ;;  %v461_v1 = vsub.f32 %v3103_v60, %v3489_v3 }
 0x297   :  { %v3472_v10 = vpop.permute.xlu0 %1409  ;;  %v3474_v12 = vpop.permute.xlu1 %1404  ;;  %v466_v19 = vmul.f32 %v458_v30, %v458_v30  ;;  %v3544_v30 = vld [vmem:[%s5392_s2 + $0x20] sm:$0xff] }
 0x298   :  { %5551 = vst [vmem:[#allocation85_spill] sm:$0xff] %v3472_v10  ;;  %5552 = vst [vmem:[#allocation86_spill] sm:$0xff] %v3474_v12  ;;  %v3494_v12 = vld [vmem:[%s5393_s3 + $0xd] ss:$0 sm:$0xff] }
 0x29b   :  { %v1435_v5 = vpop.permute.xlu0 %1434  ;;  %v1433_v27 = vpop.permute.xlu1 %1432 }
 0x29c   :  { %v3497_v10 = vmul.f32 %v1435_v5, %v2933_v7  ;;  %v3500_v36 = vmul.f32 %v1433_v27, %v2920_v4  ;;  %v409_v7 = vsub.f32 %v3059_v47, %v3484_v8  ;;  %v518_v4 = vsub.f32 %v3100_v59, %v3494_v12 }
 0x29d   :  { %v414_v47 = vmul.f32 %v406_v22, %v406_v22 }
 0x29e   :  { %5553 = vst [vmem:[#allocation87_spill] sm:$0xff] %v3500_v36  ;;  %1472 = vperm.xlu0 %2529, %v3497_v10   ;;  %1467 = vperm.xlu1 %2530, %v3500_v36   ;;  %v417_v59 = vmul.f32 %v409_v7, %v409_v7  ;;  %v526_v60 = vmul.f32 %v518_v4, %v518_v4 }
 0x29f   :  { %v1439_v27 = vpop.permute.xlu0 %1438  ;;  %v1437_v5 = vpop.permute.xlu1 %1436  ;;  %v457_v4 = vsub.f32 %v3071_v51, %v3489_v3  ;;  %v3565_v51 = vld [vmem:[%s5392_s2 + $0x38] sm:$0xff] }
 0x2a0   :  { %v3519_v45 = vmul.f32 %v1439_v27, %v2928_v6  ;;  %v3522_v57 = vmul.f32 %v1437_v5, %v2945_v9  ;;  %v469_v27 = vmul.f32 %v461_v1, %v461_v1  ;;  %v521_v9 = vsub.f32 %v3106_v61, %v3494_v12  ;;  %v3536_v5 = vld [vmem:[%s5392_s2 + $0x28] sm:$0xff]  ;;  %v2562_v61 = vpop.eup %2561 }
 0x2a1   :  { %v474_v1 = vadd.f32 %v466_v19, %v414_v47 }
 0x2a2   :  { %5554 = vst [vmem:[#allocation88_spill] sm:$0xff] %v3522_v57  ;;  %1482 = vperm.xlu0 %2529, %v3519_v45   ;;  %1477 = vperm.xlu1 %2530, %v3522_v57   ;;  %v477_v25 = vadd.f32 %v469_v27, %v417_v59  ;;  %v529_v32 = vmul.f32 %v521_v9, %v521_v9  ;;  %v5416_v57 = vmov 5  }
 0x2a3   :  { %v1443_v23 = vpop.permute.xlu0 %1442  ;;  %v1441_v6 = vpop.permute.xlu1 %1440  ;;  %v534_v29 = vadd.f32 %v526_v60, %v474_v1  ;;  %v517_v59 = vsub.f32 %v3114_v0, %v3494_v12  ;;  %v3582_v27 = vadd.f32 %v3470_v11, %v3038_v40  ;;  %v411_v9 = vsub.f32 %v3065_v49, %v3484_v8 }
 0x2a4   :  { %v3539_v22 = vmul.f32 %v3536_v5, %v1443_v23  ;;  %v3547_v7 = vmul.f32 %v3544_v30, %v1441_v6  ;;  %v542_v23 = vmul.f32 %v3470_v11, %v3032_v38  ;;  %v405_v6 = vsub.f32 %v3057_v46, %v3484_v8  ;;  %v3573_v38 = vld [vmem:[%s5392_s2 + $0x30] sm:$0xff] }
 0x2a5   :  { %v465_v1 = vmul.f32 %v457_v4, %v457_v4  ;;  %v545_v0 = vmul.f32 %v3470_v11, %v3045_v42  ;;  %v541_v49 = vmul.f32 %v3470_v11, %v3028_v37  ;;  %v3599_v4 = vadd.f32 %v3470_v11, %v3034_v39 }
 0x2a6   :  { %5555 = vst [vmem:[#allocation89_spill] sm:$0xff] %v3547_v7  ;;  %1492 = vperm.xlu0 %2529, %v3539_v22   ;;  %1487 = vperm.xlu1 %2530, %v3547_v7   ;;  %v550_v60 = vmul.f32 %v2562_v61, %v542_v23  ;;  %v463_v61 = vsub.f32 %v3108_v62, %v3489_v3  ;;  %2569 = vrcp.f32 %v3582_v27  ;;  %v5558_v42 = vmov 4  }
 0x2a7   :  { %v1447_v19 = vpop.permute.xlu0 %1446  ;;  %v1445_v47 = vpop.permute.xlu1 %1444  ;;  %v413_v23 = vmul.f32 %v405_v6, %v405_v6  ;;  %2571 = vrcp.f32 %v3599_v4 }
 0x2a8   :  { %v3568_v14 = vmul.f32 %v3565_v51, %v1447_v19  ;;  %v3576_v46 = vmul.f32 %v3573_v38, %v1445_v47  ;;  %v2564_v19 = vpop.eup %2563  ;;  %v3588_v7 = vmul.f32 %v550_v60, %v534_v29  ;;  %v537_v47 = vadd.f32 %v529_v32, %v477_v25 }
 0x2a9   :  { %v553_v29 = vmul.f32 %v2564_v19, %v545_v0  ;;  %v419_v60 = vmul.f32 %v411_v9, %v411_v9  ;;  %v473_v62 = vadd.f32 %v465_v1, %v413_v23  ;;  %v2566_v6 = vpop.eup %2565  ;;  %v459_v25 = vsub.f32 %v3098_v58, %v3489_v3 }
 0x2aa   :  { %5556 = vst [vmem:[#allocation90_spill] sm:$0xff] %v3568_v14  ;;  %5557 = vst [vmem:[#allocation91_spill] sm:$0xff] %v3576_v46  ;;  %1502 = vperm.xlu0 %2529, %v3568_v14   ;;  %1497 = vperm.xlu1 %2530, %v3576_v46   ;;  %v525_v46 = vmul.f32 %v517_v59, %v517_v59  ;;  %vm566_vm9 = vcmp.lt.f32.partialorder %v3588_v7, 1e-08  ;;  %v471_v37 = vmul.f32 %v463_v61, %v463_v61  ;;  %v3612_v59 = vld [vmem:[%s5392_s2] sm:$0xff] }
 0x2ab   :  { %v523_v32 = vsub.f32 %v3111_v63, %v3494_v12  ;;  %v3616_v9 = vmul.f32 %v553_v29, %v537_v47  ;;  %v407_v58 = vsub.f32 %v3063_v48, %v3484_v8  ;;  %v519_v63 = vsub.f32 %v3119_v2, %v3494_v12  ;;  %v3633_v48 = vld [vmem:[%s5392_s2 + $0x18] sm:$0xff]  ;;  %v3639_v2 = vld [vmem:[%s5392_s2 + $0x10] sm:$0xff] }
 0x2ac   :  { %v533_v1 = vadd.f32 %v525_v46, %v473_v62  ;;  %v549_v19 = vmul.f32 %v2566_v6, %v541_v49  ;;  %v460_v61 = vsub.f32 %v3078_v53, %v3489_v3  ;;  %v3628_v0 = vsel %vm566_vm9, 1.0, %v3588_v7  ;;  %v5559_v46 = vld [vmem:[#allocation16_spill] sm:$0xff] }
 0x2ad   :  { %v467_v23 = vmul.f32 %v459_v25, %v459_v25  ;;  %v479_v47 = vadd.f32 %v471_v37, %v419_v60  ;;  %v531_v29 = vmul.f32 %v523_v32, %v523_v32  ;;  %v408_v53 = vsub.f32 %v3069_v50, %v3484_v8  ;;  %v2568_v25 = vpop.eup %2567 }
 0x2ae   :  { %2532 = vset.pattern.permute.xlu0 %v5416_v57  ;;  %2531 = vset.pattern.permute.xlu1 %v5558_v42  ;;  %vm569_vm10 = vcmp.lt.f32.partialorder %v3616_v9, 1e-08  ;;  %v520_v49 = vsub.f32 %v5559_v46, %v3494_v12  ;;  %v415_v60 = vmul.f32 %v407_v58, %v407_v58  ;;  %2573 = vrsqrt.f32 %v3628_v0 }
 0x2af   :  { %1578 = vperm.xlu0 %2532, %v3612_v59   ;;  %1526 = vperm.xlu1 %2531, %v3612_v59   ;;  %v3648_v62 = vmul.f32 %v549_v19, %v533_v1  ;;  %v527_v6 = vmul.f32 %v519_v63, %v519_v63  ;;  %v468_v37 = vmul.f32 %v460_v61, %v460_v61  ;;  %v3655_v50 = vsel %vm569_vm10, 1.0, %v3616_v9 }
 0x2b0   :  { %v547_v32 = vmul.f32 %v3470_v11, %v3051_v44  ;;  %v475_v57 = vadd.f32 %v467_v23, %v415_v60  ;;  %v539_v36 = vadd.f32 %v531_v29, %v479_v47  ;;  %v2570_v58 = vpop.eup %2569  ;;  %v416_v1 = vmul.f32 %v408_v53, %v408_v53 }
 0x2b1   :  { %v528_v19 = vmul.f32 %v520_v49, %v520_v49  ;;  %v543_v63 = vmul.f32 %v3470_v11, %v3038_v40  ;;  %vm565_vm11 = vcmp.lt.f32.partialorder %v3648_v62, 1e-08  ;;  %v544_v44 = vmul.f32 %v3470_v11, %v3034_v39  ;;  %v2572_v47 = vpop.eup %2571 }
 0x2b2   :  { %v555_v61 = vmul.f32 %v2568_v25, %v547_v32  ;;  %v535_v46 = vadd.f32 %v527_v6, %v475_v57  ;;  %v476_v23 = vadd.f32 %v468_v37, %v416_v1  ;;  %2575 = vrsqrt.f32 %v3655_v50  ;;  %v3687_v25 = vld [vmem:[%s5392_s2 + $0x8] sm:$0xff] }
 0x2b3   :  { %1590 = vperm.xlu0 %2532, %v3633_v48   ;;  %1534 = vperm.xlu1 %2531, %v3639_v2   ;;  %v551_v29 = vmul.f32 %v2570_v58, %v543_v63  ;;  %v3672_v40 = vsel %vm565_vm11, 1.0, %v3648_v62  ;;  %v552_v39 = vmul.f32 %v2572_v47, %v544_v44  ;;  %v5564_v37 = vld [vmem:[#allocation8_spill] sm:$0xff]  ;;  %vm590_vm15 = vcmp.eq.f32.partialorder %v3628_v0, inf }
 0x2b4   :  { %v3665_v60 = vmul.f32 %v555_v61, %v539_v36  ;;  %v536_v53 = vadd.f32 %v528_v19, %v476_v23  ;;  %2577 = vrsqrt.f32 %v3672_v40  ;;  %v5418_v36 = vmov 6  }
 0x2b5   :  { %v3674_v57 = vmul.f32 %v551_v29, %v535_v46  ;;  %v3693_v32 = vadd.f32 %v3470_v11, %v5564_v37  ;;  %v5565_v19 = vmov 5   ;;  %v5567_v46 = vld [vmem:[#allocation12_spill] sm:$0xff]  ;;  %v593_v47 = vand.u32 2147483648, %v3628_v0 }
 0x2b6   :  { %5560 = vst [vmem:[#allocation16_spill] sm:$0xff] %v3665_v60  ;;  %vm571_vm12 = vcmp.lt.f32.partialorder %v3665_v60, 1e-08  ;;  %v3682_v6 = vmul.f32 %v552_v39, %v536_v53  ;;  %v462_v44 = vsub.f32 %v5567_v46, %v3489_v3  ;;  %vm592_vm0 = vcmp.eq.f32.partialorder %v3628_v0, 0.0 }
 0x2b7   :  { %1598 = vperm.xlu0 %2532, %v3536_v5   ;;  %1538 = vperm.xlu1 %2531, %v3633_v48   ;;  %5561 = vst [vmem:[#allocation92_spill] sm:$0xff] %v3674_v57  ;;  %vm567_vm13 = vcmp.lt.f32.partialorder %v3674_v57, 1e-08  ;;  %v3700_v1 = vsel %vm571_vm12, 1.0, %v3665_v60  ;;  %vm611_vm1 = vcmp.eq.f32.partialorder %v3655_v50, inf  ;;  %v614_v34 = vand.u32 2147483648, %v3655_v50 }
 0x2b8   :  { %v3676_v49 = vpop.eup %2573  ;;  %5563 = vst [vmem:[#allocation94_spill] sm:$0xff] %v3682_v6  ;;  %v3708_v61 = vsel %vm567_vm13, 1.0, %v3674_v57  ;;  %vm568_vm14 = vcmp.lt.f32.partialorder %v3682_v6, 1e-08  ;;  %2579 = vrsqrt.f32 %v3700_v1  ;;  %v470_v16 = vmul.f32 %v462_v44, %v462_v44 }
 0x2b9   :  { %5562 = vst [vmem:[#allocation93_spill] sm:$0xff] %v3676_v49  ;;  %v589_v58 = vmul.f32 %v3676_v49, %v3628_v0  ;;  %2581 = vrcp.f32 %v3693_v32  ;;  %v3726_v53 = vsel %vm568_vm14, 1.0, %v3682_v6  ;;  %vm613_vm2 = vcmp.eq.f32.partialorder %v3655_v50, 0.0  ;;  %v5574_v6 = vld [vmem:[#allocation11_spill] sm:$0xff] }
 0x2ba   :  { %2583 = vrsqrt.f32 %v3708_v61  ;;  %vm583_vm3 = vcmp.eq.f32.partialorder %v3672_v40, inf  ;;  %vm585_vm4 = vcmp.eq.f32.partialorder %v3672_v40, 0.0  ;;  %v412_v57 = vsub.f32 %v5574_v6, %v3484_v8  ;;  %v5578_v6 = vld [vmem:[#allocation20_spill] sm:$0xff] }
 0x2bb   :  { %1606 = vperm.xlu0 %2532, %v3565_v51   ;;  %1546 = vperm.xlu1 %2531, %v3536_v5   ;;  %v591_v23 = vsel %vm590_vm15, %v3628_v0, %v589_v58  ;;  %v5569_v58 = vld [vmem:[#allocation10_spill] sm:$0xff]  ;;  %2585 = vrsqrt.f32 %v3726_v53  ;;  %vm625_vm5 = vcmp.eq.f32.partialorder %v3700_v1, inf  ;;  %vm597_vm6 = vcmp.eq.f32.partialorder %v3708_v61, inf }
 0x2bc   :  { %v3703_v63 = vpop.eup %2575  ;;  %v3735_v46 = vsel %vm592_vm0, %v593_v47, %v591_v23  ;;  %vm627_vm7 = vcmp.eq.f32.partialorder %v3700_v1, 0.0  ;;  %vm599_vm15 = vcmp.eq.f32.partialorder %v3708_v61, 0.0  ;;  %vm604_vm0 = vcmp.eq.f32.partialorder %v3726_v53, inf }
 0x2bd   :  { %5566 = vst [vmem:[#allocation8_spill] sm:$0xff] %v3703_v63  ;;  %v610_v29 = vmul.f32 %v3703_v63, %v3655_v50  ;;  %v638_v49 = vmul.f32 0.3275911, %v3735_v46 }
 0x2be   :  { %v3731_v39 = vpop.eup %2577 }
 0x2bf   :  { %2535 = vset.pattern.permute.xlu0 %v5418_v36  ;;  %1554 = vperm.xlu1 %2531, %v3565_v51   ;;  %5568 = vst [vmem:[#allocation12_spill] sm:$0xff] %v3731_v39  ;;  %v5570_v36 = vld [vmem:[#allocation18_spill] sm:$0xff]  ;;  %v612_v0 = vsel %vm611_vm1, %v3655_v50, %v610_v29  ;;  %v582_v13 = vmul.f32 %v3731_v39, %v3672_v40  ;;  %v646_v14 = vadd.f32 1.0, %v638_v49  ;;  %vm606_vm1 = vcmp.eq.f32.partialorder %v3726_v53, 0.0 }
 0x2c0   :  { %1634 = vperm.xlu0 %2535, %v3687_v25   ;;  %v522_v63 = vsub.f32 %v5570_v36, %v3494_v12  ;;  %v3750_v44 = vsel %vm613_vm2, %v614_v34, %v612_v0  ;;  %v546_v29 = vmul.f32 %v3470_v11, %v5564_v37  ;;  %v586_v37 = vand.u32 2147483648, %v3672_v40 }
 0x2c1   :  { %v584_v50 = vsel %vm583_vm3, %v3672_v40, %v582_v13 }
 0x2c2   :  { %v530_v36 = vmul.f32 %v522_v63, %v522_v63  ;;  %v3752_v47 = vpop.eup %2579  ;;  %v641_v63 = vmul.f32 0.3275911, %v3750_v44  ;;  %v3772_v13 = vsel %vm585_vm4, %v586_v37, %v584_v50  ;;  %v420_v50 = vmul.f32 %v412_v57, %v412_v57 }
 0x2c3   :  { %2533 = vset.pattern.permute.xlu1 %v5565_v19  ;;  %v410_v19 = vsub.f32 %v5569_v58, %v3484_v8  ;;  %5571 = vst [vmem:[#allocation10_spill] sm:$0xff] %v3752_v47  ;;  %v5572_v58 = vld [vmem:[#allocation9_spill] sm:$0xff] }
 0x2c4   :  { %1646 = vperm.xlu0 %2535, %v3544_v30   ;;  %1582 = vperm.xlu1 %2533, %v3687_v25   ;;  %v3758_v39 = vadd.f32 %v3470_v11, %v5572_v58  ;;  %v649_v40 = vadd.f32 1.0, %v641_v63 }
 0x2c5   :  { %v418_v23 = vmul.f32 %v410_v19, %v410_v19  ;;  %v2582_v19 = vpop.eup %2581 }
 0x2c6   :  { %v3763_v34 = vpop.eup %2583  ;;  %2587 = vrcp.f32 %v3758_v39 }
 0x2c7   :  { %v478_v55 = vadd.f32 %v470_v16, %v418_v23  ;;  %v624_v16 = vmul.f32 %v3752_v47, %v3700_v1  ;;  %v554_v23 = vmul.f32 %v2582_v19, %v546_v29  ;;  %v3774_v49 = vpop.eup %2585  ;;  %2589 = vrcp.f32 %v646_v14 }
 0x2c8   :  { %1654 = vperm.xlu0 %2535, %v3573_v38   ;;  %1586 = vperm.xlu1 %2533, %v3639_v2   ;;  %5573 = vst [vmem:[#allocation18_spill] sm:$0xff] %v3774_v49  ;;  %v596_v24 = vmul.f32 %v3763_v34, %v3708_v61  ;;  %v5576_v47 = vmov 6   ;;  %v637_v14 = vmul.f32 0.3275911, %v3772_v13  ;;  %v628_v19 = vand.u32 2147483648, %v3700_v1 }
 0x2c9   :  { %v538_v0 = vadd.f32 %v530_v36, %v478_v55  ;;  %v5575_v55 = vld [vmem:[#allocation13_spill] sm:$0xff]  ;;  %v626_v8 = vsel %vm625_vm5, %v3700_v1, %v624_v16  ;;  %2591 = vrcp.f32 %v649_v40 }
 0x2ca   :  { %v464_v36 = vsub.f32 %v5575_v55, %v3489_v3  ;;  %v524_v3 = vsub.f32 %v5578_v6, %v3494_v12  ;;  %v3798_v37 = vsel %vm627_vm7, %v628_v19, %v626_v8  ;;  %v600_v12 = vand.u32 2147483648, %v3708_v61 }
 0x2cb   :  { %v3784_v29 = vmul.f32 %v554_v23, %v538_v0  ;;  %v598_v0 = vsel %vm597_vm6, %v3708_v61, %v596_v24  ;;  %v645_v23 = vadd.f32 1.0, %v637_v14  ;;  %v548_v24 = vmul.f32 %v3470_v11, %v5572_v58 }
 0x2cc   :  { %2536 = vset.pattern.permute.xlu0 %v5558_v42  ;;  %1594 = vperm.xlu1 %2533, %v3544_v30   ;;  %v472_v63 = vmul.f32 %v464_v36, %v464_v36  ;;  %v532_v16 = vmul.f32 %v524_v3, %v524_v3  ;;  %v3808_v57 = vsel %vm599_vm15, %v600_v12, %v598_v0  ;;  %v643_v36 = vmul.f32 0.3275911, %v3798_v37 }
 0x2cd   :  { %1530 = vperm.xlu0 %2536, %v3687_v25   ;;  %5577 = vst [vmem:[#allocation9_spill] sm:$0xff] %v3784_v29  ;;  %vm570_vm8 = vcmp.lt.f32.partialorder %v3784_v29, 1e-08  ;;  %2593 = vrcp.f32 %v645_v23  ;;  %v639_v8 = vmul.f32 0.3275911, %v3808_v57 }
 0x2ce   :  { %v480_v55 = vadd.f32 %v472_v63, %v420_v50  ;;  %v3816_v40 = vsel %vm570_vm8, 1.0, %v3784_v29  ;;  %v651_v14 = vadd.f32 1.0, %v643_v36 }
 0x2cf   :  { %2595 = vrsqrt.f32 %v3816_v40  ;;  %vm618_vm3 = vcmp.eq.f32.partialorder %v3816_v40, inf  ;;  %vm620_vm4 = vcmp.eq.f32.partialorder %v3816_v40, 0.0 }
 0x2d0   :  { %1602 = vperm.xlu1 %2533, %v3573_v38   ;;  %v2588_v61 = vpop.eup %2587  ;;  %v540_v58 = vadd.f32 %v532_v16, %v480_v55  ;;  %2597 = vrcp.f32 %v651_v14  ;;  %v737_v14 = vsub.f32 0.0, %v3750_v44 }
 0x2d1   :  { %1542 = vperm.xlu0 %2536, %v3544_v30   ;;  %v3821_v11 = vpop.eup %2589  ;;  %v556_v3 = vmul.f32 %v2588_v61, %v548_v24 }
 0x2d2   :  { %v662_v19 = vmul.f32 1.0614054, %v3821_v11 }
 0x2d3   :  { %v3833_v50 = vpop.eup %2591 }
 0x2d4   :  { %2534 = vset.pattern.permute.xlu1 %v5576_v47  ;;  %v603_v47 = vmul.f32 %v3774_v49, %v3726_v53  ;;  %v670_v63 = vadd.f32 -1.4531521, %v662_v19  ;;  %v665_v12 = vmul.f32 1.0614054, %v3833_v50  ;;  %v3895_v19 = vld [vmem:[%s5393_s3 + $0xa] ss:$0 sm:$0xff] }
 0x2d5   :  { %1550 = vperm.xlu0 %2536, %v3573_v38   ;;  %1630 = vperm.xlu1 %2534, %v3612_v59  }
 0x2d6   :  { %v605_v1 = vsel %vm604_vm0, %v3726_v53, %v603_v47  ;;  %v647_v47 = vadd.f32 1.0, %v639_v8  ;;  %v678_v16 = vmul.f32 %v3821_v11, %v670_v63 }
 0x2d8   :  { %2599 = vrcp.f32 %v647_v47  ;;  %v686_v55 = vadd.f32 1.4214138, %v678_v16 }
 0x2d9   :  { %1799 = vperm.xlu0 %2536, %v3304_v17   ;;  %1638 = vperm.xlu1 %2534, %v3639_v2   ;;  %v607_v17 = vand.u32 2147483648, %v3726_v53 }
 0x2db   :  { %v3824_v6 = vsel %vm606_vm1, %v607_v17, %v605_v1 }
 0x2dc   :  { %v640_v53 = vmul.f32 0.3275911, %v3824_v6 }
 0x2dd   :  { %1811 = vperm.xlu0 %2536, %v3335_v15   ;;  %1642 = vperm.xlu1 %2534, %v3633_v48   ;;  %v3831_v15 = vmul.f32 %v556_v3, %v540_v58 }
 0x2de   :  { %v648_v0 = vadd.f32 1.0, %v640_v53 }
 0x2df   :  { %5579 = vst [vmem:[#allocation11_spill] sm:$0xff] %v3831_v15  ;;  %vm572_vm2 = vcmp.lt.f32.partialorder %v3831_v15, 1e-08 }
 0x2e0   :  { %2601 = vrcp.f32 %v648_v0  ;;  %v3847_v23 = vsel %vm572_vm2, 1.0, %v3831_v15  ;;  %v3916_v0 = vld [vmem:[%s5393_s3 + $0x3] ss:$0 sm:$0xff] }
 0x2e1   :  { %1819 = vperm.xlu0 %2536, %v3347_v56   ;;  %1650 = vperm.xlu1 %2534, %v3536_v5   ;;  %v3839_v56 = vpop.eup %2593  ;;  %2603 = vrsqrt.f32 %v3847_v23  ;;  %vm632_vm5 = vcmp.eq.f32.partialorder %v3847_v23, inf  ;;  %vm634_vm6 = vcmp.eq.f32.partialorder %v3847_v23, 0.0 }
 0x2e2   :  { %v3841_v5 = vpop.eup %2595  ;;  %v661_v24 = vmul.f32 1.0614054, %v3839_v56  ;;  %2605 = vrsqrt.f32 %v3526_v43  ;;  %v3872_v43 = vld [vmem:[%s5393_s3 + $0x1] sm:$0x1] }
 0x2e3   :  { %5580 = vst [vmem:[#allocation13_spill] sm:$0xff] %v3841_v5  ;;  %v617_v1 = vmul.f32 %v3841_v5, %v3816_v40  ;;  %v3858_v36 = vpop.eup %2597  ;;  %2607 = vrsqrt.f32 %v3478_v33  ;;  %v694_v33 = vmul.f32 %v3821_v11, %v686_v55 }
 0x2e4   :  { %2609 = vrsqrt.f32 %v3599_v4  ;;  %v669_v61 = vadd.f32 -1.4531521, %v661_v24  ;;  %v3866_v58 = vpop.eup %2599  ;;  %v667_v4 = vmul.f32 1.0614054, %v3858_v36 }
 0x2e5   :  { %1827 = vperm.xlu0 %2536, %v3356_v52   ;;  %1658 = vperm.xlu1 %2534, %v3565_v51   ;;  %v5433_v52 = vmov 7   ;;  %v673_v51 = vadd.f32 -1.4531521, %v665_v12  ;;  %2611 = vrsqrt.f32 %v3582_v27  ;;  %v621_v27 = vand.u32 2147483648, %v3816_v40 }
 0x2e6   :  { %2613 = vrsqrt.f32 %v3693_v32  ;;  %v3925_v12 = vmul.f32 0.33333334, %v3616_v9  ;;  %v702_v16 = vadd.f32 -0.28449672, %v694_v33  ;;  %v745_v33 = vmul.f32 %v737_v14, %v3750_v44  ;;  %v5630_v9 = vld [vmem:[#allocation88_spill] sm:$0xff] }
 0x2e7   :  { %v681_v17 = vmul.f32 %v3833_v50, %v673_v51  ;;  %2615 = vrsqrt.f32 %v3504_v20  ;;  %v663_v20 = vmul.f32 1.0614054, %v3866_v58  ;;  %v675_v51 = vadd.f32 -1.4531521, %v667_v4 }
 0x2e8   :  { %2617 = vrsqrt.f32 %v3758_v39  ;;  %v3921_v39 = vld [vmem:[%s5393_s3] sm:$0x1] }
 0x2e9   :  { %1856 = vperm.xlu0 %2536, %v3408_v41   ;;  %2537 = vset.pattern.permute.xlu1 %v5433_v52  ;;  %v734_v41 = vsub.f32 0.0, %v3735_v46  ;;  %v689_v3 = vadd.f32 1.4214138, %v681_v17  ;;  %2619 = vrsqrt.f32 %v3558_v31  ;;  %v683_v44 = vmul.f32 %v3858_v36, %v675_v51 }
 0x2ea   :  { %1694 = vperm.xlu1 %2537, %v3687_v25   ;;  %v3889_v32 = vpop.eup %2601 }
 0x2eb   :  { %v742_v8 = vmul.f32 %v734_v41, %v3735_v46  ;;  %v3903_v46 = vmul.f32 0.33333334, %v3588_v7  ;;  %v3928_v24 = vpop.eup %2603  ;;  %v697_v41 = vmul.f32 %v3833_v50, %v689_v3  ;;  %v664_v17 = vmul.f32 1.0614054, %v3889_v32 }
 0x2ec   :  { %5583 = vst [vmem:[#allocation95_spill] sm:$0xff] %v3928_v24  ;;  %v2606_v31 = vpop.eup %2605  ;;  %v733_v3 = vsub.f32 0.0, %v3772_v13 }
 0x2ed   :  { %1864 = vperm.xlu0 %2536, %v3416_v54   ;;  %v619_v54 = vsel %vm618_vm3, %v3816_v40, %v617_v1  ;;  %v5582_v40 = vld [vmem:[#allocation44_spill] sm:$0xff]  ;;  %v5584_v1 = vld [vmem:[#allocation14_spill] sm:$0xff] }
 0x2ee   :  { %1698 = vperm.xlu1 %2537, %v3639_v2   ;;  %v3881_v2 = vld [vmem:[%s5393_s3 + $0x2] sm:$0x1]  ;;  %v3899_v53 = vsel %vm620_vm4, %v621_v27, %v619_v54  ;;  %v3907_v47 = vrot.slane %v3872_v43, %v5582_v40  ;;  %v881_v55 = vmul.f32 %v3895_v19, %v5584_v1  ;;  %v751_v54 = vmul.f32 1.442695, %v742_v8 }
 0x2ef   :  { %5581 = vst [vmem:[#allocation20_spill] sm:$0xff] %v3881_v2  ;;  %v3911_v63 = vrot.slane %v3881_v2, %v5582_v40  ;;  %v671_v27 = vadd.f32 -1.4531521, %v663_v20  ;;  %v3944_v52 = vrot.slane %v3921_v39, %v5582_v40  ;;  %v710_v8 = vmul.f32 %v3821_v11, %v702_v16 }
 0x2f0   :  { %v705_v20 = vadd.f32 -0.28449672, %v697_v41  ;;  %v672_v1 = vadd.f32 -1.4531521, %v664_v17  ;;  %2621 = vpow2.f32 %v751_v54  ;;  %v757_v40 = vmul.f32 1.442695, %v745_v33 }
 0x2f1   :  { %1872 = vperm.xlu0 %2536, %v3424_v21   ;;  %v677_v21 = vmul.f32 %v3839_v56, %v669_v61  ;;  %v642_v61 = vmul.f32 0.3275911, %v3899_v53  ;;  %v679_v16 = vmul.f32 %v3866_v58, %v671_v27  ;;  %v741_v41 = vmul.f32 %v733_v3, %v3772_v13 }
 0x2f2   :  { %1706 = vperm.xlu1 %2537, %v3544_v30   ;;  %v739_v17 = vsub.f32 0.0, %v3798_v37  ;;  %v713_v33 = vmul.f32 %v3833_v50, %v705_v20 }
 0x2f3   :  { %v685_v4 = vadd.f32 1.4214138, %v677_v21  ;;  %v3954_v21 = vmul.f32 %v2606_v31, %v881_v55  ;;  %v650_v5 = vadd.f32 1.0, %v642_v61  ;;  %v718_v61 = vadd.f32 0.2548296, %v710_v8 }
 0x2f4   :  { %v691_v31 = vadd.f32 1.4214138, %v683_v44  ;;  %v687_v3 = vadd.f32 1.4214138, %v679_v16  ;;  %v749_v8 = vmul.f32 1.442695, %v741_v41 }
 0x2f5   :  { %1880 = vperm.xlu0 %2536, %v3432_v18   ;;  %v3938_v18 = vpop.eup %2607  ;;  %2623 = vrcp.f32 %v650_v5  ;;  %v735_v44 = vsub.f32 0.0, %v3808_v57  ;;  %v747_v5 = vmul.f32 %v739_v17, %v3798_v37  ;;  %v736_v16 = vsub.f32 0.0, %v3824_v6  ;;  %v5588_v41 = vld [vmem:[#allocation17_spill] sm:$0xff]  ;;  %v5590_v17 = vld [vmem:[#allocation92_spill] sm:$0xff] }
 0x2f6   :  { %2538 = vset.pattern.permute.xlu1 %v5558_v42  ;;  %v2610_v15 = vpop.eup %2609  ;;  %v693_v42 = vmul.f32 %v3839_v56, %v685_v4  ;;  %v680_v4 = vmul.f32 %v3889_v32, %v672_v1  ;;  %2625 = vpow2.f32 %v757_v40  ;;  %v699_v40 = vmul.f32 %v3858_v36, %v691_v31 }
 0x2f7   :  { %1803 = vperm.xlu1 %2538, %v3328_v28   ;;  %v631_v28 = vmul.f32 %v3928_v24, %v3847_v23  ;;  %v3952_v14 = vpop.eup %2611  ;;  %v5586_v24 = vld [vmem:[#allocation15_spill] sm:$0xff]  ;;  %v695_v37 = vmul.f32 %v3866_v58, %v687_v3  ;;  %v4001_v31 = vmul.f32 0.33333334, %v5590_v17  ;;  %2627 = vpow2.f32 %v749_v8 }
 0x2f8   :  { %v2614_v2 = vpop.eup %2613  ;;  %v884_v55 = vmul.f32 %v3895_v19, %v5586_v24  ;;  %v635_v24 = vand.u32 2147483648, %v3847_v23  ;;  %v701_v27 = vadd.f32 -0.28449672, %v693_v42  ;;  %v688_v42 = vadd.f32 1.4214138, %v680_v4 }
 0x2f9   :  { %1909 = vperm.xlu0 %2536, %v3497_v10   ;;  %v3959_v51 = vpop.eup %2615  ;;  %v3962_v10 = vmul.f32 0.33333334, %v3665_v60  ;;  %v633_v54 = vsel %vm632_vm5, %v3847_v23, %v631_v28  ;;  %v721_v23 = vadd.f32 0.2548296, %v713_v33  ;;  %v761_v4 = vmul.f32 1.442695, %v747_v5 }
 0x2fa   :  { %v3984_v28 = vsel %vm634_vm6, %v635_v24, %v633_v54  ;;  %v3988_v20 = vmul.f32 %v2610_v15, %v884_v55  ;;  %v886_v54 = vmul.f32 %v3895_v19, %v5588_v41  ;;  %v709_v24 = vmul.f32 %v3839_v56, %v701_v27  ;;  %v5589_v55 = vld [vmem:[#allocation66_spill] sm:$0xff] }
 0x2fb   :  { %1807 = vperm.xlu1 %2538, %v3332_v26   ;;  %5585 = vst [vmem:[#allocation14_spill] sm:$0xff] %v3962_v10  ;;  %v3971_v26 = vpop.eup %2617  ;;  %v644_v15 = vmul.f32 0.3275911, %v3984_v28  ;;  %v5591_v27 = vld [vmem:[#allocation94_spill] sm:$0xff]  ;;  %v707_v1 = vadd.f32 -0.28449672, %v699_v40  ;;  %v729_v49 = vmul.f32 %v3833_v50, %v721_v23  ;;  %v696_v8 = vmul.f32 %v3889_v32, %v688_v42 }
 0x2fc   :  { %5587 = vst [vmem:[#allocation15_spill] sm:$0xff] %v3971_v26  ;;  %v3976_v13 = vpop.eup %2619  ;;  %v4011_v3 = vmul.f32 0.33333334, %v5591_v27  ;;  %v5592_v41 = vld [vmem:[#allocation22_spill] sm:$0xff]  ;;  %v4019_v60 = vmul.f32 %v2614_v2, %v886_v54  ;;  %v5595_v27 = vld [vmem:[#allocation75_spill] sm:$0xff]  ;;  %2629 = vpow2.f32 %v761_v4 }
 0x2fd   :  { %1917 = vperm.xlu0 %2536, %v3519_v45   ;;  %v3981_v45 = vmul.f32 0.33333334, %v3648_v62  ;;  %v2622_v33 = vpop.eup %2621  ;;  %v5593_v26 = vld [vmem:[#allocation90_spill] sm:$0xff]  ;;  %v652_v5 = vadd.f32 1.0, %v644_v15  ;;  %v4025_v40 = vmul.f32 0.33333334, %v3784_v29 }
 0x2fe   :  { %5594 = vst [vmem:[#allocation17_spill] sm:$0xff] %v4019_v60  ;;  %v5598_v50 = vld [vmem:[#allocation26_spill] sm:$0xff]  ;;  %v5649_v60 = vld [vmem:[#allocation91_spill] sm:$0xff] }
 0x2ff   :  { %1815 = vperm.xlu1 %2538, %v3342_v35   ;;  %v726_v35 = vmul.f32 %v3821_v11, %v718_v61  ;;  %v743_v61 = vmul.f32 %v735_v44, %v3808_v57  ;;  %v744_v11 = vmul.f32 %v736_v16, %v3824_v6  ;;  %v717_v57 = vadd.f32 0.2548296, %v709_v24  ;;  %v4022_v10 = vpop.eup %2623  ;;  %5596 = vst [vmem:[#allocation66_spill] sm:$0xff] %v4025_v40  ;;  %v5599_v16 = vld [vmem:[#allocation24_spill] sm:$0xff] }
 0x300   :  { %v703_v44 = vadd.f32 -0.28449672, %v695_v37  ;;  %v885_v23 = vmul.f32 %v3895_v19, %v5598_v50  ;;  %v2626_v6 = vpop.eup %2625  ;;  %v883_v54 = vmul.f32 %v3895_v19, %v5599_v16  ;;  %v715_v24 = vmul.f32 %v3858_v36, %v707_v1 }
 0x301   :  { %1925 = vperm.xlu0 %2536, %v3539_v22   ;;  %v4006_v22 = vld [vmem:[%s5393_s3 + $0xe] ss:$0 sm:$0xff]  ;;  %v766_v17 = vmul.f32 %v2622_v33, %v726_v35  ;;  %v753_v42 = vmul.f32 1.442695, %v743_v61  ;;  %v5600_v37 = vmov 7   ;;  %v769_v33 = vmul.f32 %v2626_v6, %v729_v49 }
 0x302   :  { %v711_v61 = vmul.f32 %v3866_v58, %v703_v44  ;;  %v666_v4 = vmul.f32 1.0614054, %v4022_v10  ;;  %2631 = vrcp.f32 %v652_v5  ;;  %v901_v50 = vmul.f32 %v3959_v51, %v885_v23  ;;  %v2628_v44 = vpop.eup %2627 }
 0x303   :  { %1823 = vperm.xlu1 %2538, %v5589_v55   ;;  %v882_v55 = vmul.f32 %v3895_v19, %v5592_v41  ;;  %v774_v15 = vsub.f32 1.0, %v766_v17  ;;  %v755_v41 = vmul.f32 1.442695, %v744_v11  ;;  %v5603_v17 = vld [vmem:[#allocation27_spill] sm:$0xff]  ;;  %2633 = vpow2.f32 %v753_v42 }
 0x304   :  { %v887_v49 = vmul.f32 %v3895_v19, %v5603_v17  ;;  %v899_v6 = vmul.f32 %v3952_v14, %v883_v54  ;;  %v777_v16 = vsub.f32 1.0, %v769_v33  ;;  %v719_v23 = vadd.f32 0.2548296, %v711_v61  ;;  %v5607_v33 = vld [vmem:[#allocation29_spill] sm:$0xff] }
 0x305   :  { %1933 = vperm.xlu0 %2536, %v5593_v26   ;;  %v5597_v26 = vld [vmem:[#allocation21_spill] sm:$0xff]  ;;  %v898_v2 = vmul.f32 %v3938_v18, %v882_v55  ;;  %v5601_v18 = vld [vmem:[#allocation76_spill] sm:$0xff]  ;;  %v5602_v55 = vld [vmem:[#allocation23_spill] sm:$0xff]  ;;  %v782_v5 = vmul.f32 0.88622695, %v774_v15  ;;  %2635 = vpow2.f32 %v755_v41  ;;  %v5640_v14 = vsub.f32 1.0, %v3981_v45 }
 0x306   :  { %v942_v35 = vmul.f32 %v4006_v22, %v5597_v26  ;;  %v725_v26 = vmul.f32 %v3839_v56, %v717_v57  ;;  %v945_v1 = vmul.f32 %v4006_v22, %v5602_v55  ;;  %v674_v19 = vadd.f32 -1.4531521, %v666_v4  ;;  %v5609_v61 = vld [vmem:[#allocation93_spill] sm:$0xff]  ;;  %v2630_v17 = vpop.eup %2629  ;;  %v5645_v45 = vld [vmem:[#allocation10_spill] sm:$0xff] }
 0x307   :  { %1852 = vperm.xlu1 %2538, %v5595_v27   ;;  %v704_v27 = vadd.f32 -0.28449672, %v696_v8  ;;  %v723_v8 = vadd.f32 0.2548296, %v715_v24  ;;  %v5606_v24 = vld [vmem:[#allocation28_spill] sm:$0xff]  ;;  %v798_v4 = vmul.f32 %v5609_v61, %v782_v5 }
 0x308   :  { %v950_v11 = vmul.f32 %v942_v35, %v898_v2  ;;  %v765_v51 = vmul.f32 %v2628_v44, %v725_v26  ;;  %v5605_v35 = vld [vmem:[#allocation77_spill] sm:$0xff]  ;;  %v4053_v42 = vmul.f32 %v945_v1, %v901_v50  ;;  %v903_v2 = vmul.f32 %v3976_v13, %v887_v49  ;;  %v5610_v1 = vld [vmem:[#allocation31_spill] sm:$0xff]  ;;  %v5613_v5 = vld [vmem:[#allocation32_spill] sm:$0xff] }
 0x309   :  { %2539 = vset.pattern.permute.xlu0 %v5600_v37  ;;  %v1063_v15 = vsub.f32 %v5606_v24, %v3907_v47  ;;  %v731_v54 = vmul.f32 %v3858_v36, %v723_v8  ;;  %v785_v55 = vmul.f32 0.88622695, %v777_v16  ;;  %v943_v13 = vmul.f32 %v4006_v22, %v5610_v1  ;;  %v5611_v8 = vld [vmem:[#allocation78_spill] sm:$0xff]  ;;  %v5614_v24 = vld [vmem:[#allocation33_spill] sm:$0xff]  ;;  %v5618_v61 = vld [vmem:[#allocation8_spill] sm:$0xff] }
 0x30a   :  { %1690 = vperm.xlu0 %2539, %v3612_v59   ;;  %v5604_v59 = vld [vmem:[#allocation25_spill] sm:$0xff]  ;;  %v773_v49 = vsub.f32 1.0, %v765_v51  ;;  %v727_v36 = vmul.f32 %v3866_v58, %v719_v23  ;;  %v1068_v16 = vsub.f32 %v5613_v5, %v3907_v47  ;;  %v5616_v23 = vld [vmem:[#allocation34_spill] sm:$0xff] }
 0x30b   :  { %1860 = vperm.xlu1 %2538, %v5601_v18   ;;  %v947_v56 = vmul.f32 %v4006_v22, %v5604_v59  ;;  %v712_v18 = vmul.f32 %v3889_v32, %v704_v27  ;;  %v5608_v27 = vld [vmem:[#allocation30_spill] sm:$0xff]  ;;  %v682_v59 = vmul.f32 %v4022_v10, %v674_v19  ;;  %v801_v1 = vmul.f32 %v5618_v61, %v785_v55  ;;  %v5628_v61 = vld [vmem:[#allocation49_spill] sm:$0xff] }
 0x30c   :  { %v1066_v41 = vsub.f32 %v5608_v27, %v3907_v47  ;;  %v771_v27 = vmul.f32 %v2630_v17, %v731_v54  ;;  %v738_v54 = vsub.f32 0.0, %v3899_v53  ;;  %v5444_v17 = vmov 8   ;;  %v5620_v55 = vld [vmem:[#allocation42_spill] sm:$0xff] }
 0x30d   :  { %v720_v50 = vadd.f32 0.2548296, %v712_v18  ;;  %v4072_v44 = vmul.f32 %v947_v56, %v903_v2  ;;  %v1114_v18 = vsub.f32 %v5614_v24, %v3911_v63  ;;  %v1117_v56 = vsub.f32 %v5616_v23, %v3911_v63 }
 0x30e   :  { %1702 = vperm.xlu0 %2539, %v3633_v48   ;;  %v941_v48 = vmul.f32 %v4006_v22, %v5607_v33  ;;  %v4080_v33 = vpop.eup %2631  ;;  %v4085_v58 = vmul.f32 %v1066_v41, %v1066_v41  ;;  %v5617_v2 = vsub.f32 1.0, %v3903_v46  ;;  %v4097_v41 = vmul.f32 %v943_v13, %v899_v6  ;;  %v5619_v46 = vld [vmem:[#allocation87_spill] sm:$0xff]  ;;  %v5622_v13 = vld [vmem:[#allocation45_spill] sm:$0xff] }
 0x30f   :  { %1868 = vperm.xlu1 %2538, %v5605_v35   ;;  %5612 = vst [vmem:[#allocation22_spill] sm:$0xff] %v4072_v44  ;;  %v4074_v35 = vmul.f32 %v1063_v15, %v1063_v15  ;;  %5615 = vst [vmem:[#allocation90_spill] sm:$0xff] %v4080_v33  ;;  %v2634_v19 = vpop.eup %2633  ;;  %v690_v5 = vadd.f32 1.4214138, %v682_v59  ;;  %v4101_v7 = vmul.f32 %v1068_v16, %v1068_v16  ;;  %v5624_v59 = vsub.f32 1.0, %v3925_v12 }
 0x310   :  { %v4083_v51 = vmul.f32 %v941_v48, %v3954_v21  ;;  %v822_v15 = vsel %vm566_vm9, %v5617_v2, %v798_v4  ;;  %v781_v21 = vmul.f32 0.88622695, %v773_v49  ;;  %v767_v48 = vmul.f32 %v2634_v19, %v727_v36  ;;  %v2636_v24 = vpop.eup %2635  ;;  %v5625_v19 = vld [vmem:[#allocation46_spill] sm:$0xff] }
 0x311   :  { %v4103_v4 = vmul.f32 %v1114_v18, %v1114_v18  ;;  %v958_v49 = vmul.f32 %v950_v11, %v822_v15  ;;  %v779_v36 = vsub.f32 1.0, %v771_v27  ;;  %v4110_v6 = vmul.f32 %v1117_v56, %v1117_v56  ;;  %v5627_v11 = vld [vmem:[#allocation12_spill] sm:$0xff] }
 0x312   :  { %1714 = vperm.xlu0 %2539, %v3573_v38   ;;  %v825_v16 = vsel %vm569_vm10, %v5624_v59, %v801_v1  ;;  %v746_v23 = vmul.f32 %v738_v54, %v3899_v53  ;;  %v4123_v2 = vadd.f32 %v3944_v52, %v5625_v19  ;;  %v797_v27 = vmul.f32 %v5627_v11, %v781_v21  ;;  %v5631_v1 = vld [vmem:[#allocation47_spill] sm:$0xff] }
 0x313   :  { %1876 = vperm.xlu1 %2538, %v5611_v8   ;;  %v728_v8 = vmul.f32 %v3889_v32, %v720_v50  ;;  %v668_v32 = vmul.f32 1.0614054, %v4080_v33  ;;  %v4108_v50 = vadd.f32 %v3944_v52, %v5620_v55  ;;  %v775_v56 = vsub.f32 1.0, %v767_v48  ;;  %v5634_v21 = vld [vmem:[#allocation35_spill] sm:$0xff] }
 0x314   :  { %5626 = vst [vmem:[#allocation26_spill] sm:$0xff] %v4123_v2  ;;  %v698_v15 = vmul.f32 %v4022_v10, %v690_v5  ;;  %v740_v53 = vsub.f32 0.0, %v3984_v28  ;;  %v4139_v54 = vmul.f32 2.0, %v958_v49  ;;  %v1119_v48 = vsub.f32 %v5634_v21, %v3911_v63  ;;  %v5635_v5 = vld [vmem:[#allocation51_spill] sm:$0xff]  ;;  %v5639_v21 = vld [vmem:[#allocation89_spill] sm:$0xff] }
 0x315   :  { %5621 = vst [vmem:[#allocation75_spill] sm:$0xff] %v4108_v50  ;;  %v768_v18 = vmul.f32 %v2636_v24, %v728_v8  ;;  %v676_v12 = vadd.f32 -1.4531521, %v668_v32  ;;  %2637 = vrcp.f32 %v4108_v50  ;;  %v4137_v8 = vadd.f32 %v3944_v52, %v5631_v1 }
 0x316   :  { %2542 = vset.pattern.permute.xlu0 %v5444_v17  ;;  %5633 = vst [vmem:[#allocation23_spill] sm:$0xff] %v4139_v54  ;;  %v961_v59 = vmul.f32 %v4053_v42, %v825_v16  ;;  %v787_v11 = vmul.f32 0.88622695, %v779_v36  ;;  %v783_v49 = vmul.f32 0.88622695, %v775_v56  ;;  %v821_v57 = vsel %vm565_vm11, %v5640_v14, %v797_v27  ;;  %v5642_v56 = vld [vmem:[#allocation37_spill] sm:$0xff] }
 0x317   :  { %2361 = vperm.xlu0 %2542, %v3687_v25   ;;  %1905 = vperm.xlu1 %2538, %v5619_v46   ;;  %v4114_v25 = vadd.f32 %v3944_v52, %v5622_v13  ;;  %v4129_v46 = vadd.f32 %v3944_v52, %v5628_v61  ;;  %5632 = vst [vmem:[#allocation76_spill] sm:$0xff] %v4137_v8  ;;  %v706_v26 = vadd.f32 -0.28449672, %v698_v15  ;;  %v759_v17 = vmul.f32 1.442695, %v746_v23 }
 0x318   :  { %v684_v42 = vmul.f32 %v4080_v33, %v676_v12  ;;  %v748_v36 = vmul.f32 %v740_v53, %v3984_v28  ;;  %v4164_v16 = vmul.f32 %v1119_v48, %v1119_v48  ;;  %v1121_v15 = vsub.f32 %v5642_v56, %v3911_v63  ;;  %v5646_v28 = vld [vmem:[#allocation39_spill] sm:$0xff]  ;;  %v5647_v53 = vld [vmem:[#allocation41_spill] sm:$0xff] }
 0x319   :  { %5623 = vst [vmem:[#allocation21_spill] sm:$0xff] %v4114_v25  ;;  %5629 = vst [vmem:[#allocation24_spill] sm:$0xff] %v4129_v46  ;;  %2639 = vrcp.f32 %v4114_v25  ;;  %v803_v14 = vmul.f32 %v5645_v45, %v787_v11  ;;  %v1175_v12 = vsub.f32 %v5646_v28, %v3916_v0  ;;  %v1178_v48 = vsub.f32 %v5647_v53, %v3916_v0 }
 0x31a   :  { %2641 = vrcp.f32 %v4123_v2  ;;  %v714_v56 = vmul.f32 %v4022_v10, %v706_v26  ;;  %v692_v29 = vadd.f32 1.4214138, %v684_v42  ;;  %v763_v11 = vmul.f32 1.442695, %v748_v36  ;;  %v5659_v42 = vld [vmem:[#allocation18_spill] sm:$0xff] }
 0x31b   :  { %2373 = vperm.xlu0 %2542, %v3544_v30   ;;  %1913 = vperm.xlu1 %2538, %v5630_v9   ;;  %v4146_v30 = vadd.f32 %v3944_v52, %v5635_v5  ;;  %v776_v9 = vsub.f32 1.0, %v768_v18  ;;  %2643 = vrcp.f32 %v4129_v46  ;;  %v5641_v18 = vld [vmem:[#allocation36_spill] sm:$0xff]  ;;  %v4189_v28 = vmul.f32 %v1121_v15, %v1121_v15 }
 0x31c   :  { %2645 = vrcp.f32 %v4137_v8  ;;  %v944_v23 = vmul.f32 %v4006_v22, %v5641_v18  ;;  %v957_v22 = vmul.f32 %v4083_v51, %v821_v57  ;;  %v799_v18 = vmul.f32 %v3763_v34, %v783_v49  ;;  %v5651_v57 = vld [vmem:[#allocation54_spill] sm:$0xff] }
 0x31d   :  { %5636 = vst [vmem:[#allocation27_spill] sm:$0xff] %v4146_v30  ;;  %v4148_v32 = vpop.permute.xlu0 %1472  ;;  %v4150_v24 = vpop.permute.xlu1 %1467  ;;  %2647 = vrcp.f32 %v4146_v30  ;;  %v784_v27 = vmul.f32 0.88622695, %v776_v9  ;;  %v1278_v9 = vmul.f32 %v3872_v43, %v3921_v39  ;;  %v4195_v34 = vadd.f32 %v3944_v52, %v5651_v57 }
 0x31e   :  { %5637 = vst [vmem:[#allocation25_spill] sm:$0xff] %v4148_v32  ;;  %5638 = vst [vmem:[#allocation77_spill] sm:$0xff] %v4150_v24  ;;  %2649 = vpow2.f32 %v759_v17  ;;  %v952_v45 = vmul.f32 %v944_v23, %v3988_v20  ;;  %v5655_v17 = vld [vmem:[#allocation14_spill] sm:$0xff]  ;;  %v4210_v23 = vmul.f32 %v1175_v12, %v1175_v12  ;;  %v4212_v15 = vmul.f32 %v1178_v48, %v1178_v48 }
 0x31f   :  { %1921 = vperm.xlu1 %2538, %v5639_v21   ;;  %2381 = vperm.xlu0 %2542, %v3573_v38   ;;  %v4180_v21 = vmul.f32 2.0, %v961_v59  ;;  %v5650_v59 = vld [vmem:[#allocation43_spill] sm:$0xff]  ;;  %5652 = vst [vmem:[#allocation93_spill] sm:$0xff] %v4195_v34  ;;  %v4201_v51 = vpop.eup %2637  ;;  %v5656_v49 = vsub.f32 1.0, %v5655_v17  ;;  %v800_v36 = vmul.f32 %v5659_v42, %v784_v27  ;;  %v4216_v40 = vmul.f32 2.0, %v957_v22  ;;  %v5663_v22 = vld [vmem:[#allocation44_spill] sm:$0xff] }
 0x320   :  { %v1180_v53 = vsub.f32 %v5650_v59, %v3916_v0  ;;  %v722_v17 = vadd.f32 0.2548296, %v714_v56  ;;  %v700_v12 = vmul.f32 %v4080_v33, %v692_v29  ;;  %2651 = vpow2.f32 %v763_v11 }
 0x321   :  { %v4171_v38 = vpop.permute.xlu0 %1482  ;;  %v4173_v62 = vpop.permute.xlu1 %1477  ;;  %5648 = vst [vmem:[#allocation30_spill] sm:$0xff] %v4180_v21  ;;  %v4207_v20 = vsel %vm571_vm12, %v5656_v49, %v803_v14  ;;  %5660 = vst [vmem:[#allocation33_spill] sm:$0xff] %v4216_v40  ;;  %v5661_v21 = vsub.f32 1.0, %v4001_v31  ;;  %v1199_v14 = vmul.f32 %v3944_v52, %v5620_v55  ;;  %v1198_v48 = vmul.f32 %v3944_v52, %v5628_v61  ;;  %v4236_v31 = vld [vmem:[%s5392_s2 + $0x28] sm:$0xff] }
 0x322   :  { %5643 = vst [vmem:[#allocation28_spill] sm:$0xff] %v4171_v38  ;;  %5644 = vst [vmem:[#allocation29_spill] sm:$0xff] %v4173_v62  ;;  %v4231_v49 = vrot.slane %v1278_v9, %v5663_v22  ;;  %v4249_v55 = vmul.f32 %v1180_v53, %v1180_v53  ;;  %v1200_v61 = vmul.f32 %v3944_v52, %v5622_v13  ;;  %2653 = vrcp.f32 %v4195_v34  ;;  %v5686_v38 = vld [vmem:[#allocation58_spill] sm:$0xff] }
 0x323   :  { %1929 = vperm.xlu1 %2538, %v5649_v60   ;;  %5658 = vst [vmem:[#allocation32_spill] sm:$0xff] %v4207_v20  ;;  %v4214_v59 = vpop.eup %2639  ;;  %v823_v54 = vsel %vm567_vm13, %v5661_v21, %v799_v18  ;;  %v4247_v44 = vmul.f32 %v4201_v51, %v1199_v14  ;;  %v5666_v11 = vsub.f32 1.0, %v4011_v3  ;;  %v1202_v53 = vmul.f32 %v3944_v52, %v5625_v19 }
 0x324   :  { %v4225_v27 = vpop.eup %2641  ;;  %v4259_v56 = vmul.f32 %v4097_v41, %v823_v54  ;;  %v1201_v13 = vmul.f32 %v3944_v52, %v5635_v5  ;;  %v730_v20 = vmul.f32 %v4022_v10, %v722_v17  ;;  %v4275_v41 = vmul.f32 %v4214_v59, %v1200_v61  ;;  %v4292_v10 = vld [vmem:[%s5392_s2 + $0x38] sm:$0xff] }
 0x325   :  { %v4197_v26 = vpop.permute.xlu0 %1492  ;;  %v4199_v60 = vpop.permute.xlu1 %1487  ;;  %v824_v43 = vsel %vm568_vm14, %v5666_v11, %v800_v36  ;;  %v1204_v3 = vmul.f32 %v3944_v52, %v5631_v1  ;;  %v708_v19 = vadd.f32 -0.28449672, %v700_v12  ;;  %v4284_v36 = vmul.f32 %v4225_v27, %v1202_v53 }
 0x326   :  { %5653 = vst [vmem:[#allocation31_spill] sm:$0xff] %v4197_v26  ;;  %5654 = vst [vmem:[#allocation78_spill] sm:$0xff] %v4199_v60  ;;  %v4244_v29 = vpop.eup %2643  ;;  %v4296_v1 = vmul.f32 34.986835, %v4201_v51  ;;  %v4298_v17 = vmul.f32 %v952_v45, %v824_v43  ;;  %v1203_v61 = vmul.f32 %v3944_v52, %v5651_v57  ;;  %v5671_v45 = vld [vmem:[#allocation56_spill] sm:$0xff]  ;;  %v1116_v24 = vsub.f32 %v5686_v38, %v3911_v63 }
 0x327   :  { %2540 = vset.pattern.permute.xlu1 %v5600_v37  ;;  %v4242_v37 = vld [vmem:[%s5393_s3 + $0x4] sm:$0x1]  ;;  %v4256_v18 = vpop.eup %2645  ;;  %5665 = vst [vmem:[#allocation8_spill] sm:$0xff] %v4259_v56  ;;  %v4287_v5 = vmul.f32 %v4244_v29, %v1198_v48  ;;  %v5669_v48 = vld [vmem:[#allocation57_spill] sm:$0xff]  ;;  %v5670_v56 = vld [vmem:[#allocation48_spill] sm:$0xff]  ;;  %v4315_v43 = vadd.f32 %v3944_v52, %v5671_v45  ;;  %v4329_v50 = vmul.f32 %v4080_v33, %v708_v19 }
 0x328   :  { %1710 = vperm.xlu1 %2540, %v4236_v31   ;;  %v4271_v14 = vpop.eup %2647  ;;  %v4281_v54 = vrot.slane %v4242_v37, %v5663_v22  ;;  %v1115_v11 = vsub.f32 %v5669_v48, %v3911_v63  ;;  %v4306_v53 = vmul.f32 %v4256_v18, %v1204_v3  ;;  %v1062_v8 = vsub.f32 %v5670_v56, %v3907_v47  ;;  %v5678_v48 = vld [vmem:[#allocation59_spill] sm:$0xff] }
 0x329   :  { %v4254_v21 = vpop.permute.xlu1 %1497  ;;  %v4269_v42 = vpop.permute.xlu0 %1502  ;;  %v4309_v40 = vmul.f32 %v4271_v14, %v1201_v13  ;;  %5672 = vst [vmem:[#allocation42_spill] sm:$0xff] %v4315_v43  ;;  %v1118_v26 = vsub.f32 %v5678_v48, %v3911_v63  ;;  %v2795_v19 = vld [vmem:[%s5392_s2] sm:$0xff] }
 0x32a   :  { %5664 = vst [vmem:[#allocation34_spill] sm:$0xff] %v4254_v21  ;;  %5668 = vst [vmem:[#allocation87_spill] sm:$0xff] %v4269_v42  ;;  %v2650_v9 = vpop.eup %2649  ;;  %v5676_v42 = vld [vmem:[#allocation52_spill] sm:$0xff] }
 0x32b   :  { %v4319_v57 = vmul.f32 %v2650_v9, %v730_v20  ;;  %v1065_v60 = vsub.f32 %v5676_v42, %v3907_v47  ;;  %v5677_v20 = vmov 8   ;;  %v1123_v9 = vmul.f32 %v1115_v11, %v1115_v11  ;;  %v4346_v21 = vpop.eup %2651 }
 0x32c   :  { %1718 = vperm.xlu1 %2540, %v4292_v10   ;;  %5680 = vst [vmem:[#allocation88_spill] sm:$0xff] %v4346_v21  ;;  %v4353_v33 = vpop.eup %2653  ;;  %v1126_v32 = vmul.f32 %v1118_v26, %v1118_v26  ;;  %v5688_v26 = vld [vmem:[#allocation60_spill] sm:$0xff] }
 0x32d   :  { %5673 = vst [vmem:[#allocation45_spill] sm:$0xff] %v4319_v57  ;;  %v1073_v62 = vmul.f32 %v1065_v60, %v1065_v60  ;;  %v1120_v60 = vsub.f32 %v5688_v26, %v3911_v63  ;;  %v2324_v26 = vmul.f32 34.986835, %v4244_v29  ;;  %v5734_v57 = vld [vmem:[#allocation74_spill] sm:$0xff] }
 0x32e   :  { %v1527_v12 = vpop.permute.xlu1 %1526  ;;  %v4317_v2 = vpop.permute.xlu0 %1578 }
 0x32f   :  { %v4323_v3 = vadd.f32 %v4281_v54, %v1527_v12  ;;  %v4326_v13 = vmul.f32 %v4281_v54, %v1527_v12 }
 0x330   :  { %2541 = vset.pattern.permute.xlu1 %v5677_v20  ;;  %v1070_v20 = vmul.f32 %v1062_v8, %v1062_v8  ;;  %v5685_v8 = vld [vmem:[#allocation50_spill] sm:$0xff] }
 0x331   :  { %5674 = vst [vmem:[#allocation46_spill] sm:$0xff] %v4323_v3  ;;  %5675 = vst [vmem:[#allocation12_spill] sm:$0xff] %v4326_v13  ;;  %2655 = vrcp.f32 %v4323_v3  ;;  %v4341_v12 = vadd.f32 %v4323_v3, %v4129_v46  ;;  %2357 = vperm.xlu1 %2541, %v2795_v19   ;;  %v5681_v13 = vld [vmem:[#allocation53_spill] sm:$0xff]  ;;  %v5682_v46 = vld [vmem:[#allocation55_spill] sm:$0xff]  ;;  %v1064_v11 = vsub.f32 %v5685_v8, %v3907_v47 }
 0x332   :  { %2657 = vrcp.f32 %v4315_v43  ;;  %v1535_v48 = vpop.permute.xlu1 %1534  ;;  %v4351_v56 = vpop.permute.xlu0 %1590  ;;  %v1067_v3 = vsub.f32 %v5681_v13, %v3907_v47  ;;  %v1069_v19 = vsub.f32 %v5682_v46, %v3907_v47  ;;  %v1131_v13 = vadd.f32 %v1123_v9, %v4074_v35 }
 0x333   :  { %5679 = vst [vmem:[#allocation49_spill] sm:$0xff] %v4341_v12  ;;  %v4360_v21 = vadd.f32 %v4281_v54, %v1535_v48  ;;  %v4363_v42 = vmul.f32 %v4281_v54, %v1535_v48  ;;  %2659 = vrsqrt.f32 %v4341_v12  ;;  %v2796_v48 = vld [vmem:[%s5392_s2 + $0x10] sm:$0xff]  ;;  %v4380_v47 = vmul.f32 %v4353_v33, %v1203_v61 }
 0x334   :  { %v4383_v38 = vadd.f32 %v4103_v4, %v1070_v20  ;;  %v4387_v35 = vmul.f32 %v3944_v52, %v5671_v45  ;;  %v1072_v4 = vmul.f32 %v1064_v11, %v1064_v11  ;;  %v4400_v20 = vadd.f32 %v4110_v6, %v1073_v62  ;;  %v2797_v11 = vld [vmem:[%s5392_s2 + $0x18] sm:$0xff]  ;;  %v4416_v6 = vld [vmem:[%s5393_s3 + $0x6] sm:$0x1]  ;;  %v5691_v62 = vld [vmem:[#allocation61_spill] sm:$0xff] }
 0x335   :  { %5683 = vst [vmem:[#allocation47_spill] sm:$0xff] %v4360_v21  ;;  %5684 = vst [vmem:[#allocation35_spill] sm:$0xff] %v4363_v42  ;;  %2661 = vrcp.f32 %v4360_v21  ;;  %v4374_v46 = vadd.f32 %v4360_v21, %v4114_v25  ;;  %2365 = vperm.xlu1 %2541, %v2796_v48   ;;  %v1075_v21 = vmul.f32 %v1067_v3, %v1067_v3  ;;  %v5703_v12 = vld [vmem:[#allocation65_spill] sm:$0xff] }
 0x336   :  { %v1539_v9 = vpop.permute.xlu1 %1538  ;;  %v4391_v8 = vpop.permute.xlu0 %1598  ;;  %v1077_v25 = vmul.f32 %v1069_v19, %v1069_v19  ;;  %v1124_v52 = vmul.f32 %v1116_v24, %v1116_v24  ;;  %v1191_v63 = vadd.f32 %v4210_v23, %v1131_v13  ;;  %v1134_v45 = vadd.f32 %v1126_v32, %v4085_v58  ;;  %v5692_v32 = vld [vmem:[#allocation62_spill] sm:$0xff] }
 0x337   :  { %5687 = vst [vmem:[#allocation51_spill] sm:$0xff] %v4374_v46  ;;  %v4394_v48 = vadd.f32 %v4281_v54, %v1539_v9  ;;  %v4397_v61 = vmul.f32 %v4281_v54, %v1539_v9  ;;  %2663 = vrsqrt.f32 %v4374_v46  ;;  %v1128_v24 = vmul.f32 %v1120_v60, %v1120_v60 }
 0x338   :  { %v1174_v58 = vsub.f32 %v5691_v62, %v3916_v0  ;;  %v1176_v23 = vsub.f32 %v5692_v32, %v3916_v0  ;;  %v4444_v46 = vrot.slane %v4416_v6, %v5663_v22 }
 0x339   :  { %5689 = vst [vmem:[#allocation89_spill] sm:$0xff] %v4394_v48  ;;  %2665 = vrcp.f32 %v4394_v48  ;;  %v4408_v3 = vadd.f32 %v4394_v48, %v4146_v30  ;;  %2369 = vperm.xlu1 %2541, %v2797_v11   ;;  %v4428_v11 = vadd.f32 %v4164_v16, %v1075_v21  ;;  %v4431_v48 = vadd.f32 %v4189_v28, %v1077_v25 }
 0x33a   :  { %v1547_v19 = vpop.permute.xlu1 %1546  ;;  %v4422_v13 = vpop.permute.xlu0 %1606  ;;  %v1132_v30 = vadd.f32 %v1124_v52, %v1072_v4  ;;  %v5696_v25 = vsub.f32 0.0, %v4247_v44  ;;  %v1194_v21 = vadd.f32 %v4212_v15, %v1134_v45  ;;  %v1182_v44 = vmul.f32 %v1174_v58, %v1174_v58 }
 0x33b   :  { %5690 = vst [vmem:[#allocation36_spill] sm:$0xff] %v4408_v3  ;;  %5693 = vst [vmem:[#allocation37_spill] sm:$0xff] %v4422_v13  ;;  %v4425_v9 = vpop.eup %2655  ;;  %v4434_v60 = vadd.f32 %v4281_v54, %v1547_v19  ;;  %v4437_v62 = vmul.f32 %v4281_v54, %v1547_v19  ;;  %2667 = vrsqrt.f32 %v4408_v3  ;;  %v4453_v19 = vld [vmem:[%s5393_s3 + $0x5] sm:$0x1]  ;;  %v2326_v15 = vmul.f32 34.986835, %v4214_v59 }
 0x33c   :  { %5694 = vst [vmem:[#allocation10_spill] sm:$0xff] %v4425_v9  ;;  %v4439_v32 = vpop.eup %2657  ;;  %v2332_v16 = vmul.f32 %v4425_v9, %v2324_v26  ;;  %v1223_v28 = vmul.f32 %v5696_v25, %v1191_v63  ;;  %v1136_v26 = vadd.f32 %v1128_v24, %v4101_v7  ;;  %v1184_v63 = vmul.f32 %v1176_v23, %v1176_v23  ;;  %v5699_v9 = vld [vmem:[#allocation63_spill] sm:$0xff]  ;;  %v5702_v23 = vld [vmem:[#allocation64_spill] sm:$0xff] }
 0x33d   :  { %5695 = vst [vmem:[#allocation39_spill] sm:$0xff] %v4434_v60  ;;  %2669 = vrcp.f32 %v4434_v60  ;;  %v4458_v4 = vadd.f32 %v4434_v60, %v4195_v34  ;;  %2377 = vperm.xlu1 %2541, %v4236_v31   ;;  %v2660_v52 = vpop.eup %2659  ;;  %v1177_v3 = vsub.f32 %v5699_v9, %v3916_v0  ;;  %v4477_v7 = vrot.slane %v4453_v19, %v5663_v22 }
 0x33e   :  { %v1555_v25 = vpop.permute.xlu1 %1554  ;;  %v4473_v34 = vmul.f32 %v2660_v52, %v2332_v16  ;;  %v1179_v9 = vsub.f32 %v5702_v23, %v3916_v0  ;;  %v1196_v23 = vadd.f32 %v4249_v55, %v1136_v26 }
 0x33f   :  { %5697 = vst [vmem:[#allocation41_spill] sm:$0xff] %v4458_v4  ;;  %v4463_v45 = vpop.eup %2661  ;;  %v4468_v42 = vadd.f32 %v4281_v54, %v1555_v25  ;;  %v4471_v60 = vmul.f32 %v4281_v54, %v1555_v25  ;;  %v1635_v31 = vpop.permute.xlu0 %1634  ;;  %2671 = vrsqrt.f32 %v4458_v4  ;;  %v1181_v25 = vsub.f32 %v5703_v12, %v3916_v0 }
 0x340   :  { %5698 = vst [vmem:[#allocation91_spill] sm:$0xff] %v4463_v45  ;;  %5701 = vst [vmem:[#allocation54_spill] sm:$0xff] %v4473_v34  ;;  %v1666_v24 = vsub.f32 %v1635_v31, %v4444_v46  ;;  %v2334_v58 = vmul.f32 %v4463_v45, %v2326_v15  ;;  %v1213_v31 = vmul.f32 %v4439_v32, %v4387_v35  ;;  %v5704_v15 = vsub.f32 0.0, %v4284_v36 }
 0x341   :  { %5700 = vst [vmem:[#allocation43_spill] sm:$0xff] %v4468_v42  ;;  %2673 = vrcp.f32 %v4468_v42  ;;  %v4489_v16 = vadd.f32 %v4468_v42, %v4315_v43  ;;  %2385 = vperm.xlu1 %2541, %v4292_v10   ;;  %v2664_v52 = vpop.eup %2663  ;;  %v1190_v4 = vadd.f32 %v1182_v44, %v4383_v38  ;;  %v1232_v12 = vmul.f32 1.442695, %v1223_v28 }
 0x342   :  { %v1226_v34 = vmul.f32 %v5704_v15, %v1194_v21  ;;  %v1185_v45 = vmul.f32 %v1177_v3, %v1177_v3  ;;  %v4500_v43 = vmul.f32 %v2664_v52, %v2334_v58  ;;  %v2327_v10 = vmul.f32 34.986835, %v4271_v14 }
 0x343   :  { %v4498_v0 = vpop.eup %2665  ;;  %v1583_v13 = vpop.permute.xlu1 %1582  ;;  %2675 = vrsqrt.f32 %v4489_v16  ;;  %v1674_v36 = vmul.f32 %v1666_v24, %v1666_v24  ;;  %v1192_v38 = vadd.f32 %v1184_v63, %v1132_v30  ;;  %v1187_v21 = vmul.f32 %v1179_v9, %v1179_v9 }
 0x344   :  { %v1647_v42 = vpop.permute.xlu0 %1646  ;;  %5705 = vst [vmem:[#allocation14_spill] sm:$0xff] %v4500_v43  ;;  %v4505_v35 = vmul.f32 %v4498_v0, %v4397_v61  ;;  %v1614_v55 = vsub.f32 %v1583_v13, %v4477_v7  ;;  %v1189_v26 = vmul.f32 %v1181_v25, %v1181_v25  ;;  %v2335_v3 = vmul.f32 %v4498_v0, %v2327_v10 }
 0x345   :  { %v2668_v28 = vpop.eup %2667  ;;  %v1238_v44 = vmul.f32 1.442695, %v1226_v34  ;;  %v5707_v58 = vsub.f32 0.0, %v4306_v53  ;;  %v5708_v15 = vsub.f32 0.0, %v4287_v5  ;;  %v1193_v24 = vadd.f32 %v1185_v45, %v4400_v20 }
 0x346   :  { %5706 = vst [vmem:[#allocation16_spill] sm:$0xff] %v4505_v35  ;;  %v1622_v61 = vmul.f32 %v1614_v55, %v1614_v55  ;;  %v1669_v13 = vsub.f32 %v1647_v42, %v4444_v46  ;;  %v4520_v9 = vmul.f32 %v2668_v28, %v2335_v3  ;;  %v2329_v34 = vmul.f32 34.986835, %v4353_v33 }
 0x347   :  { %v1228_v52 = vmul.f32 %v5707_v58, %v1196_v23  ;;  %v1222_v43 = vmul.f32 %v5708_v15, %v1190_v4  ;;  %v4514_v35 = vpop.eup %2669  ;;  %v4518_v30 = vpop.permute.xlu1 %1586  ;;  %v1219_v53 = vsub.f32 0.0, %v4380_v47  ;;  %2677 = vpow2.f32 %v1232_v12 }
 0x348   :  { %v1655_v63 = vpop.permute.xlu0 %1654  ;;  %5709 = vst [vmem:[#allocation18_spill] sm:$0xff] %v4520_v9  ;;  %v4526_v5 = vmul.f32 %v4514_v35, %v4437_v62  ;;  %v4528_v4 = vadd.f32 %v1674_v36, %v1622_v61  ;;  %v5710_v20 = vsub.f32 0.0, %v4275_v41  ;;  %v1195_v42 = vadd.f32 %v1187_v21, %v4428_v11 }
 0x349   :  { %v1197_v25 = vadd.f32 %v1189_v26, %v4431_v48  ;;  %v2337_v23 = vmul.f32 %v4514_v35, %v2329_v34  ;;  %v2672_v10 = vpop.eup %2671  ;;  %v1221_v55 = vsub.f32 0.0, %v1213_v31  ;;  %2679 = vpow2.f32 %v1238_v44 }
 0x34a   :  { %v1224_v45 = vmul.f32 %v5710_v20, %v1192_v38  ;;  %v1242_v47 = vmul.f32 1.442695, %v1228_v52  ;;  %v2331_v12 = vmul.f32 34.986835, %v4439_v32  ;;  %v1230_v62 = vmul.f32 1.442695, %v1222_v43 }
 0x34b   :  { %v4536_v3 = vpop.eup %2673  ;;  %v5711_v36 = vsub.f32 0.0, %v4309_v40  ;;  %v1677_v41 = vmul.f32 %v1669_v13, %v1669_v13  ;;  %v1595_v38 = vpop.permute.xlu1 %1594  ;;  %v4540_v58 = vmul.f32 %v2672_v10, %v2337_v23  ;;  %v1671_v11 = vsub.f32 %v1655_v63, %v4444_v46 }
 0x34c   :  { %v4544_v48 = vmul.f32 %v4536_v3, %v4471_v60  ;;  %v1617_v31 = vsub.f32 %v1595_v38, %v4477_v7  ;;  %v4548_v21 = vpop.permute.xlu0 %1530  ;;  %v2339_v26 = vmul.f32 %v4536_v3, %v2331_v12  ;;  %v1234_v43 = vmul.f32 1.442695, %v1224_v45  ;;  %v5719_v12 = vld [vmem:[#allocation68_spill] sm:$0xff]  ;;  %v5721_v38 = vld [vmem:[#allocation69_spill] sm:$0xff] }
 0x34d   :  { %v1225_v28 = vmul.f32 %v5711_v36, %v1193_v24  ;;  %5712 = vst [vmem:[#allocation92_spill] sm:$0xff] %v4540_v58  ;;  %v1227_v44 = vmul.f32 %v1219_v53, %v1195_v42  ;;  %v1229_v40 = vmul.f32 %v1221_v55, %v1197_v25  ;;  %v4553_v52 = vadd.f32 %v4281_v54, %v4548_v21  ;;  %v2676_v15 = vpop.eup %2675  ;;  %v5718_v55 = vld [vmem:[#allocation67_spill] sm:$0xff]  ;;  %v5720_v36 = vld [vmem:[#allocation20_spill] sm:$0xff]  ;;  %v5733_v60 = vld [vmem:[#allocation73_spill] sm:$0xff] }
 0x34e   :  { %5713 = vst [vmem:[#allocation44_spill] sm:$0xff] %v4544_v48  ;;  %v4556_v61 = vmul.f32 2.0, %v4298_v17  ;;  %2681 = vpow2.f32 %v1242_v47  ;;  %v1625_v24 = vmul.f32 %v1617_v31, %v1617_v31  ;;  %v4560_v13 = vadd.f32 0.2548296, %v4329_v50  ;;  %v5738_v58 = vld [vmem:[#allocation80_spill] sm:$0xff]  ;;  %v5739_v48 = vld [vmem:[#allocation81_spill] sm:$0xff] }
 0x34f   :  { %v1236_v63 = vmul.f32 1.442695, %v1225_v28  ;;  %2683 = vrcp.f32 %v4553_v52  ;;  %v1603_v34 = vpop.permute.xlu1 %1602  ;;  %v4563_v53 = vmul.f32 %v2676_v15, %v2339_v26  ;;  %v1679_v20 = vmul.f32 %v1671_v11, %v1671_v11  ;;  %v5725_v15 = vld [vmem:[#allocation71_spill] sm:$0xff] }
 0x350   :  { %5714 = vst [vmem:[#allocation94_spill] sm:$0xff] %v4556_v61  ;;  %5715 = vst [vmem:[#allocation57_spill] sm:$0xff] %v4560_v13  ;;  %2685 = vpow2.f32 %v1230_v62  ;;  %v4565_v45 = vadd.f32 %v1677_v41, %v1625_v24  ;;  %v1619_v17 = vsub.f32 %v1603_v34, %v4477_v7  ;;  %v4568_v42 = vpop.permute.xlu0 %1542  ;;  %v1240_v25 = vmul.f32 1.442695, %v1227_v44  ;;  %v5724_v44 = vld [vmem:[#allocation70_spill] sm:$0xff] }
 0x351   :  { %5716 = vst [vmem:[#allocation48_spill] sm:$0xff] %v4563_v53  ;;  %2687 = vpow2.f32 %v1234_v43  ;;  %v1244_v23 = vmul.f32 1.442695, %v1229_v40  ;;  %v4572_v50 = vmul.f32 %v4281_v54, %v4568_v42  ;;  %v4574_v10 = vpop.eup %2677  ;;  %v1323_v47 = vadd.f32 %v4231_v49, %v5718_v55  ;;  %v5737_v53 = vld [vmem:[#allocation79_spill] sm:$0xff] }
 0x352   :  { %5717 = vst [vmem:[#allocation56_spill] sm:$0xff] %v4574_v10  ;;  %v1324_v62 = vadd.f32 %v4231_v49, %v5719_v12  ;;  %v1371_v28 = vmul.f32 %v5720_v36, %v3921_v39  ;;  %v1627_v41 = vmul.f32 %v1619_v17, %v1619_v17  ;;  %2689 = vpow2.f32 %v1236_v63  ;;  %v5726_v39 = vld [vmem:[#allocation72_spill] sm:$0xff]  ;;  %v2799_v10 = vld [vmem:[%s5393_s3] sm:$0x1] }
 0x353   :  { %v1326_v11 = vadd.f32 %v4231_v49, %v5721_v38  ;;  %v1613_v31 = vsub.f32 %v4317_v2, %v4477_v7  ;;  %v4587_v26 = vmul.f32 34.986835, %v4225_v27  ;;  %v4589_v43 = vpop.eup %2679  ;;  %v1325_v40 = vadd.f32 %v4231_v49, %v5724_v44 }
 0x354   :  { %5723 = vst [vmem:[#allocation59_spill] sm:$0xff] %v4589_v43  ;;  %v1328_v24 = vadd.f32 %v4231_v49, %v5725_v15  ;;  %v1327_v63 = vadd.f32 %v4231_v49, %v5726_v39  ;;  %v4597_v34 = vadd.f32 %v1679_v20, %v1627_v41  ;;  %v4599_v17 = vpop.permute.xlu0 %1550  ;;  %v1631_v55 = vpop.permute.xlu1 %1630  ;;  %2691 = vpow2.f32 %v1240_v25  ;;  %v5760_v43 = vld [vmem:[#allocation31_spill] sm:$0xff] }
 0x355   :  { %5722 = vst [vmem:[#allocation52_spill] sm:$0xff] %v4587_v26  ;;  %v4603_v2 = vmul.f32 %v4281_v54, %v4599_v17  ;;  %v1665_v12 = vsub.f32 %v1631_v55, %v4444_v46  ;;  %v4607_v36 = vmul.f32 34.986835, %v4256_v18  ;;  %2693 = vpow2.f32 %v1244_v23 }
 0x356   :  { %5727 = vst [vmem:[#allocation53_spill] sm:$0xff] %v4597_v34  ;;  %v4610_v38 = vmul.f32 %v4244_v29, %v1323_v47  ;;  %v4613_v20 = vmul.f32 %v4201_v51, %v1324_v62  ;;  %v1415_v41 = vrot.slane %v1371_v28, %v5663_v22  ;;  %v1621_v44 = vmul.f32 %v1613_v31, %v1613_v31  ;;  %v5743_v34 = vld [vmem:[#allocation84_spill] sm:$0xff] }
 0x357   :  { %5728 = vst [vmem:[#allocation55_spill] sm:$0xff] %v4603_v2  ;;  %5729 = vst [vmem:[#allocation50_spill] sm:$0xff] %v4607_v36  ;;  %v1615_v25 = vsub.f32 %v4518_v30, %v4477_v7  ;;  %v1673_v15 = vmul.f32 %v1665_v12, %v1665_v12  ;;  %v1797_v39 = vmul.f32 %v4453_v19, %v4242_v37  ;;  %v5758_v36 = vld [vmem:[#allocation28_spill] sm:$0xff]  ;;  %v5759_v2 = vld [vmem:[#allocation29_spill] sm:$0xff] }
 0x358   :  { %v4620_v55 = vpop.eup %2681  ;;  %v1334_v23 = vmul.f32 %v4271_v14, %v1326_v11  ;;  %v4624_v47 = vmul.f32 %v4214_v59, %v1325_v40  ;;  %v4627_v62 = vmul.f32 %v4353_v33, %v1328_v24  ;;  %v4630_v28 = vmul.f32 %v4225_v27, %v1327_v63  ;;  %v4632_v31 = vpop.permute.xlu0 %1799 }
 0x359   :  { %5730 = vst [vmem:[#allocation58_spill] sm:$0xff] %v4620_v55  ;;  %v1639_v30 = vpop.permute.xlu1 %1638  ;;  %v4634_v12 = vpop.eup %2683  ;;  %v1330_v19 = vadd.f32 %v4231_v49, %v5733_v60  ;;  %v1329_v11 = vadd.f32 %v4231_v49, %v5734_v57  ;;  %v4640_v61 = vadd.f32 %v1673_v15, %v1621_v44  ;;  %v1417_v63 = vadd.f32 %v1415_v41, %v5737_v53 }
 0x35a   :  { %5731 = vst [vmem:[#allocation60_spill] sm:$0xff] %v4624_v47  ;;  %5732 = vst [vmem:[#allocation61_spill] sm:$0xff] %v4630_v28  ;;  %v1667_v40 = vsub.f32 %v1639_v30, %v4444_v46  ;;  %v4643_v24 = vpop.eup %2685  ;;  %v1416_v9 = vadd.f32 %v1415_v41, %v5738_v58  ;;  %v1419_v13 = vadd.f32 %v1415_v41, %v5739_v48  ;;  %v5741_v30 = vld [vmem:[#allocation82_spill] sm:$0xff] }
 0x35b   :  { %5735 = vst [vmem:[#allocation62_spill] sm:$0xff] %v4640_v61  ;;  %5736 = vst [vmem:[#allocation63_spill] sm:$0xff] %v4643_v24  ;;  %v4650_v55 = vmul.f32 %v4634_v12, %v4296_v1  ;;  %v4652_v60 = vpop.eup %2687  ;;  %v1616_v49 = vsub.f32 %v4351_v56, %v4477_v7  ;;  %v1623_v57 = vmul.f32 %v1615_v25, %v1615_v25  ;;  %v5742_v24 = vld [vmem:[#allocation83_spill] sm:$0xff] }
 0x35c   :  { %v4657_v44 = vrot.slane %v1797_v39, %v5663_v22  ;;  %v1675_v15 = vmul.f32 %v1667_v40, %v1667_v40  ;;  %v1418_v53 = vadd.f32 %v1415_v41, %v5741_v30  ;;  %v1421_v58 = vadd.f32 %v1415_v41, %v5742_v24  ;;  %v2798_v1 = vld [vmem:[%s5393_s3 + $0x3] sm:$0x1]  ;;  %v1812_v25 = vpop.permute.xlu0 %1811  ;;  %v4668_v39 = vpop.eup %2689 }
 0x35d   :  { %5740 = vst [vmem:[#allocation64_spill] sm:$0xff] %v4650_v55  ;;  %v1420_v48 = vadd.f32 %v1415_v41, %v5743_v34  ;;  %v1464_v56 = vmul.f32 %v2799_v10, %v2798_v1  ;;  %v1643_v28 = vpop.permute.xlu1 %1642  ;;  %5744 = vst [vmem:[#allocation65_spill] sm:$0xff] %v4668_v39  ;;  %v1338_v40 = vmul.f32 %v4439_v32, %v1330_v19 }
 0x35e   :  { %v4671_v30 = vadd.f32 %v1675_v15, %v1623_v57  ;;  %v1837_v24 = vadd.f32 %v4657_v44, %v1812_v25  ;;  %v1668_v34 = vsub.f32 %v1643_v28, %v4444_v46  ;;  %v4676_v61 = vmul.f32 %v4256_v18, %v1329_v11  ;;  %v4686_v39 = vpop.eup %2691 }
 0x35f   :  { %v4679_v47 = vmul.f32 %v4201_v51, %v1417_v63  ;;  %v4682_v10 = vmul.f32 %v4244_v29, %v1416_v9  ;;  %v1618_v1 = vsub.f32 %v4391_v8, %v4477_v7  ;;  %5747 = vst [vmem:[#allocation20_spill] sm:$0xff] %v4686_v39  ;;  %v4689_v19 = vmul.f32 %v4271_v14, %v1419_v13  ;;  %v4692_v11 = vpop.eup %2693 }
 0x360   :  { %5745 = vst [vmem:[#allocation67_spill] sm:$0xff] %v4676_v61  ;;  %v1624_v57 = vmul.f32 %v1616_v49, %v1616_v49  ;;  %v1845_v28 = vmul.f32 %v4498_v0, %v1837_v24  ;;  %v1676_v15 = vmul.f32 %v1668_v34, %v1668_v34  ;;  %5748 = vst [vmem:[#allocation69_spill] sm:$0xff] %v4692_v11  ;;  %v1820_v39 = vpop.permute.xlu0 %1819 }
 0x361   :  { %5746 = vst [vmem:[#allocation68_spill] sm:$0xff] %v4682_v10  ;;  %v4695_v63 = vmul.f32 %v4214_v59, %v1418_v53  ;;  %v4698_v9 = vmul.f32 %v4353_v33, %v1421_v58  ;;  %v4701_v25 = vmul.f32 %v4225_v27, %v1420_v48  ;;  %v1508_v8 = vrot.slane %v1464_v56, %v5663_v22  ;;  %v1651_v13 = vpop.permute.xlu1 %1650  ;;  %v972_v53 = vld [vmem:[%s5393_s3 + $0x7] sm:$0x1]  ;;  %v5752_v58 = vld [vmem:[#allocation85_spill] sm:$0xff]  ;;  %v5753_v48 = vld [vmem:[#allocation86_spill] sm:$0xff] }
 0x362   :  { %v4704_v61 = vsub.f32 %v1334_v23, %v1845_v28  ;;  %v4706_v49 = vadd.f32 %v1676_v15, %v1624_v57  ;;  %v1839_v24 = vadd.f32 %v4657_v44, %v1820_v39  ;;  %v1670_v34 = vsub.f32 %v1651_v13, %v4444_v46  ;;  %v5754_v23 = vld [vmem:[#allocation37_spill] sm:$0xff] }
 0x363   :  { %5749 = vst [vmem:[#allocation70_spill] sm:$0xff] %v4695_v63  ;;  %5750 = vst [vmem:[#allocation71_spill] sm:$0xff] %v4701_v25  ;;  %v1423_v11 = vadd.f32 %v1415_v41, %v5752_v58  ;;  %v1422_v25 = vadd.f32 %v1415_v41, %v5753_v48  ;;  %v1626_v63 = vmul.f32 %v1618_v1, %v1618_v1  ;;  %v5755_v13 = vld [vmem:[#allocation25_spill] sm:$0xff] }
 0x364   :  { %5751 = vst [vmem:[#allocation72_spill] sm:$0xff] %v4706_v49  ;;  %v1850_v56 = vmul.f32 %v4416_v6, %v4242_v37  ;;  %v1620_v57 = vsub.f32 %v5754_v23, %v4477_v7  ;;  %v4721_v39 = vadd.f32 %v4281_v54, %v4568_v42  ;;  %v1847_v28 = vmul.f32 %v4514_v35, %v1839_v24  ;;  %v1828_v41 = vpop.permute.xlu0 %1827  ;;  %v5757_v23 = vld [vmem:[#allocation77_spill] sm:$0xff] }
 0x365   :  { %v1678_v15 = vmul.f32 %v1670_v34, %v1670_v34  ;;  %v1510_v49 = vadd.f32 %v1508_v8, %v5755_v13  ;;  %v1750_v58 = vmul.f32 %v4281_v54, %v4548_v21  ;;  %v1659_v1 = vpop.permute.xlu1 %1658  ;;  %v4728_v48 = vrot.slane %v972_v53, %v5663_v22 }
 0x366   :  { %v1903_v6 = vmul.f32 %v972_v53, %v4242_v37  ;;  %v4732_v7 = vsub.f32 %v4627_v62, %v1847_v28  ;;  %v1841_v24 = vadd.f32 %v4657_v44, %v1828_v41  ;;  %v1672_v34 = vsub.f32 %v1659_v1, %v4444_v46  ;;  %v5761_v53 = vld [vmem:[#allocation78_spill] sm:$0xff]  ;;  %v5762_v46 = vld [vmem:[#allocation87_spill] sm:$0xff] }
 0x367   :  { %v4734_v42 = vadd.f32 %v1678_v15, %v1626_v63  ;;  %v1509_v13 = vadd.f32 %v1508_v8, %v5757_v23  ;;  %v1512_v21 = vadd.f32 %v1508_v8, %v5758_v36  ;;  %v1511_v10 = vadd.f32 %v1508_v8, %v5759_v2 }
 0x368   :  { %v1514_v26 = vadd.f32 %v1508_v8, %v5760_v43  ;;  %v1628_v55 = vmul.f32 %v1620_v57, %v1620_v57  ;;  %2695 = vrcp.f32 %v4721_v39  ;;  %v1849_v37 = vmul.f32 %v4536_v3, %v1841_v24  ;;  %v1857_v36 = vpop.permute.xlu0 %1856  ;;  %v5763_v43 = vld [vmem:[#allocation34_spill] sm:$0xff] }
 0x369   :  { %5756 = vst [vmem:[#allocation73_spill] sm:$0xff] %v4734_v42  ;;  %v1680_v62 = vmul.f32 %v1672_v34, %v1672_v34  ;;  %v4745_v63 = vmul.f32 %v4439_v32, %v1423_v11  ;;  %v1513_v28 = vadd.f32 %v1508_v8, %v5761_v53  ;;  %v1516_v15 = vadd.f32 %v1508_v8, %v5762_v46  ;;  %v1695_v24 = vpop.permute.xlu1 %1694  ;;  %v5772_v46 = vld [vmem:[#allocation47_spill] sm:$0xff] }
 0x36a   :  { %v1758_v41 = vmul.f32 %v4634_v12, %v1750_v58  ;;  %v4751_v2 = vmul.f32 %v4256_v18, %v1422_v25  ;;  %v1515_v57 = vadd.f32 %v1508_v8, %v5763_v43  ;;  %v4754_v1 = vsub.f32 %v1338_v40, %v1849_v37  ;;  %v5774_v43 = vld [vmem:[#allocation89_spill] sm:$0xff] }
 0x36b   :  { %v4756_v23 = vadd.f32 %v1680_v62, %v1628_v55  ;;  %v4759_v11 = vmul.f32 %v4201_v51, %v1510_v49  ;;  %v4762_v34 = vrot.slane %v1850_v56, %v5663_v22  ;;  %v1726_v53 = vsub.f32 %v1695_v24, %v4728_v48  ;;  %v5775_v24 = vld [vmem:[#allocation36_spill] sm:$0xff] }
 0x36c   :  { %v4766_v58 = vrot.slane %v1903_v6, %v5663_v22  ;;  %v4769_v25 = vmul.f32 %v4244_v29, %v1509_v13  ;;  %v4772_v40 = vmul.f32 %v4271_v14, %v1512_v21  ;;  %v4775_v55 = vmul.f32 %v4214_v59, %v1511_v10  ;;  %v1865_v6 = vpop.permute.xlu0 %1864  ;;  %v5765_v14 = vld [vmem:[#allocation24_spill] sm:$0xff]  ;;  %v5766_v13 = vld [vmem:[#allocation46_spill] sm:$0xff]  ;;  %v5767_v59 = vld [vmem:[#allocation49_spill] sm:$0xff] }
 0x36d   :  { %5764 = vst [vmem:[#allocation74_spill] sm:$0xff] %v4756_v23  ;;  %v4778_v51 = vmul.f32 %v4353_v33, %v1514_v26  ;;  %v4781_v8 = vmul.f32 %v4225_v27, %v1513_v28  ;;  %v4784_v49 = vmul.f32 %v4439_v32, %v1516_v15  ;;  %v1766_v22 = vsub.f32 0.0, %v1758_v41  ;;  %v1699_v26 = vpop.permute.xlu1 %1698  ;;  %v5768_v27 = vld [vmem:[#allocation35_spill] sm:$0xff] }
 0x36e   :  { %v1734_v56 = vmul.f32 %v1726_v53, %v1726_v53  ;;  %v4787_v29 = vmul.f32 %v4256_v18, %v1515_v57  ;;  %v4791_v21 = vmul.f32 %v5766_v13, %v5765_v14  ;;  %2697 = vrcp.f32 %v5767_v59  ;;  %v5769_v10 = vld [vmem:[#allocation91_spill] sm:$0xff]  ;;  %v5771_v18 = vld [vmem:[#allocation21_spill] sm:$0xff] }
 0x36f   :  { %v1890_v33 = vadd.f32 %v4762_v34, %v1865_v6  ;;  %v1759_v37 = vmul.f32 %v5769_v10, %v5768_v27  ;;  %v5770_v32 = vld [vmem:[#allocation51_spill] sm:$0xff]  ;;  %v1727_v28 = vsub.f32 %v1699_v26, %v4728_v48  ;;  %v4802_v15 = vmul.f32 %v5772_v46, %v5771_v18  ;;  %v5777_v27 = vld [vmem:[#allocation12_spill] sm:$0xff]  ;;  %v5779_v46 = vld [vmem:[#allocation41_spill] sm:$0xff] }
 0x370   :  { %2699 = vrcp.f32 %v5770_v32  ;;  %v1742_v62 = vadd.f32 %v1734_v56, %v4528_v4  ;;  %v5773_v41 = vld [vmem:[#allocation27_spill] sm:$0xff]  ;;  %v1888_v13 = vadd.f32 %v4762_v34, %v1857_v36  ;;  %v1873_v59 = vpop.permute.xlu0 %1872  ;;  %v5778_v32 = vld [vmem:[#allocation10_spill] sm:$0xff] }
 0x371   :  { %v4806_v57 = vmul.f32 %v5774_v43, %v5773_v41  ;;  %2701 = vrcp.f32 %v5775_v24  ;;  %v1898_v53 = vmul.f32 %v4498_v0, %v1890_v33  ;;  %v5776_v6 = vld [vmem:[#allocation75_spill] sm:$0xff]  ;;  %v1735_v56 = vmul.f32 %v1727_v28, %v1727_v28  ;;  %v1707_v43 = vpop.permute.xlu1 %1706 }
 0x372   :  { %v1957_v14 = vadd.f32 %v4553_v52, %v5776_v6  ;;  %v4813_v4 = vmul.f32 %v1766_v22, %v1742_v62  ;;  %v4815_v26 = vpop.eup %2695  ;;  %v4819_v18 = vmul.f32 %v5778_v32, %v5777_v27  ;;  %2703 = vrcp.f32 %v5779_v46 }
 0x373   :  { %v1983_v41 = vsub.f32 %v4689_v19, %v1898_v53  ;;  %v1892_v33 = vadd.f32 %v4762_v34, %v1873_v59  ;;  %v1767_v24 = vsub.f32 0.0, %v1759_v37  ;;  %v1761_v36 = vmul.f32 %v4815_v26, %v4572_v50 }
 0x374   :  { %v1743_v22 = vadd.f32 %v1735_v56, %v4671_v30  ;;  %v1729_v62 = vsub.f32 %v1707_v43, %v4728_v48  ;;  %2705 = vrcp.f32 %v4489_v16  ;;  %v1975_v28 = vmul.f32 %v4704_v61, %v4704_v61  ;;  %v1881_v59 = vpop.permute.xlu0 %1880  ;;  %v5780_v43 = vld [vmem:[#allocation26_spill] sm:$0xff] }
 0x375   :  { %v1991_v27 = vmul.f32 %v1983_v41, %v1983_v41  ;;  %v1900_v46 = vmul.f32 %v4514_v35, %v1892_v33  ;;  %2707 = vrcp.f32 %v1957_v14  ;;  %v1896_v19 = vmul.f32 %v4634_v12, %v1888_v13 }
 0x376   :  { %v1775_v53 = vmul.f32 %v1767_v24, %v1743_v22  ;;  %v1737_v37 = vmul.f32 %v1729_v62, %v1729_v62  ;;  %2709 = vrsqrt.f32 %v1957_v14  ;;  %v1894_v56 = vadd.f32 %v4762_v34, %v1881_v59  ;;  %v1804_v23 = vpop.permute.xlu1 %1803  ;;  %v5781_v62 = vld [vmem:[#allocation93_spill] sm:$0xff] }
 0x377   :  { %v4833_v50 = vadd.f32 %v1991_v27, %v1975_v28  ;;  %v1985_v30 = vsub.f32 %v4698_v9, %v1900_v46  ;;  %v1769_v16 = vsub.f32 0.0, %v1761_v36  ;;  %v1960_v61 = vadd.f32 %v4721_v39, %v5780_v43  ;;  %v5782_v28 = vld [vmem:[#allocation39_spill] sm:$0xff] }
 0x378   :  { %v1785_v41 = vmul.f32 1.442695, %v1775_v53  ;;  %v1745_v33 = vadd.f32 %v1737_v37, %v4565_v45  ;;  %v2698_v42 = vpop.eup %2697  ;;  %v1977_v13 = vmul.f32 %v4732_v7, %v4732_v7  ;;  %v1902_v14 = vmul.f32 %v4536_v3, %v1894_v56  ;;  %v1910_v53 = vpop.permute.xlu0 %1909 }
 0x379   :  { %v1993_v24 = vmul.f32 %v1985_v30, %v1985_v30  ;;  %v1835_v22 = vadd.f32 %v4657_v44, %v1804_v23  ;;  %v2033_v36 = vmul.f32 %v5782_v28, %v5781_v62  ;;  %v1981_v27 = vsub.f32 %v4679_v47, %v1896_v19 }
 0x37a   :  { %v2700_v9 = vpop.eup %2699  ;;  %2711 = vpow2.f32 %v1785_v41  ;;  %v1777_v46 = vmul.f32 %v1769_v16, %v1745_v33  ;;  %v1987_v59 = vsub.f32 %v4745_v63, %v1902_v14  ;;  %v1941_v30 = vadd.f32 %v4766_v58, %v1910_v53  ;;  %v1808_v47 = vpop.permute.xlu1 %1807  ;;  %v5784_v14 = vld [vmem:[#allocation43_spill] sm:$0xff] }
 0x37b   :  { %v2702_v45 = vpop.eup %2701  ;;  %v4847_v37 = vadd.f32 %v1993_v24, %v1977_v13  ;;  %v1843_v7 = vmul.f32 %v4634_v12, %v1835_v22  ;;  %2713 = vrcp.f32 %v1960_v61  ;;  %v1567_v56 = vadd.f32 %v4281_v54, %v4599_v17  ;;  %v5783_v24 = vld [vmem:[#allocation42_spill] sm:$0xff] }
 0x37c   :  { %v1789_v62 = vmul.f32 1.442695, %v1777_v46  ;;  %v2704_v19 = vpop.eup %2703  ;;  %v1979_v16 = vmul.f32 %v4754_v1, %v4754_v1  ;;  %v1995_v41 = vmul.f32 %v1987_v59, %v1987_v59  ;;  %v1949_v63 = vmul.f32 %v4634_v12, %v1941_v30  ;;  %v1918_v17 = vpop.permute.xlu0 %1917 }
 0x37d   :  { %v1965_v33 = vsub.f32 %v4613_v20, %v1843_v7  ;;  %v4860_v13 = vmul.f32 %v2698_v42, %v4791_v21  ;;  %v2035_v22 = vmul.f32 %v5784_v14, %v5783_v24  ;;  %v1834_v54 = vadd.f32 %v4657_v44, %v4632_v31  ;;  %v5785_v42 = vld [vmem:[#allocation16_spill] sm:$0xff] }
 0x37e   :  { %2715 = vpow2.f32 %v1789_v62  ;;  %v2706_v28 = vpop.eup %2705  ;;  %v1989_v46 = vmul.f32 %v1981_v27, %v1981_v27  ;;  %v4866_v53 = vadd.f32 %v1995_v41, %v1979_v16  ;;  %v2005_v20 = vsub.f32 %v4759_v11, %v1949_v63  ;;  %v5786_v7 = vld [vmem:[#allocation76_spill] sm:$0xff]  ;;  %v1816_v31 = vpop.permute.xlu1 %1815 }
 0x37f   :  { %v1973_v1 = vmul.f32 %v1965_v33, %v1965_v33  ;;  %v2708_v59 = vpop.eup %2707  ;;  %v4870_v12 = vmul.f32 %v2700_v9, %v4802_v15  ;;  %v1962_v30 = vadd.f32 %v1567_v56, %v5786_v7  ;;  %v1943_v24 = vadd.f32 %v4766_v58, %v1918_v17 }
 0x380   :  { %v2710_v62 = vpop.eup %2709  ;;  %v2029_v27 = vmul.f32 %v4553_v52, %v5776_v6  ;;  %2717 = vrsqrt.f32 %v1960_v61  ;;  %v2013_v41 = vmul.f32 %v2005_v20, %v2005_v20  ;;  %v2047_v11 = vmul.f32 %v2702_v45, %v4806_v57  ;;  %v1926_v33 = vpop.permute.xlu0 %1925 }
 0x381   :  { %v1997_v16 = vadd.f32 %v1989_v46, %v1973_v1  ;;  %2719 = vrcp.f32 %v1567_v56  ;;  %v1783_v15 = vmul.f32 1.442695, %v4813_v4  ;;  %v1951_v9 = vmul.f32 %v4498_v0, %v1943_v24  ;;  %v5789_v24 = vld [vmem:[#allocation59_spill] sm:$0xff] }
 0x382   :  { %v2045_v63 = vmul.f32 %v2708_v59, %v2029_v27  ;;  %v1842_v14 = vmul.f32 %v5778_v32, %v1834_v54  ;;  %v1945_v21 = vadd.f32 %v4766_v58, %v1926_v33  ;;  %v1770_v52 = vsub.f32 0.0, %v4526_v5  ;;  %v1824_v57 = vpop.permute.xlu1 %1823 }
 0x383   :  { %v2021_v17 = vadd.f32 %v2013_v41, %v1997_v16  ;;  %v2049_v6 = vmul.f32 %v2704_v19, %v2033_v36  ;;  %2721 = vrcp.f32 %v1962_v30  ;;  %v2007_v61 = vsub.f32 %v4772_v40, %v1951_v9 }
 0x384   :  { %v2712_v23 = vpop.eup %2711  ;;  %v2051_v45 = vmul.f32 %v2706_v28, %v2035_v22  ;;  %2723 = vrsqrt.f32 %v1962_v30  ;;  %v1953_v0 = vmul.f32 %v4514_v35, %v1945_v21  ;;  %v2032_v54 = vmul.f32 %v4721_v39, %v5780_v43  ;;  %v1934_v20 = vpop.permute.xlu0 %1933  ;;  %v5787_v43 = vld [vmem:[#allocation64_spill] sm:$0xff] }
 0x385   :  { %v4884_v4 = vmul.f32 %v2045_v63, %v2021_v17  ;;  %v2714_v46 = vpop.eup %2713  ;;  %2725 = vpow2.f32 %v1783_v15  ;;  %v2015_v1 = vmul.f32 %v2007_v61, %v2007_v61  ;;  %v4890_v59 = vmul.f32 %v2712_v23, %v4652_v60 }
 0x386   :  { %v2034_v36 = vmul.f32 %v1567_v56, %v5786_v7  ;;  %v1964_v40 = vsub.f32 %v4610_v38, %v1842_v14  ;;  %v2009_v19 = vsub.f32 %v4778_v51, %v1953_v0  ;;  %v1947_v22 = vadd.f32 %v4766_v58, %v1934_v20  ;;  %v1853_v39 = vpop.permute.xlu1 %1852  ;;  %v5791_v20 = vld [vmem:[#allocation55_spill] sm:$0xff] }
 0x387   :  { %v1836_v35 = vadd.f32 %v4657_v44, %v1808_v47  ;;  %v2023_v21 = vadd.f32 %v2015_v1, %v4833_v50  ;;  %v4899_v30 = vmul.f32 %v2710_v62, %v5787_v43  ;;  %vm2061_vm9 = vcmp.lt.f32.partialorder %v4884_v4, 1e-08  ;;  %v5788_v50 = vld [vmem:[#allocation52_spill] sm:$0xff] }
 0x388   :  { %v2716_v28 = vpop.eup %2715  ;;  %v1838_v60 = vadd.f32 %v4657_v44, %v1816_v31  ;;  %v2017_v23 = vmul.f32 %v2009_v19, %v2009_v19  ;;  %v1955_v38 = vmul.f32 %v4536_v3, %v1947_v22  ;;  %v1887_v51 = vadd.f32 %v4762_v34, %v1853_v39 }
 0x389   :  { %v4905_v56 = vmul.f32 %v2047_v11, %v2023_v21  ;;  %v4910_v47 = vsel %vm2061_vm9, 1.0, %v4884_v4  ;;  %v2336_v7 = vmul.f32 %v4815_v26, %v5788_v50  ;;  %v4915_v62 = vmul.f32 %v2716_v28, %v5789_v24  ;;  %v1691_v11 = vpop.permute.xlu0 %1690  ;;  %v5792_v21 = vld [vmem:[#allocation50_spill] sm:$0xff] }
 0x38a   :  { %v2718_v27 = vpop.eup %2717  ;;  %v1972_v31 = vmul.f32 %v1964_v40, %v1964_v40  ;;  %v2025_v16 = vadd.f32 %v2017_v23, %v4847_v37  ;;  %v2011_v3 = vsub.f32 %v4784_v49, %v1955_v38  ;;  %v1895_v41 = vmul.f32 %v5778_v32, %v1887_v51  ;;  %v1861_v14 = vpop.permute.xlu1 %1860  ;;  %v5790_v49 = vld [vmem:[#allocation68_spill] sm:$0xff] }
 0x38b   :  { %v4920_v15 = vpop.eup %2719  ;;  %v4922_v9 = vmul.f32 %v2714_v46, %v2032_v54  ;;  %v1844_v33 = vmul.f32 %v5769_v10, %v1836_v35  ;;  %v1725_v63 = vsub.f32 %v1691_v11, %v4728_v48  ;;  %2727 = vrsqrt.f32 %v4910_v47 }
 0x38c   :  { %v1846_v17 = vmul.f32 %v4815_v26, %v1838_v60  ;;  %v4928_v61 = vmul.f32 %v2049_v6, %v2025_v16  ;;  %v2019_v37 = vmul.f32 %v2011_v3, %v2011_v3  ;;  %v1980_v0 = vsub.f32 %v5790_v49, %v1895_v41  ;;  %v5793_v60 = vld [vmem:[#allocation60_spill] sm:$0xff] }
 0x38d   :  { %v2722_v1 = vpop.eup %2721  ;;  %v1763_v40 = vmul.f32 %v4920_v15, %v5791_v20  ;;  %v1840_v46 = vadd.f32 %v4657_v44, %v1824_v57  ;;  %v1733_v54 = vmul.f32 %v1725_v63, %v1725_v63  ;;  %vm2063_vm10 = vcmp.lt.f32.partialorder %v4905_v56, 1e-08  ;;  %v1703_v35 = vpop.permute.xlu0 %1702  ;;  %v5794_v44 = vld [vmem:[#allocation62_spill] sm:$0xff] }
 0x38e   :  { %v2724_v19 = vpop.eup %2723  ;;  %v2027_v22 = vadd.f32 %v2019_v37, %v4866_v53  ;;  %v1988_v28 = vmul.f32 %v1980_v0, %v1980_v0  ;;  %v2338_v6 = vmul.f32 %v4920_v15, %v5792_v21  ;;  %v4941_v39 = vsel %vm2063_vm10, 1.0, %v4905_v56  ;;  %v1869_v51 = vpop.permute.xlu1 %1868  ;;  %v5795_v53 = vld [vmem:[#allocation61_spill] sm:$0xff] }
 0x38f   :  { %v2726_v43 = vpop.eup %2725  ;;  %v1966_v23 = vsub.f32 %v5793_v60, %v1844_v33  ;;  %v1741_v57 = vadd.f32 %v1733_v54, %v5794_v44  ;;  %v1728_v38 = vsub.f32 %v1703_v35, %v4728_v48  ;;  %2729 = vrsqrt.f32 %v4941_v39  ;;  %v5797_v54 = vld [vmem:[#allocation56_spill] sm:$0xff] }
 0x390   :  { %v1968_v50 = vsub.f32 %v5795_v53, %v1846_v17  ;;  %v4948_v24 = vmul.f32 %v2051_v45, %v2027_v22  ;;  %v4950_v16 = vadd.f32 %v1988_v28, %v1972_v31  ;;  %v1889_v3 = vadd.f32 %v4762_v34, %v1861_v14  ;;  %v5798_v14 = vld [vmem:[#allocation72_spill] sm:$0xff] }
 0x391   :  { %v1848_v41 = vmul.f32 %v4920_v15, %v1840_v46  ;;  %v5796_v11 = vsub.f32 0.0, %v4819_v18  ;;  %v1736_v63 = vmul.f32 %v1728_v38, %v1728_v38  ;;  %v4956_v37 = vmul.f32 %v2718_v27, %v2336_v7  ;;  %v1715_v20 = vpop.permute.xlu0 %1714  ;;  %v4982_v60 = vld [vmem:[%s5393_s3 + $0x8] ss:$0 sm:$0xff]  ;;  %v5801_v38 = vld [vmem:[#allocation53_spill] sm:$0xff] }
 0x392   :  { %v1771_v49 = vsub.f32 0.0, %v1763_v40  ;;  %v4958_v0 = vmul.f32 %v2722_v1, %v2034_v36  ;;  %v2401_v17 = vmul.f32 %v2726_v43, %v5797_v54  ;;  %v4961_v45 = vmul.f32 %v2724_v19, %v2338_v6  ;;  %v1877_v18 = vpop.permute.xlu1 %1876  ;;  %v5799_v40 = vld [vmem:[#allocation67_spill] sm:$0xff] }
 0x393   :  { %v1773_v33 = vmul.f32 %v5796_v11, %v1741_v57  ;;  %v4963_v31 = vmul.f32 %v1966_v23, %v1966_v23  ;;  %v1744_v28 = vadd.f32 %v1736_v63, %v5798_v14  ;;  %v1731_v46 = vsub.f32 %v1715_v20, %v4728_v48 }
 0x394   :  { %v4967_v35 = vmul.f32 %v1968_v50, %v1968_v50  ;;  %v1897_v7 = vmul.f32 %v5769_v10, %v1889_v3  ;;  %v1891_v36 = vadd.f32 %v4762_v34, %v1869_v51  ;;  %v4972_v27 = vmul.f32 0.33333334, %v4884_v4  ;;  %v5802_v3 = vld [vmem:[#allocation70_spill] sm:$0xff] }
 0x395   :  { %v1781_v22 = vmul.f32 1.442695, %v1773_v33  ;;  %v4974_v1 = vpop.eup %2727  ;;  %v1970_v19 = vsub.f32 %v5799_v40, %v1848_v41  ;;  %v5800_v21 = vsub.f32 0.0, %v5785_v42  ;;  %v1739_v43 = vmul.f32 %v1731_v46, %v1731_v46 }
 0x396   :  { %v1893_v23 = vadd.f32 %v4762_v34, %v1877_v18  ;;  %v2084_v44 = vmul.f32 %v4974_v1, %v4910_v47  ;;  %vm2085_vm11 = vcmp.eq.f32.partialorder %v4910_v47, inf  ;;  %vm2087_vm12 = vcmp.eq.f32.partialorder %v4910_v47, 0.0  ;;  %v2362_v42 = vpop.permute.xlu0 %2361  ;;  %v1906_v50 = vpop.permute.xlu1 %1905 }
 0x397   :  { %2731 = vpow2.f32 %v1781_v22  ;;  %v1776_v6 = vmul.f32 %v5800_v21, %v1744_v28  ;;  %v1747_v51 = vadd.f32 %v1739_v43, %v5801_v38  ;;  %v2088_v53 = vand.u32 2147483648, %v4910_v47  ;;  %v5803_v21 = vld [vmem:[#allocation71_spill] sm:$0xff] }
 0x398   :  { %vm2099_vm13 = vcmp.eq.f32.partialorder %v4941_v39, inf  ;;  %v1982_v41 = vsub.f32 %v5802_v3, %v1897_v7  ;;  %v1899_v34 = vmul.f32 %v4815_v26, %v1891_v36  ;;  %v2086_v11 = vsel %vm2085_vm11, %v4910_v47, %v2084_v44 }
 0x399   :  { %v1787_v57 = vmul.f32 1.442695, %v1776_v6  ;;  %v2393_v33 = vmul.f32 %v4982_v60, %v2362_v42  ;;  %v4996_v63 = vpop.eup %2729  ;;  %v1779_v20 = vmul.f32 %v1771_v49, %v1747_v51  ;;  %v4998_v54 = vsel %vm2087_vm12, %v2088_v53, %v2086_v11 }
 0x39a   :  { %v1940_v22 = vadd.f32 %v4766_v58, %v1906_v50  ;;  %v1901_v14 = vmul.f32 %v4920_v15, %v1893_v23  ;;  %v2133_v28 = vmul.f32 0.3275911, %v4998_v54  ;;  %vm2101_vm14 = vcmp.eq.f32.partialorder %v4941_v39, 0.0  ;;  %v2374_v7 = vpop.permute.xlu0 %2373  ;;  %v1914_v36 = vpop.permute.xlu1 %1913 }
 0x39b   :  { %2733 = vpow2.f32 %v1787_v57  ;;  %v2409_v46 = vmul.f32 %v2401_v17, %v2393_v33  ;;  %v1793_v18 = vmul.f32 1.442695, %v1779_v20  ;;  %v2098_v40 = vmul.f32 %v4996_v63, %v4941_v39 }
 0x39c   :  { %v1948_v47 = vmul.f32 %v5778_v32, %v1940_v22  ;;  %v2102_v49 = vand.u32 2147483648, %v4941_v39  ;;  %v1984_v6 = vsub.f32 %v5803_v21, %v1899_v34  ;;  %v2141_v43 = vadd.f32 1.0, %v2133_v28 }
 0x39d   :  { %v5010_v23 = vmul.f32 %v2409_v46, %v4899_v30  ;;  %vm2065_vm7 = vcmp.lt.f32.partialorder %v4928_v61, 1e-08  ;;  %2735 = vpow2.f32 %v1793_v18  ;;  %v2396_v32 = vmul.f32 %v4982_v60, %v2374_v7 }
 0x39e   :  { %v2004_v17 = vsub.f32 %v4769_v25, %v1948_v47  ;;  %v1942_v44 = vadd.f32 %v4766_v58, %v1914_v36  ;;  %v1990_v57 = vmul.f32 %v1982_v41, %v1982_v41  ;;  %v1986_v38 = vsub.f32 %v4751_v2, %v1901_v14  ;;  %v1922_v3 = vpop.permute.xlu1 %1921  ;;  %v5804_v2 = vld [vmem:[#allocation63_spill] sm:$0xff] }
 0x39f   :  { %2737 = vrcp.f32 %v2141_v43  ;;  %v2100_v51 = vsel %vm2099_vm13, %v4941_v39, %v2098_v40  ;;  %v2412_v53 = vmul.f32 %v4915_v62, %v2396_v32  ;;  %v1992_v34 = vmul.f32 %v1984_v6, %v1984_v6 }
 0x3a0   :  { %v2012_v30 = vmul.f32 %v2004_v17, %v2004_v17  ;;  %v1950_v50 = vmul.f32 %v5769_v10, %v1942_v44  ;;  %v5024_v25 = vsel %vm2101_vm14, %v2102_v49, %v2100_v51  ;;  %v1944_v41 = vadd.f32 %v4766_v58, %v1922_v3  ;;  %v5806_v51 = vld [vmem:[#allocation58_spill] sm:$0xff] }
 0x3a1   :  { %v2732_v42 = vpop.eup %2731  ;;  %v5033_v33 = vsel %vm2065_vm7, 1.0, %v4928_v61  ;;  %v5037_v10 = vmul.f32 %v2412_v53, %v4956_v37  ;;  %v2135_v20 = vmul.f32 0.3275911, %v5024_v25  ;;  %v1978_v22 = vmul.f32 %v1970_v19, %v1970_v19 }
 0x3a2   :  { %v5028_v11 = vmul.f32 %v2732_v42, %v5804_v2  ;;  %v2020_v62 = vadd.f32 %v2012_v30, %v4950_v16  ;;  %v2006_v39 = vsub.f32 %v4775_v55, %v1950_v50  ;;  %v1998_v14 = vadd.f32 %v1990_v57, %v4963_v31  ;;  %v1930_v36 = vpop.permute.xlu1 %1929  ;;  %v2382_v55 = vpop.permute.xlu0 %2381  ;;  %v5805_v31 = vld [vmem:[#allocation65_spill] sm:$0xff] }
 0x3a3   :  { %v1952_v28 = vmul.f32 %v4815_v26, %v1944_v41  ;;  %v5044_v46 = vmul.f32 0.33333334, %v4905_v56  ;;  %v1994_v47 = vmul.f32 %v1986_v38, %v1986_v38  ;;  %v2229_v7 = vsub.f32 0.0, %v4998_v54 }
 0x3a4   :  { %v5048_v16 = vmul.f32 %v4860_v13, %v2020_v62  ;;  %v2014_v37 = vmul.f32 %v2006_v39, %v2006_v39  ;;  %v1946_v19 = vadd.f32 %v4766_v58, %v1930_v36  ;;  %2739 = vrsqrt.f32 %v5033_v33  ;;  %v5809_v36 = vld [vmem:[#allocation90_spill] sm:$0xff] }
 0x3a5   :  { %v2734_v18 = vpop.eup %2733  ;;  %v2008_v40 = vsub.f32 %v4781_v8, %v1952_v28  ;;  %v2000_v26 = vadd.f32 %v1992_v34, %v4967_v35  ;;  %v2143_v6 = vadd.f32 1.0, %v2135_v20  ;;  %v2398_v17 = vmul.f32 %v4982_v60, %v2382_v55  ;;  %v5807_v28 = vld [vmem:[#allocation73_spill] sm:$0xff] }
 0x3a6   :  { %v5053_v49 = vmul.f32 %v2734_v18, %v5805_v31  ;;  %v2022_v21 = vadd.f32 %v2014_v37, %v1998_v14  ;;  %vm2060_vm15 = vcmp.lt.f32.partialorder %v5048_v16, 1e-08  ;;  %v1954_v43 = vmul.f32 %v4920_v15, %v1946_v19  ;;  %v5808_v37 = vld [vmem:[#allocation57_spill] sm:$0xff] }
 0x3a7   :  { %v2016_v13 = vmul.f32 %v2008_v40, %v2008_v40  ;;  %v5063_v58 = vsel %vm2060_vm15, 1.0, %v5048_v16  ;;  %v2736_v8 = vpop.eup %2735  ;;  %v2002_v32 = vadd.f32 %v1994_v47, %v1978_v22  ;;  %v2237_v44 = vmul.f32 %v2229_v7, %v4998_v54  ;;  %v1711_v30 = vpop.permute.xlu1 %1710 }
 0x3a8   :  { %v5067_v35 = vmul.f32 %v4870_v12, %v2022_v21  ;;  %2741 = vrsqrt.f32 %v5063_v58  ;;  %v2010_v15 = vsub.f32 %v4787_v29, %v1954_v43  ;;  %v2406_v42 = vmul.f32 %v2736_v8, %v5806_v51 }
 0x3a9   :  { %v5070_v57 = vpop.eup %2737  ;;  %v2024_v38 = vadd.f32 %v2016_v13, %v2000_v26  ;;  %vm2067_vm0 = vcmp.lt.f32.partialorder %v4948_v24, 1e-08  ;;  %v1730_v50 = vsub.f32 %v1711_v30, %v4728_v48  ;;  %2743 = vrcp.f32 %v2143_v6 }
 0x3aa   :  { %v2157_v53 = vmul.f32 1.0614054, %v5070_v57  ;;  %vm2062_vm1 = vcmp.lt.f32.partialorder %v5067_v35, 1e-08  ;;  %v2018_v54 = vmul.f32 %v2010_v15, %v2010_v15  ;;  %v2414_v3 = vmul.f32 %v2406_v42, %v2398_v17 }
 0x3ab   :  { %v5079_v12 = vmul.f32 %v4922_v9, %v2024_v38  ;;  %v5084_v29 = vsel %vm2062_vm1, 1.0, %v5067_v35  ;;  %v1738_v41 = vmul.f32 %v1730_v50, %v1730_v50  ;;  %v2231_v2 = vsub.f32 0.0, %v5024_v25  ;;  %v1719_v20 = vpop.permute.xlu1 %1718 }
 0x3ac   :  { %v2165_v34 = vadd.f32 -1.4531521, %v2157_v53  ;;  %2745 = vrsqrt.f32 %v5084_v29  ;;  %v2246_v62 = vmul.f32 1.442695, %v2237_v44  ;;  %v2026_v39 = vadd.f32 %v2018_v54, %v2002_v32 }
 0x3ad   :  { %vm2064_vm3 = vcmp.lt.f32.partialorder %v5079_v12, 1e-08  ;;  %v5090_v9 = vmul.f32 %v2414_v3, %v4961_v45  ;;  %v1746_v18 = vadd.f32 %v1738_v41, %v5807_v28  ;;  %v1732_v47 = vsub.f32 %v1719_v20, %v4728_v48  ;;  %v5810_v45 = vld [vmem:[#allocation44_spill] sm:$0xff] }
 0x3ae   :  { %v2173_v22 = vmul.f32 %v5070_v57, %v2165_v34  ;;  %v5096_v14 = vsel %vm2064_vm3, 1.0, %v5079_v12  ;;  %v5100_v7 = vpop.eup %2739  ;;  %v5104_v55 = vmul.f32 %v5809_v36, %v5808_v37  ;;  %v1772_v40 = vsub.f32 0.0, %v5810_v45 }
 0x3af   :  { %2747 = vrsqrt.f32 %v5096_v14  ;;  %v5111_v19 = vsel %vm2067_vm0, 1.0, %v4948_v24  ;;  %v5114_v26 = vmul.f32 %v4958_v0, %v2026_v39  ;;  %v1778_v48 = vmul.f32 %v1770_v52, %v1746_v18  ;;  %v5811_v52 = vld [vmem:[#allocation74_spill] sm:$0xff] }
 0x3b0   :  { %v2181_v31 = vadd.f32 1.4214138, %v2173_v22  ;;  %v2239_v21 = vmul.f32 %v2231_v2, %v5024_v25  ;;  %2749 = vpow2.f32 %v2246_v62  ;;  %v2309_v6 = vsub.f32 1.0, %v4972_v27  ;;  %v2358_v32 = vpop.permute.xlu1 %2357  ;;  %v5812_v18 = vld [vmem:[#allocation54_spill] sm:$0xff] }
 0x3b1   :  { %v1740_v13 = vmul.f32 %v1732_v47, %v1732_v47  ;;  %v2311_v43 = vsub.f32 1.0, %v5044_v46  ;;  %vm2066_vm4 = vcmp.lt.f32.partialorder %v5114_v26, 1e-08  ;;  %v5127_v0 = vmul.f32 %v5100_v7, %v5033_v33  ;;  %v5814_v27 = vld [vmem:[#allocation18_spill] sm:$0xff] }
 0x3b2   :  { %v5121_v17 = vpop.eup %2741  ;;  %v2189_v8 = vmul.f32 %v5070_v57, %v2181_v31  ;;  %2751 = vrsqrt.f32 %v5111_v19  ;;  %v5133_v5 = vsel %vm2066_vm4, 1.0, %v5114_v26  ;;  %v2392_v38 = vmul.f32 %v4982_v60, %v2358_v32  ;;  %v5813_v32 = vld [vmem:[#allocation14_spill] sm:$0xff] }
 0x3b3   :  { %v1748_v25 = vadd.f32 %v1740_v13, %v5811_v52  ;;  %v2077_v44 = vmul.f32 %v5121_v17, %v5063_v58  ;;  %v5139_v15 = vpop.eup %2743  ;;  %2753 = vrsqrt.f32 %v5133_v5  ;;  %vm2078_vm5 = vcmp.eq.f32.partialorder %v5063_v58, inf }
 0x3b4   :  { %v2197_v51 = vadd.f32 -0.28449672, %v2189_v8  ;;  %v2250_v42 = vmul.f32 1.442695, %v2239_v21  ;;  %v1791_v30 = vmul.f32 1.442695, %v1778_v48  ;;  %v2408_v41 = vmul.f32 %v5028_v11, %v2392_v38  ;;  %v2366_v2 = vpop.permute.xlu1 %2365 }
 0x3b5   :  { %v1780_v53 = vmul.f32 %v1772_v40, %v1748_v25  ;;  %vm2080_vm6 = vcmp.eq.f32.partialorder %v5063_v58, 0.0  ;;  %v2081_v50 = vand.u32 2147483648, %v5063_v58  ;;  %v2079_v34 = vsel %vm2078_vm5, %v5063_v58, %v2077_v44 }
 0x3b6   :  { %v5145_v54 = vpop.eup %2745  ;;  %v2205_v3 = vmul.f32 %v5070_v57, %v2197_v51  ;;  %vm2092_vm11 = vcmp.eq.f32.partialorder %v5084_v29, inf  ;;  %vm2106_vm12 = vcmp.eq.f32.partialorder %v5096_v14, inf  ;;  %v2394_v20 = vmul.f32 %v4982_v60, %v2366_v2 }
 0x3b7   :  { %v2082_v62 = vsel %vm2080_vm6, %v2081_v50, %v2079_v34  ;;  %v2091_v39 = vmul.f32 %v5145_v54, %v5084_v29  ;;  %v5156_v47 = vmul.f32 %v2408_v41, %v5812_v18  ;;  %v2095_v58 = vand.u32 2147483648, %v5084_v29 }
 0x3b8   :  { %v2213_v22 = vadd.f32 0.2548296, %v2205_v3  ;;  %v2132_v28 = vmul.f32 0.3275911, %v2082_v62  ;;  %2755 = vpow2.f32 %v1791_v30  ;;  %v2410_v36 = vmul.f32 %v4890_v59, %v2394_v20  ;;  %v2370_v30 = vpop.permute.xlu1 %2369 }
 0x3b9   :  { %v5159_v37 = vpop.eup %2747  ;;  %v2093_v11 = vsel %vm2092_vm11, %v5084_v29, %v2091_v39  ;;  %v2159_v45 = vmul.f32 1.0614054, %v5139_v15  ;;  %vm2094_vm13 = vcmp.eq.f32.partialorder %v5084_v29, 0.0  ;;  %v2109_v13 = vand.u32 2147483648, %v5096_v14 }
 0x3ba   :  { %v2221_v40 = vmul.f32 %v5070_v57, %v2213_v22  ;;  %v2105_v31 = vmul.f32 %v5159_v37, %v5096_v14  ;;  %v2140_v48 = vadd.f32 1.0, %v2132_v28  ;;  %v2750_v21 = vpop.eup %2749  ;;  %v5169_v8 = vsel %vm2094_vm13, %v2095_v58, %v2093_v11 }
 0x3bb   :  { %v5172_v52 = vmul.f32 %v2410_v36, %v5813_v32  ;;  %v2167_v25 = vadd.f32 -1.4531521, %v2159_v45  ;;  %vm2113_vm14 = vcmp.eq.f32.partialorder %v5033_v33, inf  ;;  %vm2108_vm5 = vcmp.eq.f32.partialorder %v5096_v14, 0.0 }
 0x3bc   :  { %v5175_v59 = vpop.eup %2751  ;;  %v2261_v57 = vmul.f32 %v2750_v21, %v2221_v40  ;;  %v2107_v44 = vsel %vm2106_vm12, %v5096_v14, %v2105_v31  ;;  %2757 = vrcp.f32 %v2140_v48  ;;  %vm2120_vm6 = vcmp.eq.f32.partialorder %v5133_v5, inf }
 0x3bd   :  { %v2110_v29 = vsel %vm2108_vm5, %v2109_v13, %v2107_v44  ;;  %v2134_v38 = vmul.f32 0.3275911, %v5169_v8  ;;  %v2175_v51 = vmul.f32 %v5139_v15, %v2167_v25  ;;  %vm2115_vm11 = vcmp.eq.f32.partialorder %v5033_v33, 0.0  ;;  %v5185_v50 = vpop.eup %2753  ;;  %v2378_v13 = vpop.permute.xlu1 %2377 }
 0x3be   :  { %vm2448_vm13 = vcmask 523264   ;;  %v2269_v3 = vsub.f32 1.0, %v2261_v57  ;;  %v2136_v34 = vmul.f32 0.3275911, %v2110_v29  ;;  %v2123_v41 = vand.u32 2147483648, %v5133_v5 }
 0x3bf   :  { %v1795_v2 = vmul.f32 1.442695, %v1780_v53  ;;  %v2119_v14 = vmul.f32 %v5185_v50, %v5133_v5  ;;  %v2228_v39 = vsub.f32 0.0, %v2082_v62  ;;  %v2142_v20 = vadd.f32 1.0, %v2134_v38 }
 0x3c0   :  { %v2183_v22 = vadd.f32 1.4214138, %v2175_v51  ;;  %v2277_v28 = vmul.f32 0.88622695, %v2269_v3  ;;  %v2144_v18 = vadd.f32 1.0, %v2136_v34  ;;  %2759 = vpow2.f32 %v2250_v42 }
 0x3c1   :  { %v2395_v58 = vmul.f32 %v4982_v60, %v2370_v30  ;;  %v2121_v11 = vsel %vm2120_vm6, %v5133_v5, %v2119_v14  ;;  %vm2122_vm12 = vcmp.eq.f32.partialorder %v5133_v5, 0.0  ;;  %2761 = vrcp.f32 %v2142_v20 }
 0x3c2   :  { %v2191_v53 = vmul.f32 %v5139_v15, %v2183_v22  ;;  %v2293_v36 = vmul.f32 %v4974_v1, %v2277_v28  ;;  %2763 = vrcp.f32 %v2144_v18  ;;  %v2124_v45 = vsel %vm2122_vm12, %v2123_v41, %v2121_v11  ;;  %v2756_v31 = vpop.eup %2755 }
 0x3c3   :  { %v2116_v40 = vand.u32 2147483648, %v5033_v33  ;;  %v2138_v48 = vmul.f32 0.3275911, %v2124_v45  ;;  %2765 = vpow2.f32 %v1795_v2  ;;  %v2236_v42 = vmul.f32 %v2228_v39, %v2082_v62 }
 0x3c4   :  { %v2199_v21 = vadd.f32 -0.28449672, %v2191_v53  ;;  %v2317_v5 = vsel %vm2061_vm9, %v2309_v6, %v2293_v36  ;;  %v2230_v32 = vsub.f32 0.0, %v5169_v8  ;;  %v2411_v25 = vmul.f32 %v5053_v49, %v2395_v58  ;;  %v5815_v49 = vld [vmem:[#allocation20_spill] sm:$0xff] }
 0x3c5   :  { %v2114_v1 = vsel %vm2113_vm14, %v5033_v33, %v5127_v0  ;;  %v2425_v57 = vmul.f32 %v5010_v23, %v2317_v5  ;;  %v2232_v44 = vsub.f32 0.0, %v2110_v29  ;;  %v2146_v62 = vadd.f32 1.0, %v2138_v48  ;;  %v5816_v0 = vld [vmem:[#allocation23_spill] sm:$0xff]  ;;  %v5817_v36 = vld [vmem:[#allocation92_spill] sm:$0xff] }
 0x3c6   :  { %v2207_v38 = vmul.f32 %v5139_v15, %v2199_v21  ;;  %v5210_v51 = vpop.eup %2757  ;;  %v5213_v4 = vmul.f32 %v2411_v25, %v5814_v27  ;;  %v5217_v6 = vsel %vm2115_vm11, %v2116_v40, %v2114_v1  ;;  %v2405_v30 = vmul.f32 %v2756_v31, %v5815_v49  ;;  %v2386_v27 = vpop.permute.xlu1 %2385 }
 0x3c7   :  { %v2397_v3 = vmul.f32 %v4982_v60, %v2378_v13  ;;  %v2441_v34 = vsub.f32 %v5816_v0, %v2425_v57  ;;  %2767 = vrcp.f32 %v2146_v62  ;;  %v2156_v23 = vmul.f32 1.0614054, %v5210_v51 }
 0x3c8   :  { %v5224_v41 = vmul.f32 0.33333334, %v5048_v16  ;;  %v2244_v2 = vmul.f32 1.442695, %v2236_v42  ;;  %v2215_v14 = vadd.f32 0.2548296, %v2207_v38  ;;  %v2240_v33 = vmul.f32 %v2232_v44, %v2110_v29 }
 0x3c9   :  { %v2137_v39 = vmul.f32 0.3275911, %v5217_v6  ;;  %v2413_v20 = vmul.f32 %v2405_v30, %v2397_v3  ;;  %2450 = vst.msk [vmem:[%s5398_s8 + $0x8] sm:$0xff] %vm2448_vm13, %v2441_v34  ;;  %v2164_v22 = vadd.f32 -1.4531521, %v2156_v23  ;;  %v2238_v28 = vmul.f32 %v2230_v32, %v5169_v8 }
 0x3ca   :  { %v2126_v18 = vmul.f32 %v5175_v59, %v5111_v19  ;;  %v2760_v58 = vpop.eup %2759  ;;  %v2223_v11 = vmul.f32 %v5139_v15, %v2215_v14  ;;  %vm2127_vm9 = vcmp.eq.f32.partialorder %v5111_v19, inf  ;;  %v2234_v48 = vsub.f32 0.0, %v2124_v45  ;;  %v5818_v14 = vld [vmem:[#allocation69_spill] sm:$0xff] }
 0x3cb   :  { %v2145_v53 = vadd.f32 1.0, %v2137_v39  ;;  %v5236_v40 = vmul.f32 %v2413_v20, %v5817_v36  ;;  %v5239_v31 = vpop.eup %2761  ;;  %v2172_v29 = vmul.f32 %v5210_v51, %v2164_v22  ;;  %v2130_v8 = vand.u32 2147483648, %v5111_v19 }
 0x3cc   :  { %v2128_v42 = vsel %vm2127_vm9, %v5111_v19, %v2126_v18  ;;  %v5244_v21 = vpop.eup %2763  ;;  %v2158_v13 = vmul.f32 1.0614054, %v5239_v31  ;;  %v2263_v15 = vmul.f32 %v2760_v58, %v2223_v11  ;;  %vm2129_vm14 = vcmp.eq.f32.partialorder %v5111_v19, 0.0 }
 0x3cd   :  { %2769 = vrcp.f32 %v2145_v53  ;;  %v2766_v5 = vpop.eup %2765  ;;  %v2160_v32 = vmul.f32 1.0614054, %v5244_v21  ;;  %v2180_v25 = vadd.f32 1.4214138, %v2172_v29  ;;  %v2248_v1 = vmul.f32 1.442695, %v2238_v28 }
 0x3ce   :  { %v5249_v57 = vsel %vm2129_vm14, %v2130_v8, %v2128_v42  ;;  %2771 = vpow2.f32 %v2244_v2  ;;  %v2166_v44 = vadd.f32 -1.4531521, %v2158_v13  ;;  %v2271_v62 = vsub.f32 1.0, %v2263_v15 }
 0x3cf   :  { %v2139_v38 = vmul.f32 0.3275911, %v5249_v57  ;;  %v2168_v49 = vadd.f32 -1.4531521, %v2160_v32  ;;  %v2252_v30 = vmul.f32 1.442695, %v2240_v33  ;;  %v2242_v3 = vmul.f32 %v2234_v48, %v2124_v45 }
 0x3d0   :  { %v2188_v0 = vmul.f32 %v5210_v51, %v2180_v25  ;;  %v2174_v19 = vmul.f32 %v5239_v31, %v2166_v44  ;;  %v2279_v34 = vmul.f32 0.88622695, %v2271_v62  ;;  %v2407_v39 = vmul.f32 %v2766_v5, %v5818_v14 }
 0x3d1   :  { %v2147_v23 = vadd.f32 1.0, %v2139_v38  ;;  %v5255_v20 = vpop.eup %2767  ;;  %v2176_v2 = vmul.f32 %v5244_v21, %v2168_v49  ;;  %v2233_v28 = vsub.f32 0.0, %v5217_v6  ;;  %v2399_v18 = vmul.f32 %v4982_v60, %v2386_v27  ;;  %v5821_v49 = vld [vmem:[#allocation45_spill] sm:$0xff] }
 0x3d2   :  { %v2196_v22 = vadd.f32 -0.28449672, %v2188_v0  ;;  %v2162_v33 = vmul.f32 1.0614054, %v5255_v20  ;;  %v2182_v45 = vadd.f32 1.4214138, %v2174_v19  ;;  %v2295_v58 = vmul.f32 %v4996_v63, %v2279_v34 }
 0x3d3   :  { %2773 = vrcp.f32 %v2147_v23  ;;  %v2184_v11 = vadd.f32 1.4214138, %v2176_v2  ;;  %v2415_v36 = vmul.f32 %v2407_v39, %v2399_v18  ;;  %v2256_v8 = vmul.f32 1.442695, %v2242_v3  ;;  %v5823_v23 = vld [vmem:[#allocation88_spill] sm:$0xff] }
 0x3d4   :  { %v2204_v53 = vmul.f32 %v5210_v51, %v2196_v22  ;;  %2775 = vpow2.f32 %v2248_v1  ;;  %v2170_v48 = vadd.f32 -1.4531521, %v2162_v33  ;;  %v2190_v29 = vmul.f32 %v5239_v31, %v2182_v45  ;;  %v5819_v1 = vld [vmem:[#allocation48_spill] sm:$0xff] }
 0x3d5   :  { %2777 = vpow2.f32 %v2252_v30  ;;  %v2319_v60 = vsel %vm2063_vm10, %v2311_v43, %v2295_v58  ;;  %v2192_v42 = vmul.f32 %v5244_v21, %v2184_v11  ;;  %v2241_v25 = vmul.f32 %v2233_v28, %v5217_v6  ;;  %v5820_v43 = vld [vmem:[#allocation94_spill] sm:$0xff] }
 0x3d6   :  { %v2212_v13 = vadd.f32 0.2548296, %v2204_v53  ;;  %v2427_v63 = vmul.f32 %v5213_v4, %v2319_v60  ;;  %v2178_v5 = vmul.f32 %v5255_v20, %v2170_v48  ;;  %v2198_v32 = vadd.f32 -0.28449672, %v2190_v29 }
 0x3d7   :  { %v5270_v15 = vpop.eup %2769  ;;  %v5275_v44 = vmul.f32 %v2415_v36, %v5819_v1  ;;  %v2200_v46 = vadd.f32 -0.28449672, %v2192_v42  ;;  %v5822_v4 = vsub.f32 1.0, %v5821_v49  ;;  %v2235_v19 = vsub.f32 0.0, %v5249_v57  ;;  %v5824_v1 = vld [vmem:[#allocation8_spill] sm:$0xff] }
 0x3d8   :  { %v2220_v56 = vmul.f32 %v5210_v51, %v2212_v13  ;;  %v2443_v62 = vsub.f32 %v5820_v43, %v2427_v63  ;;  %v2161_v38 = vmul.f32 1.0614054, %v5270_v15  ;;  %v2772_v27 = vpop.eup %2771  ;;  %v2186_v3 = vadd.f32 1.4214138, %v2178_v5 }
 0x3d9   :  { %v786_v30 = vmul.f32 0.88622695, %v5822_v4  ;;  %v2206_v0 = vmul.f32 %v5239_v31, %v2198_v32  ;;  %v2208_v6 = vmul.f32 %v5244_v21, %v2200_v46  ;;  %2779 = vpow2.f32 %v2256_v8 }
 0x3da   :  { %v2260_v34 = vmul.f32 %v2772_v27, %v2220_v56  ;;  %2452 = vst.msk [vmem:[%s5398_s8 + $0x18] sm:$0xff] %vm2448_vm13, %v2443_v62  ;;  %v2169_v51 = vadd.f32 -1.4531521, %v2161_v38  ;;  %v5291_v14 = vmul.f32 %v5823_v23, %v5104_v55  ;;  %v2194_v39 = vmul.f32 %v5255_v20, %v2186_v3 }
 0x3db   :  { %v2214_v2 = vadd.f32 0.2548296, %v2206_v0  ;;  %v2254_v22 = vmul.f32 1.442695, %v2241_v25  ;;  %v2216_v28 = vadd.f32 0.2548296, %v2208_v6  ;;  %v2243_v55 = vmul.f32 %v2235_v19, %v5249_v57 }
 0x3dc   :  { %v2268_v18 = vsub.f32 1.0, %v2260_v34  ;;  %v2308_v33 = vsub.f32 1.0, %v5224_v41  ;;  %v2177_v45 = vmul.f32 %v5270_v15, %v2169_v51  ;;  %v2304_v11 = vmul.f32 0.33333334, %v5079_v12 }
 0x3dd   :  { %v5296_v58 = vpop.eup %2773  ;;  %v2202_v53 = vadd.f32 -0.28449672, %v2194_v39  ;;  %v2222_v36 = vmul.f32 %v5239_v31, %v2214_v2  ;;  %v2224_v29 = vmul.f32 %v5244_v21, %v2216_v28  ;;  %v2302_v5 = vmul.f32 0.33333334, %v5067_v35  ;;  %v5825_v2 = vld [vmem:[#allocation33_spill] sm:$0xff] }
 0x3de   :  { %v2776_v48 = vpop.eup %2775  ;;  %v2276_v60 = vmul.f32 0.88622695, %v2268_v18  ;;  %v2185_v42 = vadd.f32 1.4214138, %v2177_v45  ;;  %v2163_v8 = vmul.f32 1.0614054, %v5296_v58  ;;  %2781 = vpow2.f32 %v2254_v22 }
 0x3df   :  { %v2778_v13 = vpop.eup %2777  ;;  %v2210_v41 = vmul.f32 %v5255_v20, %v2202_v53  ;;  %v2262_v63 = vmul.f32 %v2776_v48, %v2222_v36  ;;  %v2434_v46 = vmul.f32 2.0, %v5824_v1  ;;  %v2258_v43 = vmul.f32 1.442695, %v2243_v55  ;;  %v5827_v48 = vld [vmem:[#allocation32_spill] sm:$0xff] }
 0x3e0   :  { %v2264_v32 = vmul.f32 %v2778_v13, %v2224_v29  ;;  %v2292_v25 = vmul.f32 %v5121_v17, %v2276_v60  ;;  %v2193_v31 = vmul.f32 %v5270_v15, %v2185_v42  ;;  %v2171_v57 = vadd.f32 -1.4531521, %v2163_v8  ;;  %v5828_v29 = vld [vmem:[#allocation22_spill] sm:$0xff]  ;;  %v2800_v42 = vld [vmem:[%s5393_s3 + $0xe] ss:$0 sm:$0xff] }
 0x3e1   :  { %v2218_v21 = vadd.f32 0.2548296, %v2210_v41  ;;  %v2270_v56 = vsub.f32 1.0, %v2262_v63  ;;  %v780_v4 = vsub.f32 1.0, %v5291_v14  ;;  %v2310_v34 = vsub.f32 1.0, %v2302_v5  ;;  %v5829_v8 = vld [vmem:[#allocation38_spill] sm:$0xff] }
 0x3e2   :  { %v2272_v62 = vsub.f32 1.0, %v2264_v32  ;;  %v2316_v38 = vsel %vm2060_vm15, %v2308_v33, %v2292_v25  ;;  %v2201_v27 = vadd.f32 -0.28449672, %v2193_v31  ;;  %v2179_v49 = vmul.f32 %v5296_v58, %v2171_v57  ;;  %v5831_v25 = vld [vmem:[#allocation30_spill] sm:$0xff] }
 0x3e3   :  { %v2226_v3 = vmul.f32 %v5255_v20, %v2218_v21  ;;  %v2424_v17 = vmul.f32 %v5156_v47, %v2316_v38  ;;  %v2278_v0 = vmul.f32 0.88622695, %v2270_v56  ;;  %v2780_v19 = vpop.eup %2779  ;;  %2783 = vpow2.f32 %v2258_v43  ;;  %v5826_v47 = vld [vmem:[#allocation13_spill] sm:$0xff]  ;;  %v5832_v21 = vld [vmem:[#allocation66_spill] sm:$0xff] }
 0x3e4   :  { %v2280_v6 = vmul.f32 0.88622695, %v2272_v62  ;;  %v2209_v51 = vmul.f32 %v5270_v15, %v2201_v27  ;;  %v2187_v23 = vadd.f32 1.4214138, %v2179_v49  ;;  %v2312_v14 = vsub.f32 1.0, %v2304_v11 }
 0x3e5   :  { %v2266_v39 = vmul.f32 %v2780_v19, %v2226_v3  ;;  %v2440_v16 = vsub.f32 %v5825_v2, %v2424_v17  ;;  %v2294_v22 = vmul.f32 %v5145_v54, %v2278_v0  ;;  %v802_v33 = vmul.f32 %v5826_v47, %v786_v30  ;;  %v2801_v27 = vld [vmem:[%s5393_s3 + $0xa] ss:$0 sm:$0xff]  ;;  %v5836_v3 = vld [vmem:[#allocation17_spill] sm:$0xff]  ;;  %v5837_v19 = vld [vmem:[#allocation95_spill] sm:$0xff] }
 0x3e6   :  { %v2296_v28 = vmul.f32 %v5159_v37, %v2280_v6  ;;  %v2217_v18 = vadd.f32 0.2548296, %v2209_v51  ;;  %v2195_v20 = vmul.f32 %v5296_v58, %v2187_v23  ;;  %v2306_v53 = vmul.f32 0.33333334, %v5114_v26 }
 0x3e7   :  { %v2274_v45 = vsub.f32 1.0, %v2266_v39  ;;  %2449 = vst.msk [vmem:[%s5398_s8] sm:$0xff] %vm2448_vm13, %v2440_v16  ;;  %v2318_v54 = vsel %vm2062_vm1, %v2310_v34, %v2294_v22  ;;  %v963_v60 = vmul.f32 %v5828_v29, %v5827_v48  ;;  %v946_v13 = vmul.f32 %v2800_v42, %v5829_v8  ;;  %v5838_v22 = vld [vmem:[#allocation40_spill] sm:$0xff] }
 0x3e8   :  { %v2320_v37 = vsel %vm2064_vm3, %v2312_v14, %v2296_v28  ;;  %v2426_v11 = vmul.f32 %v5172_v52, %v2318_v54  ;;  %v2225_v36 = vmul.f32 %v5270_v15, %v2217_v18  ;;  %v2203_v55 = vadd.f32 -0.28449672, %v2195_v20  ;;  %v2782_v30 = vpop.eup %2781  ;;  %v5830_v15 = vld [vmem:[#allocation11_spill] sm:$0xff] }
 0x3e9   :  { %v2428_v35 = vmul.f32 %v5037_v10, %v2320_v37  ;;  %v2282_v41 = vmul.f32 0.88622695, %v2274_v45  ;;  %v788_v12 = vmul.f32 0.88622695, %v780_v4  ;;  %v812_v32 = vmul.f32 0.33333334, %v5830_v15 }
 0x3ea   :  { %v2442_v63 = vsub.f32 %v2434_v46, %v2426_v11  ;;  %v2265_v5 = vmul.f32 %v2782_v30, %v2225_v36  ;;  %v2211_v52 = vmul.f32 %v5296_v58, %v2203_v55  ;;  %v2314_v1 = vsub.f32 1.0, %v2306_v53 }
 0x3eb   :  { %v2444_v31 = vsub.f32 %v5831_v25, %v2428_v35  ;;  %v2298_v57 = vmul.f32 %v5185_v50, %v2282_v41  ;;  %v5833_v56 = vsub.f32 1.0, %v5832_v21  ;;  %v2305_v46 = vmul.f32 0.33333334, %v4928_v61  ;;  %v5835_v50 = vld [vmem:[#allocation19_spill] sm:$0xff] }
 0x3ec   :  { %2451 = vst.msk [vmem:[%s5398_s8 + $0x10] sm:$0xff] %vm2448_vm13, %v2442_v63  ;;  %v2273_v10 = vsub.f32 1.0, %v2265_v5  ;;  %v2219_v38 = vadd.f32 0.2548296, %v2211_v52  ;;  %v888_v49 = vmul.f32 %v2801_v27, %v5835_v50  ;;  %v2438_v4 = vmul.f32 2.0, %v963_v60 }
 0x3ed   :  { %v826_v62 = vsel %vm570_vm8, %v5833_v56, %v802_v33  ;;  %v954_v17 = vmul.f32 %v946_v13, %v5836_v3  ;;  %2453 = vst.msk [vmem:[%s5398_s8 + $0x20] sm:$0xff] %vm2448_vm13, %v2444_v31  ;;  %v2322_v0 = vsel %vm2066_vm4, %v2314_v1, %v2298_v57  ;;  %v804_v6 = vmul.f32 %v5837_v19, %v788_v12  ;;  %v2784_v39 = vpop.eup %2783  ;;  %v5839_v33 = vld [vmem:[#allocation15_spill] sm:$0xff] }
 0x3ee   :  { %v2430_v34 = vmul.f32 %v5090_v9, %v2322_v0  ;;  %v2281_v51 = vmul.f32 0.88622695, %v2273_v10  ;;  %v2227_v23 = vmul.f32 %v5296_v58, %v2219_v38  ;;  %v820_v16 = vsub.f32 1.0, %v812_v32 }
 0x3ef   :  { %v962_v2 = vmul.f32 %v954_v17, %v826_v62  ;;  %v948_v28 = vmul.f32 %v2800_v42, %v5838_v22  ;;  %v2313_v20 = vsub.f32 1.0, %v2305_v46  ;;  %v904_v26 = vmul.f32 %v5839_v33, %v888_v49 }
 0x3f0   :  { %v2446_v14 = vsub.f32 %v2438_v4, %v2430_v34  ;;  %v2297_v18 = vmul.f32 %v5100_v7, %v2281_v51  ;;  %v2267_v47 = vmul.f32 %v2784_v39, %v2227_v23  ;;  %v828_v45 = vsel %vm572_vm2, %v820_v16, %v804_v6 }
 0x3f1   :  { %v2307_v53 = vmul.f32 0.33333334, %v4948_v24  ;;  %v2437_v54 = vmul.f32 2.0, %v962_v2  ;;  %v956_v7 = vmul.f32 %v948_v28, %v904_v26 }
 0x3f2   :  { %2455 = vst.msk [vmem:[%s5398_s8 + $0x30] sm:$0xff] %vm2448_vm13, %v2446_v14  ;;  %v2321_v9 = vsel %vm2065_vm7, %v2313_v20, %v2297_v18  ;;  %v2275_v58 = vsub.f32 1.0, %v2267_v47 }
 0x3f3   :  { %v2429_v37 = vmul.f32 %v5236_v40, %v2321_v9  ;;  %v964_v36 = vmul.f32 %v956_v7, %v828_v45  ;;  %v2315_v48 = vsub.f32 1.0, %v2307_v53 }
 0x3f4   :  { %v2283_v11 = vmul.f32 0.88622695, %v2275_v58 }
 0x3f5   :  { %v2445_v55 = vsub.f32 %v2437_v54, %v2429_v37  ;;  %v2439_v29 = vmul.f32 2.0, %v964_v36 }
 0x3f6   :  { %v2299_v30 = vmul.f32 %v5175_v59, %v2283_v11 }
 0x3f7   :  { %2454 = vst.msk [vmem:[%s5398_s8 + $0x28] sm:$0xff] %vm2448_vm13, %v2445_v55 }
 0x3f8   :  { %v2323_v61 = vsel %vm2067_vm0, %v2315_v48, %v2299_v30 }
 0x3f9   :  { %v2431_v60 = vmul.f32 %v5275_v44, %v2323_v61 }
 0x3fb   :  { %v2447_v42 = vsub.f32 %v2439_v29, %v2431_v60 }
 0x3fd   :  { %2456 = vst.msk [vmem:[%s5398_s8 + $0x38] sm:$0xff] %vm2448_vm13, %v2447_v42 }
 0x3fe   :  { %2469 = vsyncpa [#allocation3], 1 }
 0x3ff   :  { %2470 = vsyncpa [#allocation5], 1 }

</bundles_post_ra>
